<compile_context>
chip_gen: v5e
topology: v5e:2x2
jax: 0.10.0
libtpu: 0.0.40
codegen_flags: <defaults>
</compile_context>

<pallas_src>
import functools
import math

import jax
import jax.numpy as jnp
from jax.experimental import pallas as pl
from jax.experimental.pallas import tpu as pltpu

LN_EPS = 1e-5  # PyTorch nn.LayerNorm default


# ----------------------------------------------------------------------------------
# capability probes / global knobs
# ----------------------------------------------------------------------------------
def _probe_weight_pipeline_mode():
    """Return pl.Buffered(1) if this JAX/Mosaic build supports single-buffered
    BlockSpecs on pallas_call (constant weight blocks don't need double buffering),
    else None. Probing keeps the main kernels robust across versions."""
    try:
        mode = pl.Buffered(1)

        def _copy(x_ref, o_ref):
            o_ref[...] = x_ref[...]

        f = pl.pallas_call(
            _copy,
            out_shape=jax.ShapeDtypeStruct((8, 128), jnp.float32),
            grid_spec=pltpu.PrefetchScalarGridSpec(
                num_scalar_prefetch=0,
                grid=(1,),
                in_specs=[pl.BlockSpec((8, 128), lambda i: (0, 0),
                                       pipeline_mode=mode)],
                out_specs=pl.BlockSpec((8, 128), lambda i: (0, 0)),
            ),
        )
        jax.block_until_ready(f(jnp.zeros((8, 128), jnp.float32)))
        return mode
    except Exception:
        return None


_WEIGHT_PIPELINE_MODE = _probe_weight_pipeline_mode()


def _vmem_limit_bytes():
    """Raise the scoped-VMEM ceiling: ~cap-8MiB, capped at 100 MiB (so ~56 MiB on
    v7x's 64 MiB VMEM, ~100 MiB on v5e/v6e's 128 MiB)."""
    try:
        cap = pltpu.get_tpu_info().vmem_capacity_bytes
    except Exception:
        cap = 64 * 1024 * 1024
    return min(cap - 8 * 1024 * 1024, 100 * 1024 * 1024)


_VMEM_LIMIT = _vmem_limit_bytes()


# ----------------------------------------------------------------------------------
# kernel helpers
# ----------------------------------------------------------------------------------
def _layernorm(x, gamma, beta):
    # x: (T, D) f32; gamma/beta: (1, D) f32 -> f32 statistics
    mu = jnp.mean(x, axis=-1, keepdims=True)
    var = jnp.mean((x - mu) ** 2, axis=-1, keepdims=True)
    return (x - mu) * jax.lax.rsqrt(var + LN_EPS) * gamma + beta


def _gelu_exact(x):
    # exact (erf-based) GELU, matching torch.nn.GELU() default
    return 0.5 * x * (1.0 + jax.lax.erf(x * (1.0 / math.sqrt(2.0))))


# ----------------------------------------------------------------------------------
# kernels
# ----------------------------------------------------------------------------------
def block_kernel(x_ref, g1_ref, b1_ref, wqkv_ref, bqkv_ref, wproj_ref, bproj_ref,
                 g2_ref, b2_ref, wfc1_ref, bfc1_ref, wfc2_ref, bfc2_ref,
                 *rest, num_heads, fuse_final_ln):
    """One pre-norm transformer Block for one batch element (optionally + final LN).

    x = x + Proj(Attn(LN1(x)));  x = x + FC2(GELU(FC1(LN2(x))));  [x = LN_f(x)]
    """
    if fuse_final_ln:
        gf_ref, bf_ref, o_ref = rest
    else:
        (o_ref,) = rest

    x = x_ref[0].astype(jnp.float32)          # (T, D) residual stream, f32
    T, D = x.shape
    hd = D // num_heads
    scale = hd ** -0.5

    # ---- Attention branch -------------------------------------------------------
    xn = _layernorm(x, g1_ref[...], b1_ref[...])
    qkv = jnp.dot(xn.astype(jnp.bfloat16), wqkv_ref[...],
                  preferred_element_type=jnp.float32) + bqkv_ref[...]      # (T, 3D) f32

    # Head split without per-head lane slicing: one 2-D transpose (XLU-native) plus
    # tile-aligned leading-dim reshapes -> (3, H, hd, T).
    qkv_t = jnp.transpose(qkv, (1, 0)).reshape(3, num_heads, hd, T)
    q = (qkv_t[0] * scale).astype(jnp.bfloat16)     # (H, hd, Tq); 1/sqrt(hd) folded in
    k = qkv_t[1].astype(jnp.bfloat16)               # (H, hd, Tk)
    v = qkv_t[2].astype(jnp.bfloat16)               # (H, hd, Tk)

    # scores[h, i, j] = sum_d q[h, d, i] * k[h, d, j]  -> (H, Tq, Tk), f32 accum
    s = jax.lax.dot_general(q, k, (((1,), (1,)), ((0,), (0,))),
                            preferred_element_type=jnp.float32)
    s = s - jnp.max(s, axis=-1, keepdims=True)
    p = jnp.exp(s)
    p = p * pl.reciprocal(jnp.sum(p, axis=-1, keepdims=True), approx=True)

    # o_t[h, d, i] = sum_j v[h, d, j] * p[h, i, j]  -> (H, hd, Tq)
    o_t = jax.lax.dot_general(v, p.astype(jnp.bfloat16), (((2,), (2,)), ((0,), (0,))),
                              preferred_element_type=jnp.float32)
    attn = jnp.transpose(o_t.reshape(D, T), (1, 0))                        # (T, D)
    attn = jnp.dot(attn.astype(jnp.bfloat16), wproj_ref[...],
                   preferred_element_type=jnp.float32) + bproj_ref[...]
    x = x + attn

    # ---- MLP branch (mlp_ratio = 2.0, exact GELU) -------------------------------
    xn2 = _layernorm(x, g2_ref[...], b2_ref[...])
    h = jnp.dot(xn2.astype(jnp.bfloat16), wfc1_ref[...],
                preferred_element_type=jnp.float32) + bfc1_ref[...]
    h = _gelu_exact(h)
    h = jnp.dot(h.astype(jnp.bfloat16), wfc2_ref[...],
                preferred_element_type=jnp.float32) + bfc2_ref[...]
    x = x + h

    # ---- fused final LayerNorm (last layer only) --------------------------------
    if fuse_final_ln:
        x = _layernorm(x, gf_ref[...], bf_ref[...])

    o_ref[0] = x.astype(o_ref.dtype)


def final_ln_kernel(x_ref, g_ref, b_ref, o_ref):
    # Only used when num_layers == 0 (otherwise the final LN is fused into the
    # last block's kernel).
    x = x_ref[0].astype(jnp.float32)
    o_ref[0] = _layernorm(x, g_ref[...], b_ref[...]).astype(o_ref.dtype)


# ----------------------------------------------------------------------------------
# pallas_call wrappers
# ----------------------------------------------------------------------------------
def _weight_spec(shape):
    # Full (untiled) block, identical for every grid step -> single buffer is enough.
    nd = len(shape)
    index_map = lambda b: (0,) * nd
    if _WEIGHT_PIPELINE_MODE is not None:
        return pl.BlockSpec(shape, index_map, pipeline_mode=_WEIGHT_PIPELINE_MODE)
    return pl.BlockSpec(shape, index_map)


def _block_cost(B, T, D, Hm, num_heads):
    # matmul flops: qkv + attn-scores + PV + proj + fc1 + fc2
    matmul_flops = 2 * T * (3 * D * D + D * D + 2 * D * Hm) + 4 * T * T * D
    flops = B * matmul_flops
    transcendentals = B * (num_heads * T * T + T * Hm)      # softmax exp + GELU erf
    w_bytes = (3 * D * D + D * D + 2 * D * Hm) * 2          # bf16 weights
    misc_bytes = (3 * D + D + Hm + 7 * D) * 4               # biases + LN params (f32)
    bytes_accessed = 2 * B * T * D * 4 + w_bytes + misc_bytes
    return pl.CostEstimate(flops=flops, transcendentals=transcendentals,
                           bytes_accessed=bytes_accessed)


def _run_block(x_btd, params, num_heads, final_ln=None):
    B, T, D = x_btd.shape
    Hm = params["wfc1"].shape[1]
    weight_args = [params["g1"], params["b1"], params["wqkv"], params["bqkv"],
                   params["wproj"], params["bproj"], params["g2"], params["b2"],
                   params["wfc1"], params["bfc1"], params["wfc2"], params["bfc2"]]
    fuse = final_ln is not None
    if fuse:
        weight_args += [final_ln[0], final_ln[1]]

    in_specs = [pl.BlockSpec((1, T, D), lambda b: (b, 0, 0))] + \
               [_weight_spec(w.shape) for w in weight_args]

    return pl.pallas_call(
        functools.partial(block_kernel, num_heads=num_heads, fuse_final_ln=fuse),
        out_shape=jax.ShapeDtypeStruct((B, T, D), x_btd.dtype),
        grid_spec=pltpu.PrefetchScalarGridSpec(
            num_scalar_prefetch=0,
            grid=(B,),
            in_specs=in_specs,
            out_specs=pl.BlockSpec((1, T, D), lambda b: (b, 0, 0)),
        ),
        compiler_params=pltpu.CompilerParams(
            dimension_semantics=("parallel",),
            vmem_limit_bytes=_VMEM_LIMIT,
        ),
        cost_estimate=_block_cost(B, T, D, Hm, num_heads),
        input_output_aliases={0: 0},     # write the layer output in place over its input
    )(x_btd, *weight_args)


def _run_final_ln(x_btd, gamma, beta):
    B, T, D = x_btd.shape
    return pl.pallas_call(
        final_ln_kernel,
        out_shape=jax.ShapeDtypeStruct((B, T, D), x_btd.dtype),
        grid_spec=pltpu.PrefetchScalarGridSpec(
            num_scalar_prefetch=0,
            grid=(B,),
            in_specs=[pl.BlockSpec((1, T, D), lambda b: (b, 0, 0)),
                      _weight_spec(gamma.shape), _weight_spec(beta.shape)],
            out_specs=pl.BlockSpec((1, T, D), lambda b: (b, 0, 0)),
        ),
        compiler_params=pltpu.CompilerParams(
            dimension_semantics=("parallel",),
            vmem_limit_bytes=_VMEM_LIMIT,
        ),
        input_output_aliases={0: 0},
    )(x_btd, gamma, beta)


# ----------------------------------------------------------------------------------
# parameters & public forward
# ----------------------------------------------------------------------------------
def init_params(key, embedding_dims, num_layers, mlp_ratio=2.0):
    """Deterministic synthetic parameters. Linear weights are stored pre-transposed
    ((in, out)) and cast to bf16 for the MXU; biases & LayerNorm params stay f32."""
    D = embedding_dims
    H = int(D * mlp_ratio)
    layers = []
    for _ in range(num_layers):
        key, k1, k2, k3, k4 = jax.random.split(key, 5)
        layers.append({
            "g1": jnp.ones((1, D), jnp.float32),
            "b1": jnp.zeros((1, D), jnp.float32),
            "wqkv": (jax.random.normal(k1, (D, 3 * D), jnp.float32) * 0.02).astype(jnp.bfloat16),
            "bqkv": jnp.zeros((1, 3 * D), jnp.float32),
            "wproj": (jax.random.normal(k2, (D, D), jnp.float32) * 0.02).astype(jnp.bfloat16),
            "bproj": jnp.zeros((1, D), jnp.float32),
            "g2": jnp.ones((1, D), jnp.float32),
            "b2": jnp.zeros((1, D), jnp.float32),
            "wfc1": (jax.random.normal(k3, (D, H), jnp.float32) * 0.02).astype(jnp.bfloat16),
            "bfc1": jnp.zeros((1, H), jnp.float32),
            "wfc2": (jax.random.normal(k4, (H, D), jnp.float32) * 0.02).astype(jnp.bfloat16),
            "bfc2": jnp.zeros((1, D), jnp.float32),
        })
    final = {"gamma": jnp.ones((1, D), jnp.float32),
             "beta": jnp.zeros((1, D), jnp.float32)}
    return layers, final


@functools.partial(jax.jit, static_argnames=("num_heads",))
def dasheng_blocks_forward(x_bdt, layer_params, final_params, *, num_heads):
    """x: (B, D, T) -> (B, D, T), matching DashengBlocks.forward.

    Best perf when T is a multiple of 8 and D a multiple of 128 (pad at the caller
    otherwise); the kernels are still correct for unaligned full-array blocks."""
    x = jnp.transpose(x_bdt, (0, 2, 1))          # (B, T, D) tokens-major, features-last
    n = len(layer_params)
    if n == 0:
        x = _run_final_ln(x, final_params["gamma"], final_params["beta"])
    else:
        for i, p in enumerate(layer_params):
            fin = ((final_params["gamma"], final_params["beta"])
                   if i == n - 1 else None)      # fuse final LN into the last block
            x = _run_block(x, p, num_heads, final_ln=fin)
    return jnp.transpose(x, (0, 2, 1))           # back to (B, D, T)


# ----------------------------------------------------------------------------------
# pure-JAX f32 reference (for sanity check)
# ----------------------------------------------------------------------------------
def _layernorm_ref(x, g, b):
    mu = jnp.mean(x, axis=-1, keepdims=True)
    var = jnp.mean((x - mu) ** 2, axis=-1, keepdims=True)
    return (x - mu) / jnp.sqrt(var + LN_EPS) * g + b


def _ref_forward(x_bdt, layer_params, final_params, num_heads):
    x = jnp.transpose(x_bdt, (0, 2, 1)).astype(jnp.float32)
    B, T, D = x.shape
    hd = D // num_heads
    for p in layer_params:
        xn = _layernorm_ref(x, p["g1"], p["b1"])
        qkv = xn @ p["wqkv"].astype(jnp.float32) + p["bqkv"]
        q, k, v = jnp.split(qkv, 3, axis=-1)
        q = q.reshape(B, T, num_heads, hd).transpose(0, 2, 1, 3)
        k = k.reshape(B, T, num_heads, hd).transpose(0, 2, 1, 3)
        v = v.reshape(B, T, num_heads, hd).transpose(0, 2, 1, 3)
        s = jnp.einsum("bhtd,bhsd->bhts", q, k) * (hd ** -0.5)
        a = jax.nn.softmax(s, axis=-1)
        o = jnp.einsum("bhts,bhsd->bhtd", a, v).transpose(0, 2, 1, 3).reshape(B, T, D)
        x = x + (o @ p["wproj"].astype(jnp.float32) + p["bproj"])
        xn2 = _layernorm_ref(x, p["g2"], p["b2"])
        h = xn2 @ p["wfc1"].astype(jnp.float32) + p["bfc1"]
        h = 0.5 * h * (1.0 + jax.lax.erf(h / jnp.sqrt(2.0)))
        x = x + (h @ p["wfc2"].astype(jnp.float32) + p["bfc2"])
    x = _layernorm_ref(x, final_params["gamma"], final_params["beta"])
    return jnp.transpose(x, (0, 2, 1))


if __name__ == "__main__":
    # Small, module-consistent, TPU-aligned shapes:
    # embedding_dims D=128 (lane-aligned), seq len T=16 (sublane-aligned).
    B, D, T = 2, 128, 16
    NUM_HEADS = 4
    NUM_LAYERS = 2

    key = jax.random.PRNGKey(0)
    kx, kp = jax.random.split(key)
    x = jax.random.normal(kx, (B, D, T), jnp.float32)    # PyTorch-style (B, D, T) input

    layer_params, final_params = init_params(kp, D, NUM_LAYERS)

    out = dasheng_blocks_forward(x, layer_params, final_params, num_heads=NUM_HEADS)
    out = jax.block_until_ready(out)
    assert out.shape == (B, D, T)

    # Kernel uses bf16 MXU operands + approx reciprocal; compare against the pure-f32
    # reference at bf16-level tolerance.
    ref = _ref_forward(x, layer_params, final_params, NUM_HEADS)
    assert jnp.allclose(out, ref, rtol=1e-2, atol=1e-2), "mismatch vs reference"

    print("KERNEL_OK")
</pallas_src>

<mosaic_0001>
module attributes {stable_mosaic.version = 11 : i64} {
  func.func @_copy(%arg0: i32, %arg1: memref<8x128xf32, #tpu.memory_space<vmem>>, %arg2: memref<8x128xf32, #tpu.memory_space<vmem>>) attributes {dimension_semantics = [#tpu.dimension_semantics<arbitrary>], iteration_bounds = array<i64: 1>, scalar_prefetch = 0 : i64, scratch_operands = 0 : i64, tpu.core_type = #tpu.core_type<tc>, window_params = [{pipeline_mode = #tpu.pipeline_mode<synchronous>, transform_indices = @transform_0, window_bounds = array<i64: 8, 128>}, {pipeline_mode = #tpu.pipeline_mode<synchronous>, transform_indices = @transform_1, window_bounds = array<i64: 8, 128>}]} {
    %c0 = arith.constant 0 : index
    %c0_0 = arith.constant 0 : index
    %0 = vector.load %arg1[%c0, %c0_0] : memref<8x128xf32, #tpu.memory_space<vmem>>, vector<8x128xf32>
    %c0_1 = arith.constant 0 : index
    %c0_2 = arith.constant 0 : index
    %1 = vector.load %arg2[%c0_1, %c0_2] : memref<8x128xf32, #tpu.memory_space<vmem>>, vector<8x128xf32>
    tpu.vector_store %arg2[%c0_1, %c0_2], %0 {strides = array<i32>} : memref<8x128xf32, #tpu.memory_space<vmem>>, vector<8x128xf32>,
    return
  }
  func.func @transform_0(%arg0: i32) -> (i32, i32) {
    %c0_i32 = arith.constant 0 : i32
    %c0_i32_0 = arith.constant 0 : i32
    %c0_i32_1 = arith.constant 0 : i32
    return %c0_i32, %c0_i32_0 : i32, i32
  }
  func.func @transform_1(%arg0: i32) -> (i32, i32) {
    %c0_i32 = arith.constant 0 : i32
    %c0_i32_0 = arith.constant 0 : i32
    %c0_i32_1 = arith.constant 0 : i32
    return %c0_i32, %c0_i32_0 : i32, i32
  }
}

module attributes {stable_mosaic.version = 11 : i64} {
  func.func @block_kernel(%arg0: i32, %arg1: memref<1x16x128xf32, #tpu.memory_space<vmem>>, %arg2: memref<1x128xf32, #tpu.memory_space<vmem>>, %arg3: memref<1x128xf32, #tpu.memory_space<vmem>>, %arg4: memref<128x384xbf16, #tpu.memory_space<vmem>>, %arg5: memref<1x384xf32, #tpu.memory_space<vmem>>, %arg6: memref<128x128xbf16, #tpu.memory_space<vmem>>, %arg7: memref<1x128xf32, #tpu.memory_space<vmem>>, %arg8: memref<1x128xf32, #tpu.memory_space<vmem>>, %arg9: memref<1x128xf32, #tpu.memory_space<vmem>>, %arg10: memref<128x256xbf16, #tpu.memory_space<vmem>>, %arg11: memref<1x256xf32, #tpu.memory_space<vmem>>, %arg12: memref<256x128xbf16, #tpu.memory_space<vmem>>, %arg13: memref<1x128xf32, #tpu.memory_space<vmem>>, %arg14: memref<1x128xf32, #tpu.memory_space<vmem>>, %arg15: memref<1x128xf32, #tpu.memory_space<vmem>>, %arg16: memref<1x16x128xf32, #tpu.memory_space<vmem>>) attributes {dimension_semantics = [#tpu.dimension_semantics<parallel>], iteration_bounds = array<i64: 2>, scalar_prefetch = 0 : i64, scratch_operands = 0 : i64, tpu.core_type = #tpu.core_type<tc>, window_params = [{transform_indices = @transform_0, window_bounds = array<i64: 1, 16, 128>}, {pipeline_mode = #tpu.pipeline_mode<synchronous>, transform_indices = @transform_1, window_bounds = array<i64: 1, 128>}, {pipeline_mode = #tpu.pipeline_mode<synchronous>, transform_indices = @transform_2, window_bounds = array<i64: 1, 128>}, {pipeline_mode = #tpu.pipeline_mode<synchronous>, transform_indices = @transform_3, window_bounds = array<i64: 128, 384>}, {pipeline_mode = #tpu.pipeline_mode<synchronous>, transform_indices = @transform_4, window_bounds = array<i64: 1, 384>}, {pipeline_mode = #tpu.pipeline_mode<synchronous>, transform_indices = @transform_5, window_bounds = array<i64: 128, 128>}, {pipeline_mode = #tpu.pipeline_mode<synchronous>, transform_indices = @transform_6, window_bounds = array<i64: 1, 128>}, {pipeline_mode = #tpu.pipeline_mode<synchronous>, transform_indices = @transform_7, window_bounds = array<i64: 1, 128>}, {pipeline_mode = #tpu.pipeline_mode<synchronous>, transform_indices = @transform_8, window_bounds = array<i64: 1, 128>}, {pipeline_mode = #tpu.pipeline_mode<synchronous>, transform_indices = @transform_9, window_bounds = array<i64: 128, 256>}, {pipeline_mode = #tpu.pipeline_mode<synchronous>, transform_indices = @transform_10, window_bounds = array<i64: 1, 256>}, {pipeline_mode = #tpu.pipeline_mode<synchronous>, transform_indices = @transform_11, window_bounds = array<i64: 256, 128>}, {pipeline_mode = #tpu.pipeline_mode<synchronous>, transform_indices = @transform_12, window_bounds = array<i64: 1, 128>}, {pipeline_mode = #tpu.pipeline_mode<synchronous>, transform_indices = @transform_13, window_bounds = array<i64: 1, 128>}, {pipeline_mode = #tpu.pipeline_mode<synchronous>, transform_indices = @transform_14, window_bounds = array<i64: 1, 128>}, {transform_indices = @transform_15, window_bounds = array<i64: 1, 16, 128>}]} {
    %c0 = arith.constant 0 : index
    %c0_0 = arith.constant 0 : index
    %c0_1 = arith.constant 0 : index
    %0 = vector.load %arg1[%c0, %c0_0, %c0_1] : memref<1x16x128xf32, #tpu.memory_space<vmem>>, vector<1x16x128xf32>
    %1 = vector.shape_cast %0 : vector<1x16x128xf32> to vector<16x128xf32>
    %c0_2 = arith.constant 0 : index
    %c0_3 = arith.constant 0 : index
    %2 = vector.load %arg2[%c0_2, %c0_3] : memref<1x128xf32, #tpu.memory_space<vmem>>, vector<1x128xf32>
    %c0_4 = arith.constant 0 : index
    %c0_5 = arith.constant 0 : index
    %3 = vector.load %arg3[%c0_4, %c0_5] : memref<1x128xf32, #tpu.memory_space<vmem>>, vector<1x128xf32>
    %cst = arith.constant dense<0.000000e+00> : vector<16xf32>
    %4 = vector.multi_reduction <add>, %1, %cst [1] : vector<16x128xf32> to vector<16xf32>
    %5 = vector.shape_cast %4 : vector<16xf32> to vector<16x1xf32>
    %cst_6 = arith.constant 1.280000e+02 : f32
    %6 = vector.broadcast %cst_6 : f32 to vector<16x1xf32>
    %7 = arith.divf %5, %6 : vector<16x1xf32>
    %8 = vector.broadcast %7 : vector<16x1xf32> to vector<16x128xf32>
    %9 = arith.subf %1, %8 : vector<16x128xf32>
    %10 = arith.mulf %9, %9 : vector<16x128xf32>
    %cst_7 = arith.constant dense<0.000000e+00> : vector<16xf32>
    %11 = vector.multi_reduction <add>, %10, %cst_7 [1] : vector<16x128xf32> to vector<16xf32>
    %12 = vector.shape_cast %11 : vector<16xf32> to vector<16x1xf32>
    %cst_8 = arith.constant 1.280000e+02 : f32
    %13 = vector.broadcast %cst_8 : f32 to vector<16x1xf32>
    %14 = arith.divf %12, %13 : vector<16x1xf32>
    %15 = vector.broadcast %7 : vector<16x1xf32> to vector<16x128xf32>
    %16 = arith.subf %1, %15 : vector<16x128xf32>
    %cst_9 = arith.constant 9.99999974E-6 : f32
    %17 = vector.broadcast %cst_9 : f32 to vector<16x1xf32>
    %18 = arith.addf %14, %17 : vector<16x1xf32>
    %19 = math.rsqrt %18 : vector<16x1xf32>
    %20 = vector.broadcast %19 : vector<16x1xf32> to vector<16x128xf32>
    %21 = arith.mulf %16, %20 : vector<16x128xf32>
    %22 = vector.broadcast %2 : vector<1x128xf32> to vector<16x128xf32>
    %23 = arith.mulf %21, %22 : vector<16x128xf32>
    %24 = vector.broadcast %3 : vector<1x128xf32> to vector<16x128xf32>
    %25 = arith.addf %23, %24 : vector<16x128xf32>
    %26 = arith.truncf %25 : vector<16x128xf32> to vector<16x128xbf16>
    %c0_10 = arith.constant 0 : index
    %c0_11 = arith.constant 0 : index
    %27 = vector.load %arg4[%c0_10, %c0_11] : memref<128x384xbf16, #tpu.memory_space<vmem>>, vector<128x384xbf16>
    %cst_12 = arith.constant dense<0.000000e+00> : vector<16x384xf32>
    %28 = tpu.matmul %26, %27, %cst_12 {dimension_numbers = #tpu.dot_dimension_numbers<[1], [0], [0], [1], [0, 0, 1, 1], [], []>} : vector<16x128xbf16>, vector<128x384xbf16>, vector<16x384xf32> -> vector<16x384xf32>
    %c0_13 = arith.constant 0 : index
    %c0_14 = arith.constant 0 : index
    %29 = vector.load %arg5[%c0_13, %c0_14] : memref<1x384xf32, #tpu.memory_space<vmem>>, vector<1x384xf32>
    %30 = vector.broadcast %29 : vector<1x384xf32> to vector<16x384xf32>
    %31 = arith.addf %28, %30 : vector<16x384xf32>
    %32 = tpu.transpose %31, [1, 0] : vector<16x384xf32> -> vector<384x16xf32>
    %33 = vector.shape_cast %32 : vector<384x16xf32> to vector<3x4x32x16xf32>
    %34 = vector.extract_strided_slice %33 {offsets = [0, 0, 0, 0], sizes = [1, 4, 32, 16], strides = [1, 1, 1, 1]} : vector<3x4x32x16xf32> to vector<1x4x32x16xf32>
    %35 = vector.shape_cast %34 : vector<1x4x32x16xf32> to vector<4x32x16xf32>
    %cst_15 = arith.constant 0.176776692 : f32
    %36 = vector.broadcast %cst_15 : f32 to vector<4x32x16xf32>
    %37 = arith.mulf %35, %36 : vector<4x32x16xf32>
    %38 = arith.truncf %37 : vector<4x32x16xf32> to vector<4x32x16xbf16>
    %39 = vector.extract_strided_slice %33 {offsets = [1, 0, 0, 0], sizes = [1, 4, 32, 16], strides = [1, 1, 1, 1]} : vector<3x4x32x16xf32> to vector<1x4x32x16xf32>
    %40 = vector.shape_cast %39 : vector<1x4x32x16xf32> to vector<4x32x16xf32>
    %41 = arith.truncf %40 : vector<4x32x16xf32> to vector<4x32x16xbf16>
    %42 = vector.extract_strided_slice %33 {offsets = [2, 0, 0, 0], sizes = [1, 4, 32, 16], strides = [1, 1, 1, 1]} : vector<3x4x32x16xf32> to vector<1x4x32x16xf32>
    %43 = vector.shape_cast %42 : vector<1x4x32x16xf32> to vector<4x32x16xf32>
    %44 = arith.truncf %43 : vector<4x32x16xf32> to vector<4x32x16xbf16>
    %cst_16 = arith.constant dense<0.000000e+00> : vector<4x16x16xf32>
    %45 = tpu.matmul %38, %41, %cst_16 {dimension_numbers = #tpu.dot_dimension_numbers<[1], [1], [2], [2], [0, 0, 0, 2, 1, 2], [0], [0]>} : vector<4x32x16xbf16>, vector<4x32x16xbf16>, vector<4x16x16xf32> -> vector<4x16x16xf32>
    %cst_17 = arith.constant dense<0xFF800000> : vector<4x16xf32>
    %46 = vector.multi_reduction <maximumf>, %45, %cst_17 [2] : vector<4x16x16xf32> to vector<4x16xf32>
    %47 = vector.shape_cast %46 : vector<4x16xf32> to vector<4x16x1xf32>
    %48 = vector.broadcast %47 : vector<4x16x1xf32> to vector<4x16x16xf32>
    %49 = arith.subf %45, %48 : vector<4x16x16xf32>
    %50 = math.exp %49 : vector<4x16x16xf32>
    %cst_18 = arith.constant dense<0.000000e+00> : vector<4x16xf32>
    %51 = vector.multi_reduction <add>, %50, %cst_18 [2] : vector<4x16x16xf32> to vector<4x16xf32>
    %52 = vector.shape_cast %51 : vector<4x16xf32> to vector<4x16x1xf32>
    %53 = tpu.reciprocal %52 {approx = true} : vector<4x16x1xf32> -> vector<4x16x1xf32>
    %54 = vector.broadcast %53 : vector<4x16x1xf32> to vector<4x16x16xf32>
    %55 = arith.mulf %50, %54 : vector<4x16x16xf32>
    %56 = arith.truncf %55 : vector<4x16x16xf32> to vector<4x16x16xbf16>
    %cst_19 = arith.constant dense<0.000000e+00> : vector<4x32x16xf32>
    %57 = tpu.matmul %44, %56, %cst_19 {dimension_numbers = #tpu.dot_dimension_numbers<[2], [2], [1], [1], [0, 0, 0, 1, 1, 1], [0], [0]>} : vector<4x32x16xbf16>, vector<4x16x16xbf16>, vector<4x32x16xf32> -> vector<4x32x16xf32>
    %58 = vector.shape_cast %57 : vector<4x32x16xf32> to vector<128x16xf32>
    %59 = tpu.transpose %58, [1, 0] : vector<128x16xf32> -> vector<16x128xf32>
    %60 = arith.truncf %59 : vector<16x128xf32> to vector<16x128xbf16>
    %c0_20 = arith.constant 0 : index
    %c0_21 = arith.constant 0 : index
    %61 = vector.load %arg6[%c0_20, %c0_21] : memref<128x128xbf16, #tpu.memory_space<vmem>>, vector<128x128xbf16>
    %cst_22 = arith.constant dense<0.000000e+00> : vector<16x128xf32>
    %62 = tpu.matmul %60, %61, %cst_22 {dimension_numbers = #tpu.dot_dimension_numbers<[1], [0], [0], [1], [0, 0, 1, 1], [], []>} : vector<16x128xbf16>, vector<128x128xbf16>, vector<16x128xf32> -> vector<16x128xf32>
    %c0_23 = arith.constant 0 : index
    %c0_24 = arith.constant 0 : index
    %63 = vector.load %arg7[%c0_23, %c0_24] : memref<1x128xf32, #tpu.memory_space<vmem>>, vector<1x128xf32>
    %64 = vector.broadcast %63 : vector<1x128xf32> to vector<16x128xf32>
    %65 = arith.addf %62, %64 : vector<16x128xf32>
    %66 = arith.addf %1, %65 : vector<16x128xf32>
    %c0_25 = arith.constant 0 : index
    %c0_26 = arith.constant 0 : index
    %67 = vector.load %arg8[%c0_25, %c0_26] : memref<1x128xf32, #tpu.memory_space<vmem>>, vector<1x128xf32>
    %c0_27 = arith.constant 0 : index
    %c0_28 = arith.constant 0 : index
    %68 = vector.load %arg9[%c0_27, %c0_28] : memref<1x128xf32, #tpu.memory_space<vmem>>, vector<1x128xf32>
    %cst_29 = arith.constant dense<0.000000e+00> : vector<16xf32>
    %69 = vector.multi_reduction <add>, %66, %cst_29 [1] : vector<16x128xf32> to vector<16xf32>
    %70 = vector.shape_cast %69 : vector<16xf32> to vector<16x1xf32>
    %cst_30 = arith.constant 1.280000e+02 : f32
    %71 = vector.broadcast %cst_30 : f32 to vector<16x1xf32>
    %72 = arith.divf %70, %71 : vector<16x1xf32>
    %73 = vector.broadcast %72 : vector<16x1xf32> to vector<16x128xf32>
    %74 = arith.subf %66, %73 : vector<16x128xf32>
    %75 = arith.mulf %74, %74 : vector<16x128xf32>
    %cst_31 = arith.constant dense<0.000000e+00> : vector<16xf32>
    %76 = vector.multi_reduction <add>, %75, %cst_31 [1] : vector<16x128xf32> to vector<16xf32>
    %77 = vector.shape_cast %76 : vector<16xf32> to vector<16x1xf32>
    %cst_32 = arith.constant 1.280000e+02 : f32
    %78 = vector.broadcast %cst_32 : f32 to vector<16x1xf32>
    %79 = arith.divf %77, %78 : vector<16x1xf32>
    %80 = vector.broadcast %72 : vector<16x1xf32> to vector<16x128xf32>
    %81 = arith.subf %66, %80 : vector<16x128xf32>
    %cst_33 = arith.constant 9.99999974E-6 : f32
    %82 = vector.broadcast %cst_33 : f32 to vector<16x1xf32>
    %83 = arith.addf %79, %82 : vector<16x1xf32>
    %84 = math.rsqrt %83 : vector<16x1xf32>
    %85 = vector.broadcast %84 : vector<16x1xf32> to vector<16x128xf32>
    %86 = arith.mulf %81, %85 : vector<16x128xf32>
    %87 = vector.broadcast %67 : vector<1x128xf32> to vector<16x128xf32>
    %88 = arith.mulf %86, %87 : vector<16x128xf32>
    %89 = vector.broadcast %68 : vector<1x128xf32> to vector<16x128xf32>
    %90 = arith.addf %88, %89 : vector<16x128xf32>
    %91 = arith.truncf %90 : vector<16x128xf32> to vector<16x128xbf16>
    %c0_34 = arith.constant 0 : index
    %c0_35 = arith.constant 0 : index
    %92 = vector.load %arg10[%c0_34, %c0_35] : memref<128x256xbf16, #tpu.memory_space<vmem>>, vector<128x256xbf16>
    %cst_36 = arith.constant dense<0.000000e+00> : vector<16x256xf32>
    %93 = tpu.matmul %91, %92, %cst_36 {dimension_numbers = #tpu.dot_dimension_numbers<[1], [0], [0], [1], [0, 0, 1, 1], [], []>} : vector<16x128xbf16>, vector<128x256xbf16>, vector<16x256xf32> -> vector<16x256xf32>
    %c0_37 = arith.constant 0 : index
    %c0_38 = arith.constant 0 : index
    %94 = vector.load %arg11[%c0_37, %c0_38] : memref<1x256xf32, #tpu.memory_space<vmem>>, vector<1x256xf32>
    %95 = vector.broadcast %94 : vector<1x256xf32> to vector<16x256xf32>
    %96 = arith.addf %93, %95 : vector<16x256xf32>
    %cst_39 = arith.constant 5.000000e-01 : f32
    %97 = vector.broadcast %cst_39 : f32 to vector<16x256xf32>
    %98 = arith.mulf %97, %96 : vector<16x256xf32>
    %cst_40 = arith.constant 0.707106769 : f32
    %99 = vector.broadcast %cst_40 : f32 to vector<16x256xf32>
    %100 = arith.mulf %96, %99 : vector<16x256xf32>
    %101 = math.erf %100 : vector<16x256xf32>
    %cst_41 = arith.constant 1.000000e+00 : f32
    %102 = vector.broadcast %cst_41 : f32 to vector<16x256xf32>
    %103 = arith.addf %102, %101 : vector<16x256xf32>
    %104 = arith.mulf %98, %103 : vector<16x256xf32>
    %105 = arith.truncf %104 : vector<16x256xf32> to vector<16x256xbf16>
    %c0_42 = arith.constant 0 : index
    %c0_43 = arith.constant 0 : index
    %106 = vector.load %arg12[%c0_42, %c0_43] : memref<256x128xbf16, #tpu.memory_space<vmem>>, vector<256x128xbf16>
    %cst_44 = arith.constant dense<0.000000e+00> : vector<16x128xf32>
    %107 = tpu.matmul %105, %106, %cst_44 {dimension_numbers = #tpu.dot_dimension_numbers<[1], [0], [0], [1], [0, 0, 1, 1], [], []>} : vector<16x256xbf16>, vector<256x128xbf16>, vector<16x128xf32> -> vector<16x128xf32>
    %c0_45 = arith.constant 0 : index
    %c0_46 = arith.constant 0 : index
    %108 = vector.load %arg13[%c0_45, %c0_46] : memref<1x128xf32, #tpu.memory_space<vmem>>, vector<1x128xf32>
    %109 = vector.broadcast %108 : vector<1x128xf32> to vector<16x128xf32>
    %110 = arith.addf %107, %109 : vector<16x128xf32>
    %111 = arith.addf %66, %110 : vector<16x128xf32>
    %c0_47 = arith.constant 0 : index
    %c0_48 = arith.constant 0 : index
    %112 = vector.load %arg14[%c0_47, %c0_48] : memref<1x128xf32, #tpu.memory_space<vmem>>, vector<1x128xf32>
    %c0_49 = arith.constant 0 : index
    %c0_50 = arith.constant 0 : index
    %113 = vector.load %arg15[%c0_49, %c0_50] : memref<1x128xf32, #tpu.memory_space<vmem>>, vector<1x128xf32>
    %cst_51 = arith.constant dense<0.000000e+00> : vector<16xf32>
    %114 = vector.multi_reduction <add>, %111, %cst_51 [1] : vector<16x128xf32> to vector<16xf32>
    %115 = vector.shape_cast %114 : vector<16xf32> to vector<16x1xf32>
    %cst_52 = arith.constant 1.280000e+02 : f32
    %116 = vector.broadcast %cst_52 : f32 to vector<16x1xf32>
    %117 = arith.divf %115, %116 : vector<16x1xf32>
    %118 = vector.broadcast %117 : vector<16x1xf32> to vector<16x128xf32>
    %119 = arith.subf %111, %118 : vector<16x128xf32>
    %120 = arith.mulf %119, %119 : vector<16x128xf32>
    %cst_53 = arith.constant dense<0.000000e+00> : vector<16xf32>
    %121 = vector.multi_reduction <add>, %120, %cst_53 [1] : vector<16x128xf32> to vector<16xf32>
    %122 = vector.shape_cast %121 : vector<16xf32> to vector<16x1xf32>
    %cst_54 = arith.constant 1.280000e+02 : f32
    %123 = vector.broadcast %cst_54 : f32 to vector<16x1xf32>
    %124 = arith.divf %122, %123 : vector<16x1xf32>
    %125 = vector.broadcast %117 : vector<16x1xf32> to vector<16x128xf32>
    %126 = arith.subf %111, %125 : vector<16x128xf32>
    %cst_55 = arith.constant 9.99999974E-6 : f32
    %127 = vector.broadcast %cst_55 : f32 to vector<16x1xf32>
    %128 = arith.addf %124, %127 : vector<16x1xf32>
    %129 = math.rsqrt %128 : vector<16x1xf32>
    %130 = vector.broadcast %129 : vector<16x1xf32> to vector<16x128xf32>
    %131 = arith.mulf %126, %130 : vector<16x128xf32>
    %132 = vector.broadcast %112 : vector<1x128xf32> to vector<16x128xf32>
    %133 = arith.mulf %131, %132 : vector<16x128xf32>
    %134 = vector.broadcast %113 : vector<1x128xf32> to vector<16x128xf32>
    %135 = arith.addf %133, %134 : vector<16x128xf32>
    %c0_56 = arith.constant 0 : index
    %c0_57 = arith.constant 0 : index
    %c0_58 = arith.constant 0 : index
    %136 = vector.load %arg16[%c0_56, %c0_57, %c0_58] : memref<1x16x128xf32, #tpu.memory_space<vmem>>, vector<1x16x128xf32>
    %137 = vector.shape_cast %136 : vector<1x16x128xf32> to vector<16x128xf32>
    %138 = vector.shape_cast %135 : vector<16x128xf32> to vector<1x16x128xf32>
    tpu.vector_store %arg16[%c0_56, %c0_57, %c0_58], %138 {strides = array<i32>} : memref<1x16x128xf32, #tpu.memory_space<vmem>>, vector<1x16x128xf32>,
    return
  }
  func.func @transform_0(%arg0: i32) -> (i32, i32, i32) {
    %c0_i32 = arith.constant 0 : i32
    %c0_i32_0 = arith.constant 0 : i32
    %c0_i32_1 = arith.constant 0 : i32
    return %arg0, %c0_i32, %c0_i32_0 : i32, i32, i32
  }
  func.func @transform_1(%arg0: i32) -> (i32, i32) {
    %c0_i32 = arith.constant 0 : i32
    %c0_i32_0 = arith.constant 0 : i32
    %c0_i32_1 = arith.constant 0 : i32
    return %c0_i32, %c0_i32_0 : i32, i32
  }
  func.func @transform_2(%arg0: i32) -> (i32, i32) {
    %c0_i32 = arith.constant 0 : i32
    %c0_i32_0 = arith.constant 0 : i32
    %c0_i32_1 = arith.constant 0 : i32
    return %c0_i32, %c0_i32_0 : i32, i32
  }
  func.func @transform_3(%arg0: i32) -> (i32, i32) {
    %c0_i32 = arith.constant 0 : i32
    %c0_i32_0 = arith.constant 0 : i32
    %c0_i32_1 = arith.constant 0 : i32
    return %c0_i32, %c0_i32_0 : i32, i32
  }
  func.func @transform_4(%arg0: i32) -> (i32, i32) {
    %c0_i32 = arith.constant 0 : i32
    %c0_i32_0 = arith.constant 0 : i32
    %c0_i32_1 = arith.constant 0 : i32
    return %c0_i32, %c0_i32_0 : i32, i32
  }
  func.func @transform_5(%arg0: i32) -> (i32, i32) {
    %c0_i32 = arith.constant 0 : i32
    %c0_i32_0 = arith.constant 0 : i32
    %c0_i32_1 = arith.constant 0 : i32
    return %c0_i32, %c0_i32_0 : i32, i32
  }
  func.func @transform_6(%arg0: i32) -> (i32, i32) {
    %c0_i32 = arith.constant 0 : i32
    %c0_i32_0 = arith.constant 0 : i32
    %c0_i32_1 = arith.constant 0 : i32
    return %c0_i32, %c0_i32_0 : i32, i32
  }
  func.func @transform_7(%arg0: i32) -> (i32, i32) {
    %c0_i32 = arith.constant 0 : i32
    %c0_i32_0 = arith.constant 0 : i32
    %c0_i32_1 = arith.constant 0 : i32
    return %c0_i32, %c0_i32_0 : i32, i32
  }
  func.func @transform_8(%arg0: i32) -> (i32, i32) {
    %c0_i32 = arith.constant 0 : i32
    %c0_i32_0 = arith.constant 0 : i32
    %c0_i32_1 = arith.constant 0 : i32
    return %c0_i32, %c0_i32_0 : i32, i32
  }
  func.func @transform_9(%arg0: i32) -> (i32, i32) {
    %c0_i32 = arith.constant 0 : i32
    %c0_i32_0 = arith.constant 0 : i32
    %c0_i32_1 = arith.constant 0 : i32
    return %c0_i32, %c0_i32_0 : i32, i32
  }
  func.func @transform_10(%arg0: i32) -> (i32, i32) {
    %c0_i32 = arith.constant 0 : i32
    %c0_i32_0 = arith.constant 0 : i32
    %c0_i32_1 = arith.constant 0 : i32
    return %c0_i32, %c0_i32_0 : i32, i32
  }
  func.func @transform_11(%arg0: i32) -> (i32, i32) {
    %c0_i32 = arith.constant 0 : i32
    %c0_i32_0 = arith.constant 0 : i32
    %c0_i32_1 = arith.constant 0 : i32
    return %c0_i32, %c0_i32_0 : i32, i32
  }
  func.func @transform_12(%arg0: i32) -> (i32, i32) {
    %c0_i32 = arith.constant 0 : i32
    %c0_i32_0 = arith.constant 0 : i32
    %c0_i32_1 = arith.constant 0 : i32
    return %c0_i32, %c0_i32_0 : i32, i32
  }
  func.func @transform_13(%arg0: i32) -> (i32, i32) {
    %c0_i32 = arith.constant 0 : i32
    %c0_i32_0 = arith.constant 0 : i32
    %c0_i32_1 = arith.constant 0 : i32
    return %c0_i32, %c0_i32_0 : i32, i32
  }
  func.func @transform_14(%arg0: i32) -> (i32, i32) {
    %c0_i32 = arith.constant 0 : i32
    %c0_i32_0 = arith.constant 0 : i32
    %c0_i32_1 = arith.constant 0 : i32
    return %c0_i32, %c0_i32_0 : i32, i32
  }
  func.func @transform_15(%arg0: i32) -> (i32, i32, i32) {
    %c0_i32 = arith.constant 0 : i32
    %c0_i32_0 = arith.constant 0 : i32
    %c0_i32_1 = arith.constant 0 : i32
    return %arg0, %c0_i32, %c0_i32_0 : i32, i32, i32
  }
}

module attributes {stable_mosaic.version = 11 : i64} {
  func.func @block_kernel(%arg0: i32, %arg1: memref<1x16x128xf32, #tpu.memory_space<vmem>>, %arg2: memref<1x128xf32, #tpu.memory_space<vmem>>, %arg3: memref<1x128xf32, #tpu.memory_space<vmem>>, %arg4: memref<128x384xbf16, #tpu.memory_space<vmem>>, %arg5: memref<1x384xf32, #tpu.memory_space<vmem>>, %arg6: memref<128x128xbf16, #tpu.memory_space<vmem>>, %arg7: memref<1x128xf32, #tpu.memory_space<vmem>>, %arg8: memref<1x128xf32, #tpu.memory_space<vmem>>, %arg9: memref<1x128xf32, #tpu.memory_space<vmem>>, %arg10: memref<128x256xbf16, #tpu.memory_space<vmem>>, %arg11: memref<1x256xf32, #tpu.memory_space<vmem>>, %arg12: memref<256x128xbf16, #tpu.memory_space<vmem>>, %arg13: memref<1x128xf32, #tpu.memory_space<vmem>>, %arg14: memref<1x16x128xf32, #tpu.memory_space<vmem>>) attributes {dimension_semantics = [#tpu.dimension_semantics<parallel>], iteration_bounds = array<i64: 2>, scalar_prefetch = 0 : i64, scratch_operands = 0 : i64, tpu.core_type = #tpu.core_type<tc>, window_params = [{transform_indices = @transform_0, window_bounds = array<i64: 1, 16, 128>}, {pipeline_mode = #tpu.pipeline_mode<synchronous>, transform_indices = @transform_1, window_bounds = array<i64: 1, 128>}, {pipeline_mode = #tpu.pipeline_mode<synchronous>, transform_indices = @transform_2, window_bounds = array<i64: 1, 128>}, {pipeline_mode = #tpu.pipeline_mode<synchronous>, transform_indices = @transform_3, window_bounds = array<i64: 128, 384>}, {pipeline_mode = #tpu.pipeline_mode<synchronous>, transform_indices = @transform_4, window_bounds = array<i64: 1, 384>}, {pipeline_mode = #tpu.pipeline_mode<synchronous>, transform_indices = @transform_5, window_bounds = array<i64: 128, 128>}, {pipeline_mode = #tpu.pipeline_mode<synchronous>, transform_indices = @transform_6, window_bounds = array<i64: 1, 128>}, {pipeline_mode = #tpu.pipeline_mode<synchronous>, transform_indices = @transform_7, window_bounds = array<i64: 1, 128>}, {pipeline_mode = #tpu.pipeline_mode<synchronous>, transform_indices = @transform_8, window_bounds = array<i64: 1, 128>}, {pipeline_mode = #tpu.pipeline_mode<synchronous>, transform_indices = @transform_9, window_bounds = array<i64: 128, 256>}, {pipeline_mode = #tpu.pipeline_mode<synchronous>, transform_indices = @transform_10, window_bounds = array<i64: 1, 256>}, {pipeline_mode = #tpu.pipeline_mode<synchronous>, transform_indices = @transform_11, window_bounds = array<i64: 256, 128>}, {pipeline_mode = #tpu.pipeline_mode<synchronous>, transform_indices = @transform_12, window_bounds = array<i64: 1, 128>}, {transform_indices = @transform_13, window_bounds = array<i64: 1, 16, 128>}]} {
    %c0 = arith.constant 0 : index
    %c0_0 = arith.constant 0 : index
    %c0_1 = arith.constant 0 : index
    %0 = vector.load %arg1[%c0, %c0_0, %c0_1] : memref<1x16x128xf32, #tpu.memory_space<vmem>>, vector<1x16x128xf32>
    %1 = vector.shape_cast %0 : vector<1x16x128xf32> to vector<16x128xf32>
    %c0_2 = arith.constant 0 : index
    %c0_3 = arith.constant 0 : index
    %2 = vector.load %arg2[%c0_2, %c0_3] : memref<1x128xf32, #tpu.memory_space<vmem>>, vector<1x128xf32>
    %c0_4 = arith.constant 0 : index
    %c0_5 = arith.constant 0 : index
    %3 = vector.load %arg3[%c0_4, %c0_5] : memref<1x128xf32, #tpu.memory_space<vmem>>, vector<1x128xf32>
    %cst = arith.constant dense<0.000000e+00> : vector<16xf32>
    %4 = vector.multi_reduction <add>, %1, %cst [1] : vector<16x128xf32> to vector<16xf32>
    %5 = vector.shape_cast %4 : vector<16xf32> to vector<16x1xf32>
    %cst_6 = arith.constant 1.280000e+02 : f32
    %6 = vector.broadcast %cst_6 : f32 to vector<16x1xf32>
    %7 = arith.divf %5, %6 : vector<16x1xf32>
    %8 = vector.broadcast %7 : vector<16x1xf32> to vector<16x128xf32>
    %9 = arith.subf %1, %8 : vector<16x128xf32>
    %10 = arith.mulf %9, %9 : vector<16x128xf32>
    %cst_7 = arith.constant dense<0.000000e+00> : vector<16xf32>
    %11 = vector.multi_reduction <add>, %10, %cst_7 [1] : vector<16x128xf32> to vector<16xf32>
    %12 = vector.shape_cast %11 : vector<16xf32> to vector<16x1xf32>
    %cst_8 = arith.constant 1.280000e+02 : f32
    %13 = vector.broadcast %cst_8 : f32 to vector<16x1xf32>
    %14 = arith.divf %12, %13 : vector<16x1xf32>
    %15 = vector.broadcast %7 : vector<16x1xf32> to vector<16x128xf32>
    %16 = arith.subf %1, %15 : vector<16x128xf32>
    %cst_9 = arith.constant 9.99999974E-6 : f32
    %17 = vector.broadcast %cst_9 : f32 to vector<16x1xf32>
    %18 = arith.addf %14, %17 : vector<16x1xf32>
    %19 = math.rsqrt %18 : vector<16x1xf32>
    %20 = vector.broadcast %19 : vector<16x1xf32> to vector<16x128xf32>
    %21 = arith.mulf %16, %20 : vector<16x128xf32>
    %22 = vector.broadcast %2 : vector<1x128xf32> to vector<16x128xf32>
    %23 = arith.mulf %21, %22 : vector<16x128xf32>
    %24 = vector.broadcast %3 : vector<1x128xf32> to vector<16x128xf32>
    %25 = arith.addf %23, %24 : vector<16x128xf32>
    %26 = arith.truncf %25 : vector<16x128xf32> to vector<16x128xbf16>
    %c0_10 = arith.constant 0 : index
    %c0_11 = arith.constant 0 : index
    %27 = vector.load %arg4[%c0_10, %c0_11] : memref<128x384xbf16, #tpu.memory_space<vmem>>, vector<128x384xbf16>
    %cst_12 = arith.constant dense<0.000000e+00> : vector<16x384xf32>
    %28 = tpu.matmul %26, %27, %cst_12 {dimension_numbers = #tpu.dot_dimension_numbers<[1], [0], [0], [1], [0, 0, 1, 1], [], []>} : vector<16x128xbf16>, vector<128x384xbf16>, vector<16x384xf32> -> vector<16x384xf32>
    %c0_13 = arith.constant 0 : index
    %c0_14 = arith.constant 0 : index
    %29 = vector.load %arg5[%c0_13, %c0_14] : memref<1x384xf32, #tpu.memory_space<vmem>>, vector<1x384xf32>
    %30 = vector.broadcast %29 : vector<1x384xf32> to vector<16x384xf32>
    %31 = arith.addf %28, %30 : vector<16x384xf32>
    %32 = tpu.transpose %31, [1, 0] : vector<16x384xf32> -> vector<384x16xf32>
    %33 = vector.shape_cast %32 : vector<384x16xf32> to vector<3x4x32x16xf32>
    %34 = vector.extract_strided_slice %33 {offsets = [0, 0, 0, 0], sizes = [1, 4, 32, 16], strides = [1, 1, 1, 1]} : vector<3x4x32x16xf32> to vector<1x4x32x16xf32>
    %35 = vector.shape_cast %34 : vector<1x4x32x16xf32> to vector<4x32x16xf32>
    %cst_15 = arith.constant 0.176776692 : f32
    %36 = vector.broadcast %cst_15 : f32 to vector<4x32x16xf32>
    %37 = arith.mulf %35, %36 : vector<4x32x16xf32>
    %38 = arith.truncf %37 : vector<4x32x16xf32> to vector<4x32x16xbf16>
    %39 = vector.extract_strided_slice %33 {offsets = [1, 0, 0, 0], sizes = [1, 4, 32, 16], strides = [1, 1, 1, 1]} : vector<3x4x32x16xf32> to vector<1x4x32x16xf32>
    %40 = vector.shape_cast %39 : vector<1x4x32x16xf32> to vector<4x32x16xf32>
    %41 = arith.truncf %40 : vector<4x32x16xf32> to vector<4x32x16xbf16>
    %42 = vector.extract_strided_slice %33 {offsets = [2, 0, 0, 0], sizes = [1, 4, 32, 16], strides = [1, 1, 1, 1]} : vector<3x4x32x16xf32> to vector<1x4x32x16xf32>
    %43 = vector.shape_cast %42 : vector<1x4x32x16xf32> to vector<4x32x16xf32>
    %44 = arith.truncf %43 : vector<4x32x16xf32> to vector<4x32x16xbf16>
    %cst_16 = arith.constant dense<0.000000e+00> : vector<4x16x16xf32>
    %45 = tpu.matmul %38, %41, %cst_16 {dimension_numbers = #tpu.dot_dimension_numbers<[1], [1], [2], [2], [0, 0, 0, 2, 1, 2], [0], [0]>} : vector<4x32x16xbf16>, vector<4x32x16xbf16>, vector<4x16x16xf32> -> vector<4x16x16xf32>
    %cst_17 = arith.constant dense<0xFF800000> : vector<4x16xf32>
    %46 = vector.multi_reduction <maximumf>, %45, %cst_17 [2] : vector<4x16x16xf32> to vector<4x16xf32>
    %47 = vector.shape_cast %46 : vector<4x16xf32> to vector<4x16x1xf32>
    %48 = vector.broadcast %47 : vector<4x16x1xf32> to vector<4x16x16xf32>
    %49 = arith.subf %45, %48 : vector<4x16x16xf32>
    %50 = math.exp %49 : vector<4x16x16xf32>
    %cst_18 = arith.constant dense<0.000000e+00> : vector<4x16xf32>
    %51 = vector.multi_reduction <add>, %50, %cst_18 [2] : vector<4x16x16xf32> to vector<4x16xf32>
    %52 = vector.shape_cast %51 : vector<4x16xf32> to vector<4x16x1xf32>
    %53 = tpu.reciprocal %52 {approx = true} : vector<4x16x1xf32> -> vector<4x16x1xf32>
    %54 = vector.broadcast %53 : vector<4x16x1xf32> to vector<4x16x16xf32>
    %55 = arith.mulf %50, %54 : vector<4x16x16xf32>
    %56 = arith.truncf %55 : vector<4x16x16xf32> to vector<4x16x16xbf16>
    %cst_19 = arith.constant dense<0.000000e+00> : vector<4x32x16xf32>
    %57 = tpu.matmul %44, %56, %cst_19 {dimension_numbers = #tpu.dot_dimension_numbers<[2], [2], [1], [1], [0, 0, 0, 1, 1, 1], [0], [0]>} : vector<4x32x16xbf16>, vector<4x16x16xbf16>, vector<4x32x16xf32> -> vector<4x32x16xf32>
    %58 = vector.shape_cast %57 : vector<4x32x16xf32> to vector<128x16xf32>
    %59 = tpu.transpose %58, [1, 0] : vector<128x16xf32> -> vector<16x128xf32>
    %60 = arith.truncf %59 : vector<16x128xf32> to vector<16x128xbf16>
    %c0_20 = arith.constant 0 : index
    %c0_21 = arith.constant 0 : index
    %61 = vector.load %arg6[%c0_20, %c0_21] : memref<128x128xbf16, #tpu.memory_space<vmem>>, vector<128x128xbf16>
    %cst_22 = arith.constant dense<0.000000e+00> : vector<16x128xf32>
    %62 = tpu.matmul %60, %61, %cst_22 {dimension_numbers = #tpu.dot_dimension_numbers<[1], [0], [0], [1], [0, 0, 1, 1], [], []>} : vector<16x128xbf16>, vector<128x128xbf16>, vector<16x128xf32> -> vector<16x128xf32>
    %c0_23 = arith.constant 0 : index
    %c0_24 = arith.constant 0 : index
    %63 = vector.load %arg7[%c0_23, %c0_24] : memref<1x128xf32, #tpu.memory_space<vmem>>, vector<1x128xf32>
    %64 = vector.broadcast %63 : vector<1x128xf32> to vector<16x128xf32>
    %65 = arith.addf %62, %64 : vector<16x128xf32>
    %66 = arith.addf %1, %65 : vector<16x128xf32>
    %c0_25 = arith.constant 0 : index
    %c0_26 = arith.constant 0 : index
    %67 = vector.load %arg8[%c0_25, %c0_26] : memref<1x128xf32, #tpu.memory_space<vmem>>, vector<1x128xf32>
    %c0_27 = arith.constant 0 : index
    %c0_28 = arith.constant 0 : index
    %68 = vector.load %arg9[%c0_27, %c0_28] : memref<1x128xf32, #tpu.memory_space<vmem>>, vector<1x128xf32>
    %cst_29 = arith.constant dense<0.000000e+00> : vector<16xf32>
    %69 = vector.multi_reduction <add>, %66, %cst_29 [1] : vector<16x128xf32> to vector<16xf32>
    %70 = vector.shape_cast %69 : vector<16xf32> to vector<16x1xf32>
    %cst_30 = arith.constant 1.280000e+02 : f32
    %71 = vector.broadcast %cst_30 : f32 to vector<16x1xf32>
    %72 = arith.divf %70, %71 : vector<16x1xf32>
    %73 = vector.broadcast %72 : vector<16x1xf32> to vector<16x128xf32>
    %74 = arith.subf %66, %73 : vector<16x128xf32>
    %75 = arith.mulf %74, %74 : vector<16x128xf32>
    %cst_31 = arith.constant dense<0.000000e+00> : vector<16xf32>
    %76 = vector.multi_reduction <add>, %75, %cst_31 [1] : vector<16x128xf32> to vector<16xf32>
    %77 = vector.shape_cast %76 : vector<16xf32> to vector<16x1xf32>
    %cst_32 = arith.constant 1.280000e+02 : f32
    %78 = vector.broadcast %cst_32 : f32 to vector<16x1xf32>
    %79 = arith.divf %77, %78 : vector<16x1xf32>
    %80 = vector.broadcast %72 : vector<16x1xf32> to vector<16x128xf32>
    %81 = arith.subf %66, %80 : vector<16x128xf32>
    %cst_33 = arith.constant 9.99999974E-6 : f32
    %82 = vector.broadcast %cst_33 : f32 to vector<16x1xf32>
    %83 = arith.addf %79, %82 : vector<16x1xf32>
    %84 = math.rsqrt %83 : vector<16x1xf32>
    %85 = vector.broadcast %84 : vector<16x1xf32> to vector<16x128xf32>
    %86 = arith.mulf %81, %85 : vector<16x128xf32>
    %87 = vector.broadcast %67 : vector<1x128xf32> to vector<16x128xf32>
    %88 = arith.mulf %86, %87 : vector<16x128xf32>
    %89 = vector.broadcast %68 : vector<1x128xf32> to vector<16x128xf32>
    %90 = arith.addf %88, %89 : vector<16x128xf32>
    %91 = arith.truncf %90 : vector<16x128xf32> to vector<16x128xbf16>
    %c0_34 = arith.constant 0 : index
    %c0_35 = arith.constant 0 : index
    %92 = vector.load %arg10[%c0_34, %c0_35] : memref<128x256xbf16, #tpu.memory_space<vmem>>, vector<128x256xbf16>
    %cst_36 = arith.constant dense<0.000000e+00> : vector<16x256xf32>
    %93 = tpu.matmul %91, %92, %cst_36 {dimension_numbers = #tpu.dot_dimension_numbers<[1], [0], [0], [1], [0, 0, 1, 1], [], []>} : vector<16x128xbf16>, vector<128x256xbf16>, vector<16x256xf32> -> vector<16x256xf32>
    %c0_37 = arith.constant 0 : index
    %c0_38 = arith.constant 0 : index
    %94 = vector.load %arg11[%c0_37, %c0_38] : memref<1x256xf32, #tpu.memory_space<vmem>>, vector<1x256xf32>
    %95 = vector.broadcast %94 : vector<1x256xf32> to vector<16x256xf32>
    %96 = arith.addf %93, %95 : vector<16x256xf32>
    %cst_39 = arith.constant 5.000000e-01 : f32
    %97 = vector.broadcast %cst_39 : f32 to vector<16x256xf32>
    %98 = arith.mulf %97, %96 : vector<16x256xf32>
    %cst_40 = arith.constant 0.707106769 : f32
    %99 = vector.broadcast %cst_40 : f32 to vector<16x256xf32>
    %100 = arith.mulf %96, %99 : vector<16x256xf32>
    %101 = math.erf %100 : vector<16x256xf32>
    %cst_41 = arith.constant 1.000000e+00 : f32
    %102 = vector.broadcast %cst_41 : f32 to vector<16x256xf32>
    %103 = arith.addf %102, %101 : vector<16x256xf32>
    %104 = arith.mulf %98, %103 : vector<16x256xf32>
    %105 = arith.truncf %104 : vector<16x256xf32> to vector<16x256xbf16>
    %c0_42 = arith.constant 0 : index
    %c0_43 = arith.constant 0 : index
    %106 = vector.load %arg12[%c0_42, %c0_43] : memref<256x128xbf16, #tpu.memory_space<vmem>>, vector<256x128xbf16>
    %cst_44 = arith.constant dense<0.000000e+00> : vector<16x128xf32>
    %107 = tpu.matmul %105, %106, %cst_44 {dimension_numbers = #tpu.dot_dimension_numbers<[1], [0], [0], [1], [0, 0, 1, 1], [], []>} : vector<16x256xbf16>, vector<256x128xbf16>, vector<16x128xf32> -> vector<16x128xf32>
    %c0_45 = arith.constant 0 : index
    %c0_46 = arith.constant 0 : index
    %108 = vector.load %arg13[%c0_45, %c0_46] : memref<1x128xf32, #tpu.memory_space<vmem>>, vector<1x128xf32>
    %109 = vector.broadcast %108 : vector<1x128xf32> to vector<16x128xf32>
    %110 = arith.addf %107, %109 : vector<16x128xf32>
    %111 = arith.addf %66, %110 : vector<16x128xf32>
    %c0_47 = arith.constant 0 : index
    %c0_48 = arith.constant 0 : index
    %c0_49 = arith.constant 0 : index
    %112 = vector.load %arg14[%c0_47, %c0_48, %c0_49] : memref<1x16x128xf32, #tpu.memory_space<vmem>>, vector<1x16x128xf32>
    %113 = vector.shape_cast %112 : vector<1x16x128xf32> to vector<16x128xf32>
    %114 = vector.shape_cast %111 : vector<16x128xf32> to vector<1x16x128xf32>
    tpu.vector_store %arg14[%c0_47, %c0_48, %c0_49], %114 {strides = array<i32>} : memref<1x16x128xf32, #tpu.memory_space<vmem>>, vector<1x16x128xf32>,
    return
  }
  func.func @transform_0(%arg0: i32) -> (i32, i32, i32) {
    %c0_i32 = arith.constant 0 : i32
    %c0_i32_0 = arith.constant 0 : i32
    %c0_i32_1 = arith.constant 0 : i32
    return %arg0, %c0_i32, %c0_i32_0 : i32, i32, i32
  }
  func.func @transform_1(%arg0: i32) -> (i32, i32) {
    %c0_i32 = arith.constant 0 : i32
    %c0_i32_0 = arith.constant 0 : i32
    %c0_i32_1 = arith.constant 0 : i32
    return %c0_i32, %c0_i32_0 : i32, i32
  }
  func.func @transform_2(%arg0: i32) -> (i32, i32) {
    %c0_i32 = arith.constant 0 : i32
    %c0_i32_0 = arith.constant 0 : i32
    %c0_i32_1 = arith.constant 0 : i32
    return %c0_i32, %c0_i32_0 : i32, i32
  }
  func.func @transform_3(%arg0: i32) -> (i32, i32) {
    %c0_i32 = arith.constant 0 : i32
    %c0_i32_0 = arith.constant 0 : i32
    %c0_i32_1 = arith.constant 0 : i32
    return %c0_i32, %c0_i32_0 : i32, i32
  }
  func.func @transform_4(%arg0: i32) -> (i32, i32) {
    %c0_i32 = arith.constant 0 : i32
    %c0_i32_0 = arith.constant 0 : i32
    %c0_i32_1 = arith.constant 0 : i32
    return %c0_i32, %c0_i32_0 : i32, i32
  }
  func.func @transform_5(%arg0: i32) -> (i32, i32) {
    %c0_i32 = arith.constant 0 : i32
    %c0_i32_0 = arith.constant 0 : i32
    %c0_i32_1 = arith.constant 0 : i32
    return %c0_i32, %c0_i32_0 : i32, i32
  }
  func.func @transform_6(%arg0: i32) -> (i32, i32) {
    %c0_i32 = arith.constant 0 : i32
    %c0_i32_0 = arith.constant 0 : i32
    %c0_i32_1 = arith.constant 0 : i32
    return %c0_i32, %c0_i32_0 : i32, i32
  }
  func.func @transform_7(%arg0: i32) -> (i32, i32) {
    %c0_i32 = arith.constant 0 : i32
    %c0_i32_0 = arith.constant 0 : i32
    %c0_i32_1 = arith.constant 0 : i32
    return %c0_i32, %c0_i32_0 : i32, i32
  }
  func.func @transform_8(%arg0: i32) -> (i32, i32) {
    %c0_i32 = arith.constant 0 : i32
    %c0_i32_0 = arith.constant 0 : i32
    %c0_i32_1 = arith.constant 0 : i32
    return %c0_i32, %c0_i32_0 : i32, i32
  }
  func.func @transform_9(%arg0: i32) -> (i32, i32) {
    %c0_i32 = arith.constant 0 : i32
    %c0_i32_0 = arith.constant 0 : i32
    %c0_i32_1 = arith.constant 0 : i32
    return %c0_i32, %c0_i32_0 : i32, i32
  }
  func.func @transform_10(%arg0: i32) -> (i32, i32) {
    %c0_i32 = arith.constant 0 : i32
    %c0_i32_0 = arith.constant 0 : i32
    %c0_i32_1 = arith.constant 0 : i32
    return %c0_i32, %c0_i32_0 : i32, i32
  }
  func.func @transform_11(%arg0: i32) -> (i32, i32) {
    %c0_i32 = arith.constant 0 : i32
    %c0_i32_0 = arith.constant 0 : i32
    %c0_i32_1 = arith.constant 0 : i32
    return %c0_i32, %c0_i32_0 : i32, i32
  }
  func.func @transform_12(%arg0: i32) -> (i32, i32) {
    %c0_i32 = arith.constant 0 : i32
    %c0_i32_0 = arith.constant 0 : i32
    %c0_i32_1 = arith.constant 0 : i32
    return %c0_i32, %c0_i32_0 : i32, i32
  }
  func.func @transform_13(%arg0: i32) -> (i32, i32, i32) {
    %c0_i32 = arith.constant 0 : i32
    %c0_i32_0 = arith.constant 0 : i32
    %c0_i32_1 = arith.constant 0 : i32
    return %arg0, %c0_i32, %c0_i32_0 : i32, i32, i32
  }
}

</mosaic_0001>

<bundles_post_ra>
// kernel: tpu_custom_call.1
= control target key start
LH: loop header
LB: loop body
LE: loop exit
PB: predicated region body
PF: predicated region fallthrough
CT: control target
= control target key end

     0   :  { %6 = vsyncpa [#allocation3], 0  ;;  %s114_s0 = inlined_call_operand.hbm [shape: f32[8,128], index: 0, kind: input, shape index: {}]   ;;  %s115_s1 = inlined_call_operand.hbm [shape: f32[8,128], index: 1, kind: output, shape index: {}]  }
   0x1   :  { %7 = vsyncpa [#allocation4], 0  ;;  %s13_s8 = sshll.u32 %s114_s0, 4  ;;  %s96_s9 = smov [#allocation2]   ;;  %s14_s8 = int_to_ptr.hbm [resolvable:$true] %s13_s8 }
   0x2   :  { %s15_s10 = sshll.u32 %s96_s9, 4  ;;  %s16_s10 = int_to_ptr.vmem [resolvable:$true] %s15_s10 }
   0x3   :  { %18 = dma.hbm_to_vmem [thread:$0]  %s14_s8, 128, %s16_s10, [#allocation3]  }
   0x4   :  { %92 = dma.done.wait [#allocation3], 128  }
   0x5   :  { %93 = vsyncadd [#allocation3], 4294967168  ;;  %s97_s11 = smov [#allocation5]   ;;  %s32_s15 = sshll.u32 %s115_s1, 4  ;;  %v23_v0 = vld [vmem:[#allocation2] sm:$0xff]  ;;  %s33_s15 = int_to_ptr.hbm [resolvable:$true] %s32_s15 }
   0x6   :  { %s30_s12 = sshll.u32 %s97_s11, 4  ;;  %24 = vst [vmem:[#allocation5] sm:$0xff] %v23_v0  ;;  %s31_s12 = int_to_ptr.vmem [resolvable:$true] %s30_s12 }
   0x7   :  { %35 = dma.vmem_to_hbm [thread:$0]  %s31_s12, 128, %s33_s15, [#allocation4]  }
   0x8   :  { %94 = dma.done.wait [#allocation4], 128  }
   0x9   :  { %95 = vsyncadd [#allocation4], 4294967168 }
   0xa   :  { %40 = vsyncpa [#allocation3], 1 }
   0xb   :  { %41 = vsyncpa [#allocation4], 1 }

// kernel: dasheng_blocks_forward.3
= control target key start
LH: loop header
LB: loop body
LE: loop exit
PB: predicated region body
PF: predicated region fallthrough
CT: control target
= control target key end

     0   :  { %s2688_s18 = smov 0   ;;  %s3271_s0 = inlined_call_operand.vmem [shape: f32[2,16,128], index: 0, kind: input, shape index: {}, may-alias: {0,15}]   ;;  %s3272_s1 = inlined_call_operand.vmem [shape: f32[1,128], index: 1, kind: input, shape index: {}]   ;;  %s3273_s2 = inlined_call_operand.vmem [shape: f32[1,128], index: 2, kind: input, shape index: {}]   ;;  %s3274_s3 = inlined_call_operand.vmem [shape: bf16[128,384], index: 3, kind: input, shape index: {}]   ;;  %s3275_s4 = inlined_call_operand.vmem [shape: f32[1,384], index: 4, kind: input, shape index: {}]   ;;  %s3276_s5 = inlined_call_operand.vmem [shape: bf16[128,128], index: 5, kind: input, shape index: {}]   ;;  %s3277_s6 = inlined_call_operand.vmem [shape: f32[1,128], index: 6, kind: input, shape index: {}]   ;;  %s3278_s7 = inlined_call_operand.vmem [shape: f32[1,128], index: 7, kind: input, shape index: {}]   ;;  %s3279_s8 = inlined_call_operand.vmem [shape: f32[1,128], index: 8, kind: input, shape index: {}]   ;;  %s3280_s9 = inlined_call_operand.vmem [shape: bf16[128,256], index: 9, kind: input, shape index: {}]   ;;  %s3281_s10 = inlined_call_operand.vmem [shape: f32[1,256], index: 10, kind: input, shape index: {}]   ;;  %s3282_s11 = inlined_call_operand.vmem [shape: bf16[256,128], index: 11, kind: input, shape index: {}]   ;;  %s3283_s12 = inlined_call_operand.vmem [shape: f32[1,128], index: 12, kind: input, shape index: {}]   ;;  %s3284_s13 = inlined_call_operand.vmem [shape: f32[1,128], index: 13, kind: input, shape index: {}]   ;;  %s3285_s14 = inlined_call_operand.vmem [shape: f32[1,128], index: 14, kind: input, shape index: {}]   ;;  %s3286_s15 = inlined_call_operand.vmem [shape: f32[2,16,128], index: 15, kind: output, shape index: {}, may-alias: {0,15}]  }
   0x1 LB: > { %s2175_s19 = sadd.s32 4294967295, %s2605_s18   ;;  %p2179_p0 = scmp.ge.s32.totalorder %s2605_s18, 1  ;;  %s2605_s18 = sphi %s2688_s18, %s25_s18  }
   0x2   : > { %p437_p1 = scmp.lt.s32.totalorder %s2605_s18, 3 }
   0x4   : > { %p438_p2 = pnand %p2179_p0, %p437_p1 }
   0x5   : > { %p485_p3 = scmp.lt.s32.totalorder (!%p438_p2), %s2175_s19, 1 }
   0x6   : > { %441 = sbr.rel (%p438_p2) target bundleno = 2629 (0xa45), region = 80 }
   0xb   : > { %s3290_s19 = smov (!%p485_p3, %s2175_s19), 1  ;;  %v2607_v2 = vmov 128.0   ;;  %v2270_v17 = vld [vmem:[%s3274_s3 + $0xa8] sm:$0xf]  ;;  %v2482_v18 = vld [vmem:[%s3274_s3 + $0xb0] sm:$0xf0] }
   0xc   : > { %s2458_s20 = sshll.u32 %s3290_s19, 4  ;;  %2543 = vrcp.f32 %v2607_v2  ;;  %v2481_v19 = vld [vmem:[%s3274_s3 + $0xac] sm:$0xf]  ;;  %v2271_v20 = vor.u32 %v2482_v18, %v2270_v17  ;;  %v2272_v21 = vld [vmem:[%s3274_s3 + $0xb4] sm:$0xf0]  ;;  %vm968_vm7 = vcmask 261120  }
   0xd   : > { %s2704_s23 = scalar_lea.vmem %s3271_s0, %s2458_s20  ;;  %v2278_v22 = vld [vmem:[%s3274_s3 + $0xb0] sm:$0xf]  ;;  %v2483_v23 = vld [vmem:[%s3274_s3 + $0xb8] sm:$0xf0]  ;;  %v2275_v24 = vor.u32 %v2481_v19, %v2272_v21  ;;  %v2478_v28 = vld [vmem:[%s3274_s3 + $0x94] sm:$0xf]  ;;  %s494_s24 = scalar_lea.vmem %s3286_s15, %s2458_s20 }
   0xe   : > { %v496_v0 = vld [vmem:[%s2704_s23] sm:$0xff]  ;;  %v497_v1 = vld [vmem:[%s2704_s23 + $0x8] sm:$0xff]  ;;  %v2279_v25 = vor.u32 %v2483_v23, %v2278_v22  ;;  %726 = vmatpush.bf16.msra.mxu0 %v2271_v20  ;;  %v2258_v26 = vld [vmem:[%s3274_s3 + $0x90] sm:$0xf]  ;;  %vm1157_vm8 = vcmask 130048  }
   0xf   : > { %500 = vadd.xlane.f32.xlu0 %v496_v0  ;;  %740 = vmatpush.bf16.msra.mxu1 %v2275_v24  ;;  %v2479_v27 = vld [vmem:[%s3274_s3 + $0x98] sm:$0xf0]  ;;  %v2260_v30 = vld [vmem:[%s3274_s3 + $0x9c] sm:$0xf0]  ;;  %v2266_v31 = vld [vmem:[%s3274_s3 + $0x98] sm:$0xf] }
  0x10   : > { %754 = vmatpush.bf16.msra.mxu2 %v2279_v25  ;;  %v2259_v29 = vor.u32 %v2479_v27, %v2258_v26  ;;  %v2480_v32 = vld [vmem:[%s3274_s3 + $0xa0] sm:$0xf0]  ;;  %v2263_v33 = vor.u32 %v2478_v28, %v2260_v30  ;;  %v2246_v35 = vld [vmem:[%s3274_s3 + $0x78] sm:$0xf]  ;;  %v2475_v37 = vld [vmem:[%s3274_s3 + $0x7c] sm:$0xf] }
  0x11   : > { %v2267_v34 = vor.u32 %v2480_v32, %v2266_v31  ;;  %v2476_v36 = vld [vmem:[%s3274_s3 + $0x80] sm:$0xf0]  ;;  %v2248_v39 = vld [vmem:[%s3274_s3 + $0x84] sm:$0xf0]  ;;  %v2254_v40 = vld [vmem:[%s3274_s3 + $0x80] sm:$0xf] }
  0x12   : > { %v2544_v3 = vpop.eup %2543  ;;  %727 = vmatpush.bf16.msra.mxu0 %v2259_v29  ;;  %v2247_v38 = vor.u32 %v2476_v36, %v2246_v35  ;;  %v2477_v41 = vld [vmem:[%s3274_s3 + $0x88] sm:$0xf0]  ;;  %v2251_v42 = vor.u32 %v2475_v37, %v2248_v39  ;;  %v2234_v44 = vld [vmem:[%s3274_s3 + $0x60] sm:$0xf]  ;;  %v2472_v46 = vld [vmem:[%s3274_s3 + $0x64] sm:$0xf] }
  0x13   : > { %v505_v4 = vmul.f32 128.0, %v2544_v3  ;;  %vm509_vm0 = vweird.f32 %v2544_v3  ;;  %741 = vmatpush.bf16.msra.mxu1 %v2263_v33  ;;  %v2255_v43 = vor.u32 %v2477_v41, %v2254_v40  ;;  %v2473_v45 = vld [vmem:[%s3274_s3 + $0x68] sm:$0xf0]  ;;  %v2236_v48 = vld [vmem:[%s3274_s3 + $0x6c] sm:$0xf0] }
  0x14   : > { %755 = vmatpush.bf16.msra.mxu2 %v2267_v34  ;;  %v2235_v47 = vor.u32 %v2473_v45, %v2234_v44  ;;  %v2242_v49 = vld [vmem:[%s3274_s3 + $0x68] sm:$0xf]  ;;  %v2474_v50 = vld [vmem:[%s3274_s3 + $0x70] sm:$0xf0]  ;;  %v2239_v51 = vor.u32 %v2472_v46, %v2236_v48  ;;  %v2469_v55 = vld [vmem:[%s3274_s3 + $0x4c] sm:$0xf] }
  0x15   : > { %v506_v5 = vsub.f32 1.0, %v505_v4  ;;  %v2243_v52 = vor.u32 %v2474_v50, %v2242_v49  ;;  %v2222_v53 = vld [vmem:[%s3274_s3 + $0x48] sm:$0xf]  ;;  %v2470_v54 = vld [vmem:[%s3274_s3 + $0x50] sm:$0xf0] }
  0x16   : > { %728 = vmatpush.bf16.msra.mxu0 %v2247_v38  ;;  %v2223_v56 = vor.u32 %v2470_v54, %v2222_v53  ;;  %v2224_v57 = vld [vmem:[%s3274_s3 + $0x54] sm:$0xf0]  ;;  %v2230_v58 = vld [vmem:[%s3274_s3 + $0x50] sm:$0xf]  ;;  %v2471_v59 = vld [vmem:[%s3274_s3 + $0x58] sm:$0xf0] }
  0x17   : > { %502 = vadd.xlane.f32.xlu0 %v497_v1  ;;  %v507_v6 = vmul.f32 %v2544_v3, %v506_v5  ;;  %742 = vmatpush.bf16.msra.mxu1 %v2251_v42  ;;  %v2227_v60 = vor.u32 %v2469_v55, %v2224_v57  ;;  %v2231_v61 = vor.u32 %v2471_v59, %v2230_v58  ;;  %v2210_v62 = vld [vmem:[%s3274_s3 + $0x30] sm:$0xf]  ;;  %v2467_v63 = vld [vmem:[%s3274_s3 + $0x38] sm:$0xf0]  ;;  %v2212_v2 = vld [vmem:[%s3274_s3 + $0x3c] sm:$0xf0] }
  0x18   : > { %756 = vmatpush.bf16.msra.mxu2 %v2255_v43  ;;  %v2468_v4 = vld [vmem:[%s3274_s3 + $0x40] sm:$0xf0]  ;;  %v2186_v19 = vld [vmem:[%s3274_s3] sm:$0xf]  ;;  %v2461_v20 = vld [vmem:[%s3274_s3 + $0x8] sm:$0xf0] }
  0x19   : > { %v508_v7 = vadd.f32 %v2544_v3, %v507_v6  ;;  %v2460_v21 = vld [vmem:[%s3274_s3 + $0x4] sm:$0xf]  ;;  %v2187_v23 = vor.u32 %v2461_v20, %v2186_v19  ;;  %v2188_v24 = vld [vmem:[%s3274_s3 + $0xc] sm:$0xf0]  ;;  %v2194_v25 = vld [vmem:[%s3274_s3 + $0x8] sm:$0xf] }
  0x1a   : > { %729 = vmatpush.bf16.msra.mxu0 %v2235_v47  ;;  %v2462_v26 = vld [vmem:[%s3274_s3 + $0x10] sm:$0xf0]  ;;  %v2191_v28 = vor.u32 %v2460_v21, %v2188_v24  ;;  %v2535_v47 = vld [vmem:[%s3272_s1] ss:$0 sm:$0xff] }
  0x1b   : > { %v2708_v8 = vsel %vm509_vm0, %v2544_v3, %v508_v7  ;;  %743 = vmatpush.bf16.msra.mxu1 %v2239_v51  ;;  %v2218_v3 = vld [vmem:[%s3274_s3 + $0x38] sm:$0xf]  ;;  %v2195_v29 = vor.u32 %v2462_v26, %v2194_v25 }
  0x1c   : > { %757 = vmatpush.bf16.msra.mxu2 %v2243_v52  ;;  %v2219_v6 = vor.u32 %v2468_v4, %v2218_v3  ;;  %v2198_v7 = vld [vmem:[%s3274_s3 + $0x18] sm:$0xf]  ;;  %v2536_v52 = vld [vmem:[%s3273_s2] ss:$0 sm:$0xff] }
  0x1e   : > { %730 = vmatpush.bf16.msra.mxu0 %v2223_v56 }
  0x1f   : > { %744 = vmatpush.bf16.msra.mxu1 %v2227_v60 }
  0x20   : > { %758 = vmatpush.bf16.msra.mxu2 %v2231_v61 }
  0x24   : > { %759 = vmatpush.bf16.msra.mxu2 %v2219_v6 }
  0x82   : > { %v501_v9 = vpop.xlane.xlu0 %500 }
  0x83   : > { %v511_v10 = vmul.f32 %v2708_v8, %v501_v9  ;;  %v2464_v9 = vld [vmem:[%s3274_s3 + $0x20] sm:$0xf0] }
  0x85   : > { %v2711_v11 = vsub.f32 %v496_v0, %v511_v10  ;;  %v2466_v0 = vld [vmem:[%s3274_s3 + $0x34] sm:$0xf]  ;;  %v2463_v10 = vld [vmem:[%s3274_s3 + $0x1c] sm:$0xf] }
  0x86   : > { %v2215_v5 = vor.u32 %v2466_v0, %v2212_v2 }
  0x87   : > { %v515_v12 = vmul.f32 %v2711_v11, %v2711_v11 }
  0x88   : > { %745 = vmatpush.bf16.msra.mxu1 %v2215_v5 }
  0x89   : > { %517 = vadd.xlane.f32.xlu1 %v515_v12  ;;  %v2199_v12 = vor.u32 %v2464_v9, %v2198_v7 }
  0x8a   : > { %v503_v13 = vpop.xlane.xlu0 %502 }
  0x8b   : > { %v512_v14 = vmul.f32 %v2708_v8, %v503_v13  ;;  %v2200_v13 = vld [vmem:[%s3274_s3 + $0x24] sm:$0xf0] }
  0x8c   : > { %v2203_v17 = vor.u32 %v2463_v10, %v2200_v13 }
  0x8d   : > { %v2716_v15 = vsub.f32 %v497_v1, %v512_v14  ;;  %v2211_v1 = vor.u32 %v2467_v63, %v2210_v62  ;;  %v2206_v14 = vld [vmem:[%s3274_s3 + $0x20] sm:$0xf] }
  0x8e   : > { %746 = vmatpush.bf16.msra.mxu1 %v2203_v17 }
  0x8f   : > { %v516_v16 = vmul.f32 %v2716_v15, %v2716_v15  ;;  %731 = vmatpush.bf16.msra.mxu0 %v2211_v1 }
  0x91   : > { %519 = vadd.xlane.f32.xlu1 %v516_v16  ;;  %v2465_v16 = vld [vmem:[%s3274_s3 + $0x28] sm:$0xf0] }
  0x92   : > { %v2207_v18 = vor.u32 %v2465_v16, %v2206_v14  ;;  %747 = vmatpush.bf16.msra.mxu1 %v2191_v28 }
  0x93   : > { %732 = vmatpush.bf16.msra.mxu0 %v2199_v12 }
  0x94   : > { %760 = vmatpush.bf16.msra.mxu2 %v2207_v18 }
  0x97   : > { %733 = vmatpush.bf16.msra.mxu0 %v2187_v23 }
  0x98   : > { %761 = vmatpush.bf16.msra.mxu2 %v2195_v29 }
  0xfc   : > { %v518_v22 = vpop.xlane.xlu1 %517 }
  0xfd   : > { %v521_v27 = vmul.f32 %v518_v22, %v2708_v8 }
  0xff   : > { %v523_v30 = vadd.f32 1e-05, %v521_v27 }
 0x101   : > { %2545 = vrsqrt.f32 %v523_v30  ;;  %vm531_vm2 = vweird.f32 %v523_v30 }
 0x104   : > { %v520_v31 = vpop.xlane.xlu1 %519 }
 0x105   : > { %v522_v32 = vmul.f32 %v520_v31, %v2708_v8 }
 0x107   : > { %v2546_v33 = vpop.eup %2545  ;;  %v524_v34 = vadd.f32 1e-05, %v522_v32 }
 0x108   : > { %v526_v35 = vmul.f32 %v2546_v33, %v523_v30  ;;  %vm532_vm1 = vweird.f32 %v2546_v33 }
 0x109   : > { %2547 = vrsqrt.f32 %v524_v34  ;;  %vm533_vm3 = vmor %vm531_vm2, %vm532_vm1  ;;  %vm541_vm5 = vweird.f32 %v524_v34 }
 0x10a   : > { %v527_v36 = vmul.f32 %v2546_v33, %v526_v35 }
 0x10c   : > { %v528_v37 = vmul.f32 0.5, %v527_v36 }
 0x10e   : > { %v529_v38 = vsub.f32 1.5, %v528_v37 }
 0x10f   : > { %v2548_v39 = vpop.eup %2547 }
 0x110   : > { %v530_v40 = vmul.f32 %v2546_v33, %v529_v38  ;;  %v536_v41 = vmul.f32 %v2548_v39, %v524_v34  ;;  %vm542_vm4 = vweird.f32 %v2548_v39 }
 0x111   : > { %vm543_vm6 = vmor %vm541_vm5, %vm542_vm4 }
 0x112   : > { %v537_v42 = vmul.f32 %v2548_v39, %v536_v41  ;;  %v534_v43 = vsel %vm533_vm3, %v2546_v33, %v530_v40 }
 0x113   : > { %v545_v46 = vmul.f32 %v534_v43, %v2711_v11  ;;  %v2877_v11 = vld [vmem:[%s3275_s4] sm:$0x7] }
 0x114   : > { %v538_v44 = vmul.f32 0.5, %v537_v42  ;;  %v593_v57 = vperm.slane %v2877_v11, 1 }
 0x115   : > { %v550_v51 = vmul.f32 %v2535_v47, %v545_v46 }
 0x116   : > { %v539_v45 = vsub.f32 1.5, %v538_v44 }
 0x117   : > { %v555_v54 = vadd.f32 %v2536_v52, %v550_v51 }
 0x118   : > { %v540_v48 = vmul.f32 %v2548_v39, %v539_v45 }
 0x11a   : > { %v544_v49 = vsel %vm543_vm6, %v2548_v39, %v540_v48 }
 0x11b   : > { %v546_v50 = vmul.f32 %v544_v49, %v2716_v15  ;;  %v592_v15 = vperm.slane %v2877_v11, 0 }
 0x11d   : > { %v551_v53 = vmul.f32 %v2535_v47, %v546_v50 }
 0x11f   : > { %v556_v55 = vadd.f32 %v2536_v52, %v551_v53 }
 0x121   : > { %v557_v56 = vpack.c.bf16 %v556_v55, %v555_v54 }
 0x123   : > { %734 = vmatmul.bf16.vlgmr.msra.gmra.mxu0 %v557_v56  ;;  %748 = vmatmul.bf16.vlgmr.msra.gmra.mxu1 %v557_v56 }
 0x124   : > { %762 = vmatmul.bf16.vlgmr.msra.gmra.mxu2 %v557_v56 }
 0x1a0   : > { %v735_v58 = vpop.f32.mrf.mxu0  ;;  %v749_v59 = vpop.f32.mrf.mxu1 }
 0x1a1   : > { %v750_v60 = vadd.f32 %v749_v59, %v593_v57  ;;  %v736_v61 = vadd.f32 %v735_v58, %v592_v15 }
 0x1a3   : > { %800 = vxpose.xlu0.b32.start [1/2] (short) %v750_v60, 128  ;;  %768 = vxpose.xlu2.b32.start [1/2] (short) %v736_v61, 128 }
 0x1a8   : > { %v737_v62 = vpop.f32.mrf.mxu0  ;;  %v751_v63 = vpop.f32.mrf.mxu1 }
 0x1a9   : > { %v738_v0 = vadd.f32 %v737_v62, %v592_v15  ;;  %v752_v1 = vadd.f32 %v751_v63, %v593_v57 }
 0x1ab   : > { %801 = vxpose.xlu0.b32.end [2/2] (short) %v752_v1, 128  ;;  %769 = vxpose.xlu2.b32.end [2/2] (short) %v738_v0, 128 }
 0x23c   : > { %v784_v2 = vpop.trf.xlu2 }
 0x23d   : > { %v864_v3 = vmul.f32 0.17677669, %v784_v2 }
 0x23f   : > { %v880_v5 = vpack.c.bf16 %v864_v3, %v864_v3 }
 0x241   : > { %v932_v9 = vunpack.c.l.b16 %v880_v5 }
 0x244   : > { %v785_v4 = vpop.trf.xlu2 }
 0x245   : > { %v865_v6 = vmul.f32 0.17677669, %v785_v4 }
 0x247   : > { %v881_v7 = vpack.c.bf16 %v865_v6, %v865_v6  ;;  %v816_v42 = vpop.trf.xlu0 }
 0x248   : > { %v896_v57 = vpack.c.bf16 %v816_v42, %v816_v42 }
 0x249   : > { %v933_v10 = vunpack.c.l.b16 %v881_v7 }
 0x24a   : > { %v960_v0 = vunpack.c.l.b16 %v896_v57 }
 0x24b   : > { %v936_v12 = vpack.c.b16 %v933_v10, %v932_v9 }
 0x24c   : > { %v786_v13 = vpop.trf.xlu2 }
 0x24d   : > { %940 = vxpose.xlu1.c.b16.start [1/2] (short) (narrow) %v936_v12, 16  ;;  %v866_v14 = vmul.f32 0.17677669, %v786_v13 }
 0x24f   : > { %v882_v17 = vpack.c.bf16 %v866_v14, %v866_v14  ;;  %v817_v47 = vpop.trf.xlu0 }
 0x250   : > { %v897_v59 = vpack.c.bf16 %v817_v47, %v817_v47 }
 0x251   : > { %v934_v20 = vunpack.c.l.b16 %v882_v17 }
 0x252   : > { %v961_v3 = vunpack.c.l.b16 %v897_v59 }
 0x254   : > { %v787_v16 = vpop.trf.xlu2  ;;  %v964_v9 = vpack.c.b16 %v961_v3, %v960_v0 }
 0x255   : > { %v867_v18 = vmul.f32 0.17677669, %v787_v16 }
 0x257   : > { %v883_v19 = vpack.c.bf16 %v867_v18, %v867_v18  ;;  %v818_v53 = vpop.trf.xlu0 }
 0x258   : > { %v898_v55 = vpack.c.bf16 %v818_v53, %v818_v53 }
 0x259   : > { %v935_v21 = vunpack.c.l.b16 %v883_v19 }
 0x25a   : > { %v962_v62 = vunpack.c.l.b16 %v898_v55 }
 0x25b   : > { %v937_v22 = vpack.c.b16 %v935_v21, %v934_v20 }
 0x25c   : > { %v788_v23 = vpop.trf.xlu2 }
 0x25d   : > { %941 = vxpose.xlu1.c.b16.end [2/2] (short) (narrow) %v937_v22, 16  ;;  %v868_v24 = vmul.f32 0.17677669, %v788_v23 }
 0x25f   : > { %v884_v26 = vpack.c.bf16 %v868_v24, %v868_v24  ;;  %v819_v60 = vpop.trf.xlu0 }
 0x260   : > { %v899_v63 = vpack.c.bf16 %v819_v60, %v819_v60 }
 0x261   : > { %v990_v29 = vunpack.c.l.b16 %v884_v26 }
 0x262   : > { %v963_v4 = vunpack.c.l.b16 %v899_v63 }
 0x264   : > { %v789_v25 = vpop.trf.xlu2  ;;  %v965_v6 = vpack.c.b16 %v963_v4, %v962_v62 }
 0x265   : > { %v869_v27 = vmul.f32 0.17677669, %v789_v25 }
 0x266   : > { %978 = vmatpush.bf16.msra.mxu3 %v965_v6 }
 0x267   : > { %v885_v28 = vpack.c.bf16 %v869_v27, %v869_v27  ;;  %v820_v10 = vpop.trf.xlu0 }
 0x269   : > { %v991_v30 = vunpack.c.l.b16 %v885_v28 }
 0x26a   : > { %979 = vmatpush.bf16.msra.mxu3 %v964_v9 }
 0x26b   : > { %v994_v31 = vpack.c.b16 %v991_v30, %v990_v29  ;;  %v900_v29 = vpack.c.bf16 %v820_v10, %v820_v10 }
 0x26c   : > { %v790_v32 = vpop.trf.xlu2 }
 0x26d   : > { %998 = vxpose.xlu2.c.b16.start [1/2] (short) (narrow) %v994_v31, 16  ;;  %v870_v33 = vmul.f32 0.17677669, %v790_v32 }
 0x26f   : > { %v886_v35 = vpack.c.bf16 %v870_v33, %v870_v33  ;;  %v821_v17 = vpop.trf.xlu0 }
 0x270   : > { %v901_v30 = vpack.c.bf16 %v821_v17, %v821_v17 }
 0x271   : > { %v992_v38 = vunpack.c.l.b16 %v886_v35 }
 0x274   : > { %v791_v34 = vpop.trf.xlu2 }
 0x275   : > { %v871_v36 = vmul.f32 0.17677669, %v791_v34 }
 0x277   : > { %v887_v37 = vpack.c.bf16 %v871_v36, %v871_v36  ;;  %v822_v23 = vpop.trf.xlu0 }
 0x278   : > { %v902_v26 = vpack.c.bf16 %v822_v23, %v822_v23 }
 0x279   : > { %v993_v39 = vunpack.c.l.b16 %v887_v37  ;;  %v1018_v37 = vunpack.c.l.b16 %v900_v29 }
 0x27a   : > { %v1020_v34 = vunpack.c.l.b16 %v902_v26 }
 0x27b   : > { %v995_v40 = vpack.c.b16 %v993_v39, %v992_v38  ;;  %v1019_v38 = vunpack.c.l.b16 %v901_v30 }
 0x27c   : > { %v792_v41 = vpop.trf.xlu2 }
 0x27d   : > { %999 = vxpose.xlu2.c.b16.end [2/2] (short) (narrow) %v995_v40, 16  ;;  %v872_v43 = vmul.f32 0.17677669, %v792_v41  ;;  %v1022_v42 = vpack.c.b16 %v1019_v38, %v1018_v37 }
 0x27f   : > { %v888_v45 = vpack.c.bf16 %v872_v43, %v872_v43  ;;  %v823_v31 = vpop.trf.xlu0 }
 0x280   : > { %v903_v35 = vpack.c.bf16 %v823_v31, %v823_v31 }
 0x281   : > { %v1047_v49 = vunpack.c.l.b16 %v888_v45 }
 0x282   : > { %v1021_v39 = vunpack.c.l.b16 %v903_v35 }
 0x284   : > { %v793_v44 = vpop.trf.xlu2  ;;  %v1023_v41 = vpack.c.b16 %v1021_v39, %v1020_v34 }
 0x285   : > { %v873_v46 = vmul.f32 0.17677669, %v793_v44 }
 0x286   : > { %1035 = vmatpush.bf16.msrb.mxu3 %v1023_v41 }
 0x287   : > { %v889_v48 = vpack.c.bf16 %v873_v46, %v873_v46  ;;  %v824_v43 = vpop.trf.xlu0 }
 0x289   : > { %v1048_v50 = vunpack.c.l.b16 %v889_v48 }
 0x28a   : > { %1036 = vmatpush.bf16.msrb.mxu3 %v1022_v42 }
 0x28b   : > { %v1051_v51 = vpack.c.b16 %v1048_v50, %v1047_v49 }
 0x28c   : > { %v794_v52 = vpop.trf.xlu2 }
 0x28d   : > { %1055 = vxpose.xlu0.c.b16.start [1/2] (short) (narrow) %v1051_v51, 16  ;;  %v874_v54 = vmul.f32 0.17677669, %v794_v52  ;;  %v904_v52 = vpack.c.bf16 %v824_v43, %v824_v43 }
 0x28f   : > { %v890_v15 = vpack.c.bf16 %v874_v54, %v874_v54  ;;  %v825_v44 = vpop.trf.xlu0 }
 0x290   : > { %v905_v53 = vpack.c.bf16 %v825_v44, %v825_v44 }
 0x291   : > { %v1049_v1 = vunpack.c.l.b16 %v890_v15 }
 0x292   : > { %v1076_v59 = vunpack.c.l.b16 %v905_v53 }
 0x294   : > { %v795_v56 = vpop.trf.xlu2 }
 0x295   : > { %v875_v58 = vmul.f32 0.17677669, %v795_v56 }
 0x297   : > { %v891_v61 = vpack.c.bf16 %v875_v58, %v875_v58  ;;  %v826_v45 = vpop.trf.xlu0  ;;  %v1075_v58 = vunpack.c.l.b16 %v904_v52 }
 0x298   : > { %v906_v50 = vpack.c.bf16 %v826_v45, %v826_v45 }
 0x299   : > { %v1050_v2 = vunpack.c.l.b16 %v891_v61  ;;  %v1079_v4 = vpack.c.b16 %v1076_v59, %v1075_v58 }
 0x29a   : > { %v1077_v54 = vunpack.c.l.b16 %v906_v50 }
 0x29b   : > { %v1052_v5 = vpack.c.b16 %v1050_v2, %v1049_v1 }
 0x29c   : > { %v796_v7 = vpop.trf.xlu2 }
 0x29d   : > { %1056 = vxpose.xlu0.c.b16.end [2/2] (short) (narrow) %v1052_v5, 16  ;;  %v876_v12 = vmul.f32 0.17677669, %v796_v7 }
 0x29f   : > { %v892_v13 = vpack.c.bf16 %v876_v12, %v876_v12  ;;  %v827_v46 = vpop.trf.xlu0 }
 0x2a0   : > { %v907_v51 = vpack.c.bf16 %v827_v46, %v827_v46 }
 0x2a1   : > { %v1104_v18 = vunpack.c.l.b16 %v892_v13 }
 0x2a2   : > { %v1078_v55 = vunpack.c.l.b16 %v907_v51 }
 0x2a4   : > { %v797_v14 = vpop.trf.xlu2  ;;  %v1080_v61 = vpack.c.b16 %v1078_v55, %v1077_v54 }
 0x2a5   : > { %v877_v16 = vmul.f32 0.17677669, %v797_v14 }
 0x2a7   : > { %v893_v19 = vpack.c.bf16 %v877_v16, %v877_v16  ;;  %v828_v47 = vpop.trf.xlu0 }
 0x2a8   : > { %v908_v57 = vpack.c.bf16 %v828_v47, %v828_v47 }
 0x2a9   : > { %v1105_v20 = vunpack.c.l.b16 %v893_v19 }
 0x2aa   : > { %v1132_v1 = vunpack.c.l.b16 %v908_v57 }
 0x2ab   : > { %v1108_v21 = vpack.c.b16 %v1105_v20, %v1104_v18 }
 0x2ac   : > { %v798_v22 = vpop.trf.xlu2 }
 0x2ad   : > { %1112 = vxpose.xlu1.c.b16.start [1/2] (short) (narrow) %v1108_v21, 16  ;;  %v878_v24 = vmul.f32 0.17677669, %v798_v22 }
 0x2af   : > { %v894_v25 = vpack.c.bf16 %v878_v24, %v878_v24  ;;  %v829_v48 = vpop.trf.xlu0 }
 0x2b0   : > { %v909_v15 = vpack.c.bf16 %v829_v48, %v829_v48 }
 0x2b1   : > { %v1106_v32 = vunpack.c.l.b16 %v894_v25 }
 0x2b2   : > { %v1133_v2 = vunpack.c.l.b16 %v909_v15 }
 0x2b4   : > { %v799_v27 = vpop.trf.xlu2  ;;  %v1136_v6 = vpack.c.b16 %v1133_v2, %v1132_v1 }
 0x2b5   : > { %v879_v28 = vmul.f32 0.17677669, %v799_v27 }
 0x2b7   : > { %v895_v33 = vpack.c.bf16 %v879_v28, %v879_v28  ;;  %v830_v49 = vpop.trf.xlu0 }
 0x2b8   : > { %v910_v56 = vpack.c.bf16 %v830_v49, %v830_v49 }
 0x2b9   : > { %v1107_v36 = vunpack.c.l.b16 %v895_v33 }
 0x2ba   : > { %v1134_v62 = vunpack.c.l.b16 %v910_v56 }
 0x2bb   : > { %v1109_v40 = vpack.c.b16 %v1107_v36, %v1106_v32 }
 0x2bd   : > { %1113 = vxpose.xlu1.c.b16.end [2/2] (short) (narrow) %v1109_v40, 16 }
 0x2bf   : > { %v831_v60 = vpop.trf.xlu0 }
 0x2c0   : > { %v911_v63 = vpack.c.bf16 %v831_v60, %v831_v60 }
 0x2c2   : > { %v1135_v3 = vunpack.c.l.b16 %v911_v63 }
 0x2c4   : > { %v1137_v5 = vpack.c.b16 %v1135_v3, %v1134_v62 }
 0x2c6   : > { %1149 = vmatpush.bf16.msrb.mxu0 %v1137_v5 }
 0x2ca   : > { %1150 = vmatpush.bf16.msrb.mxu0 %v1136_v6  ;;  %v594_v6 = vperm.slane %v2877_v11, 2 }
 0x2f9   : > { %v948_v0 = vpop.trf.xlu1 }
 0x2fa   : > { %2280 = vmatmul.msk.bf16.vlgmr.msra.gmra.mxu3 %vm968_vm7, %v948_v0 }
 0x2fb   : > { %1092 = vmatpush.bf16.msra.mxu3 %v1080_v61 }
 0x2ff   : > { %1093 = vmatpush.bf16.msra.mxu3 %v1079_v4  ;;  %v763_v4 = vpop.f32.mrf.mxu2 }
 0x30e   : > { %v1006_v7 = vpop.trf.xlu2 }
 0x30f   : > { %2281 = vmatmul.msk.bf16.vlgmr.msrb.gmra.mxu3 %vm968_vm7, %v1006_v7  ;;  %v764_v7 = vadd.f32 %v763_v4, %v594_v6 }
 0x339   : > { %v1063_v9 = vpop.trf.xlu0 }
 0x33a   : > { %2282 = vmatmul.msk.bf16.vlgmr.msra.gmra.mxu3 %vm968_vm7, %v1063_v9 }
 0x359   : > { %v1120_v10 = vpop.trf.xlu1 }
 0x35a   : > { %2283 = vmatmul.msk.bf16.vlgmr.msrb.gmra.mxu0 %vm968_vm7, %v1120_v10 }
 0x37d   : > { %v981_v12 = vpop.f32.mrf.mxu3 }
 0x37e   : > { %v1158_v13 = vsel %vm1157_vm8, %v981_v12, -inf }
 0x37f   : > { %1159 = vmax.xlane.f32.xlu1 %v1158_v13 }
 0x385   : > { %v983_v14 = vpop.f32.mrf.mxu3 }
 0x386   : > { %v1161_v16 = vsel %vm1157_vm8, %v983_v14, -inf }
 0x387   : > { %1162 = vmax.xlane.f32.xlu2 %v1161_v16 }
 0x392   : > { %v1038_v17 = vpop.f32.mrf.mxu3 }
 0x393   : > { %v1164_v18 = vsel %vm1157_vm8, %v1038_v17, -inf }
 0x394   : > { %1165 = vmax.xlane.f32.xlu0 %v1164_v18 }
 0x39a   : > { %v1040_v19 = vpop.f32.mrf.mxu3 }
 0x39b   : > { %v1167_v20 = vsel %vm1157_vm8, %v1040_v19, -inf }
 0x39c   : > { %1168 = vmax.xlane.f32.xlu1 %v1167_v20 }
 0x3bd   : > { %v1095_v21 = vpop.f32.mrf.mxu3 }
 0x3be   : > { %v1170_v22 = vsel %vm1157_vm8, %v1095_v21, -inf }
 0x3bf   : > { %1171 = vmax.xlane.f32.xlu1 %v1170_v22 }
 0x3c5   : > { %v1097_v23 = vpop.f32.mrf.mxu3 }
 0x3c6   : > { %v1173_v24 = vsel %vm1157_vm8, %v1097_v23, -inf }
 0x3c7   : > { %1174 = vmax.xlane.f32.xlu1 %v1173_v24 }
 0x3d7   : > { %v1152_v25 = vpop.f32.mrf.mxu0 }
 0x3d8   : > { %v1176_v26 = vsel %vm1157_vm8, %v1152_v25, -inf }
 0x3d9   : > { %1177 = vmax.xlane.f32.xlu1 %v1176_v26 }
 0x3df   : > { %v1154_v27 = vpop.f32.mrf.mxu0 }
 0x3e0   : > { %v1179_v28 = vsel %vm1157_vm8, %v1154_v27, -inf }
 0x3e1   : > { %1180 = vmax.xlane.f32.xlu1 %v1179_v28 }
 0x3f2   : > { %v1160_v29 = vpop.xlane.xlu1 %1159 }
 0x3f3   : > { %v1182_v30 = vsub.f32 %v981_v12, %v1160_v29  ;;  %v765_v12 = vpop.f32.mrf.mxu2 }
 0x3f5   : > { %v1190_v31 = vmul.f32 1.442695, %v1182_v30 }
 0x3f7   : > { %2549 = vpow2.f32 %v1190_v31 }
 0x3fa   : > { %v1163_v32 = vpop.xlane.xlu2 %1162 }
 0x3fb   : > { %v1183_v33 = vsub.f32 %v983_v14, %v1163_v32  ;;  %v766_v14 = vadd.f32 %v765_v12, %v594_v6 }
 0x3fd   : > { %v2550_v34 = vpop.eup %2549  ;;  %v1192_v35 = vmul.f32 1.442695, %v1183_v33 }
 0x3fe   : > { %v1206_v36 = vsel %vm1157_vm8, %v2550_v34, 0.0 }
 0x3ff   : > { %2551 = vpow2.f32 %v1192_v35  ;;  %1207 = vadd.xlane.f32.xlu1 %v1206_v36 }
 0x405   : > { %v2552_v37 = vpop.eup %2551 }
 0x406   : > { %v1209_v38 = vsel %vm1157_vm8, %v2552_v37, 0.0 }
 0x407   : > { %v1166_v39 = vpop.xlane.xlu0 %1165  ;;  %1210 = vadd.xlane.f32.xlu2 %v1209_v38 }
 0x408   : > { %v1184_v40 = vsub.f32 %v1038_v17, %v1166_v39 }
 0x40a   : > { %v1194_v41 = vmul.f32 1.442695, %v1184_v40 }
 0x40c   : > { %2553 = vpow2.f32 %v1194_v41 }
 0x40f   : > { %v1169_v42 = vpop.xlane.xlu1 %1168 }
 0x410   : > { %v1185_v43 = vsub.f32 %v1040_v19, %v1169_v42 }
 0x412   : > { %v2895_v44 = vpop.eup %2553  ;;  %v1196_v45 = vmul.f32 1.442695, %v1185_v43 }
 0x413   : > { %v1212_v46 = vsel %vm1157_vm8, %v2895_v44, 0.0 }
 0x414   : > { %2555 = vpow2.f32 %v1196_v45  ;;  %1213 = vadd.xlane.f32.xlu1 %v1212_v46 }
 0x41a   : > { %v2556_v47 = vpop.eup %2555 }
 0x41b   : > { %v1215_v48 = vsel %vm1157_vm8, %v2556_v47, 0.0 }
 0x41c   : > { %1216 = vadd.xlane.f32.xlu2 %v1215_v48 }
 0x432   : > { %v1172_v49 = vpop.xlane.xlu1 %1171 }
 0x433   : > { %v1186_v50 = vsub.f32 %v1095_v21, %v1172_v49 }
 0x435   : > { %v1198_v51 = vmul.f32 1.442695, %v1186_v50 }
 0x437   : > { %2557 = vpow2.f32 %v1198_v51 }
 0x43a   : > { %v1175_v52 = vpop.xlane.xlu1 %1174 }
 0x43b   : > { %v1187_v53 = vsub.f32 %v1097_v23, %v1175_v52 }
 0x43d   : > { %v2900_v54 = vpop.eup %2557  ;;  %v1200_v55 = vmul.f32 1.442695, %v1187_v53 }
 0x43e   : > { %v1218_v56 = vsel %vm1157_vm8, %v2900_v54, 0.0 }
 0x43f   : > { %2559 = vpow2.f32 %v1200_v55  ;;  %1219 = vadd.xlane.f32.xlu1 %v1218_v56 }
 0x445   : > { %v2560_v57 = vpop.eup %2559 }
 0x446   : > { %v1221_v15 = vsel %vm1157_vm8, %v2560_v57, 0.0 }
 0x447   : > { %1222 = vadd.xlane.f32.xlu2 %v1221_v15 }
 0x44c   : > { %v1178_v58 = vpop.xlane.xlu1 %1177 }
 0x44d   : > { %v1188_v59 = vsub.f32 %v1152_v25, %v1178_v58 }
 0x44f   : > { %v1202_v60 = vmul.f32 1.442695, %v1188_v59 }
 0x451   : > { %2561 = vpow2.f32 %v1202_v60 }
 0x454   : > { %v1181_v61 = vpop.xlane.xlu1 %1180 }
 0x455   : > { %v1189_v62 = vsub.f32 %v1154_v27, %v1181_v61 }
 0x457   : > { %v2905_v63 = vpop.eup %2561  ;;  %v1204_v0 = vmul.f32 1.442695, %v1189_v62 }
 0x458   : > { %v1224_v1 = vsel %vm1157_vm8, %v2905_v63, 0.0 }
 0x459   : > { %2563 = vpow2.f32 %v1204_v0  ;;  %1225 = vadd.xlane.f32.xlu2 %v1224_v1 }
 0x45f   : > { %v2564_v2 = vpop.eup %2563 }
 0x460   : > { %v1227_v3 = vsel %vm1157_vm8, %v2564_v2, 0.0 }
 0x461   : > { %1228 = vadd.xlane.f32.xlu2 %v1227_v3 }
 0x472   : > { %v1208_v5 = vpop.xlane.xlu1 %1207 }
 0x473   : > { %2565 = vrcp.f32 %v1208_v5 }
 0x479   : > { %832 = vxpose.xlu1.b32.start [1/2] (short) %v764_v7, 128  ;;  %v2566_v10 = vpop.eup %2565 }
 0x47a   : > { %v1211_v9 = vpop.xlane.xlu2 %1210  ;;  %v1238_v13 = vmul.f32 %v2566_v10, %v2550_v34 }
 0x47b   : > { %2567 = vrcp.f32 %v1211_v9 }
 0x47c   : > { %v1246_v18 = vpack.c.bf16 %v1238_v13, %v1238_v13 }
 0x47e   : > { %v1266_v20 = vunpack.c.l.b16 %v1246_v18 }
 0x481   : > { %v2568_v16 = vpop.eup %2567  ;;  %833 = vxpose.xlu1.b32.end [2/2] (short) %v766_v14, 128 }
 0x482   : > { %v1239_v17 = vmul.f32 %v2568_v16, %v2552_v37 }
 0x484   : > { %v1247_v19 = vpack.c.bf16 %v1239_v17, %v1239_v17 }
 0x486   : > { %v1267_v21 = vunpack.c.l.b16 %v1247_v19 }
 0x487   : > { %v1214_v22 = vpop.xlane.xlu1 %1213 }
 0x488   : > { %v1268_v23 = vpack.c.b16 %v1267_v21, %v1266_v20  ;;  %2569 = vrcp.f32 %v1214_v22 }
 0x48a   : > { %v1276_v11 = vsel %vm1157_vm8, %v1268_v23, 0 }
 0x48b   : > { %1285 = vmatpush.bf16.xpose.msrb.mxu1 %v1276_v11 }
 0x48e   : > { %v2570_v25 = vpop.eup %2569 }
 0x48f   : > { %v1217_v24 = vpop.xlane.xlu2 %1216  ;;  %v1240_v26 = vmul.f32 %v2570_v25, %v2895_v44 }
 0x490   : > { %2571 = vrcp.f32 %v1217_v24 }
 0x491   : > { %v1248_v29 = vpack.c.bf16 %v1240_v26, %v1240_v26 }
 0x493   : > { %v1309_v31 = vunpack.c.l.b16 %v1248_v29 }
 0x496   : > { %v2572_v27 = vpop.eup %2571 }
 0x497   : > { %v1241_v28 = vmul.f32 %v2572_v27, %v2556_v47 }
 0x499   : > { %v1249_v30 = vpack.c.bf16 %v1241_v28, %v1241_v28 }
 0x49b   : > { %v1310_v32 = vunpack.c.l.b16 %v1249_v30 }
 0x49d   : > { %v1311_v33 = vpack.c.b16 %v1310_v32, %v1309_v31 }
 0x49f   : > { %v1319_v34 = vsel %vm1157_vm8, %v1311_v33, 0 }
 0x4a0   : > { %1328 = vmatpush.bf16.xpose.msrb.mxu2 %v1319_v34 }
 0x4b2   : > { %v1220_v35 = vpop.xlane.xlu1 %1219 }
 0x4b3   : > { %2573 = vrcp.f32 %v1220_v35 }
 0x4b9   : > { %v2574_v37 = vpop.eup %2573 }
 0x4ba   : > { %v1223_v36 = vpop.xlane.xlu2 %1222  ;;  %v1242_v38 = vmul.f32 %v2574_v37, %v2900_v54 }
 0x4bb   : > { %2575 = vrcp.f32 %v1223_v36 }
 0x4bc   : > { %v1250_v41 = vpack.c.bf16 %v1242_v38, %v1242_v38 }
 0x4be   : > { %v1352_v43 = vunpack.c.l.b16 %v1250_v41 }
 0x4c1   : > { %v2576_v39 = vpop.eup %2575 }
 0x4c2   : > { %v1243_v40 = vmul.f32 %v2576_v39, %v2560_v57 }
 0x4c4   : > { %v1251_v42 = vpack.c.bf16 %v1243_v40, %v1243_v40 }
 0x4c6   : > { %v1353_v44 = vunpack.c.l.b16 %v1251_v42 }
 0x4c8   : > { %v1354_v45 = vpack.c.b16 %v1353_v44, %v1352_v43 }
 0x4ca   : > { %v1362_v46 = vsel %vm1157_vm8, %v1354_v45, 0 }
 0x4cb   : > { %1371 = vmatpush.bf16.xpose.msrb.mxu3 %v1362_v46 }
 0x4cc   : > { %v1226_v47 = vpop.xlane.xlu2 %1225 }
 0x4cd   : > { %2577 = vrcp.f32 %v1226_v47 }
 0x4d3   : > { %v2578_v49 = vpop.eup %2577 }
 0x4d4   : > { %v1229_v48 = vpop.xlane.xlu2 %1228  ;;  %v1244_v50 = vmul.f32 %v2578_v49, %v2905_v63 }
 0x4d5   : > { %2579 = vrcp.f32 %v1229_v48 }
 0x4d6   : > { %v1252_v53 = vpack.c.bf16 %v1244_v50, %v1244_v50 }
 0x4d8   : > { %v1395_v55 = vunpack.c.l.b16 %v1252_v53 }
 0x4db   : > { %v2580_v51 = vpop.eup %2579 }
 0x4dc   : > { %v1245_v52 = vmul.f32 %v2580_v51, %v2564_v2 }
 0x4de   : > { %v1253_v54 = vpack.c.bf16 %v1245_v52, %v1245_v52 }
 0x4e0   : > { %v1396_v56 = vunpack.c.l.b16 %v1253_v54 }
 0x4e2   : > { %v1397_v57 = vpack.c.b16 %v1396_v56, %v1395_v55 }
 0x4e4   : > { %v1405_v15 = vsel %vm1157_vm8, %v1397_v57, 0 }
 0x4e5   : > { %1414 = vmatpush.bf16.xpose.msra.mxu0 %v1405_v15 }
 0x51d   : > { %v848_v58 = vpop.trf.xlu1 }
 0x51e   : > { %v912_v59 = vpack.c.bf16 %v848_v58, %v848_v58 }
 0x520   : > { %v1258_v62 = vunpack.c.l.b16 %v912_v59 }
 0x525   : > { %v849_v60 = vpop.trf.xlu1 }
 0x526   : > { %v913_v61 = vpack.c.bf16 %v849_v60, %v849_v60 }
 0x528   : > { %v1259_v0 = vunpack.c.l.b16 %v913_v61 }
 0x52a   : > { %v1262_v1 = vpack.c.b16 %v1259_v0, %v1258_v62  ;;  %v2491_v0 = vld [vmem:[%s3276_s5 + $0x38] sm:$0xff] }
 0x52b   : > { %1527 = vmatpush.bf16.msra.mxu1 %v2491_v0  ;;  %v2497_v0 = vld [vmem:[%s3280_s9 + $0x24] sm:$0xf0] }
 0x52c   : > { %2284 = vmatmul.msk.bf16.vlgmr.msrb.gmra.mxu1 %vm1157_vm8, %v1262_v1 }
 0x52d   : > { %v850_v63 = vpop.trf.xlu1 }
 0x52e   : > { %v914_v3 = vpack.c.bf16 %v850_v63, %v850_v63  ;;  %v2490_v63 = vld [vmem:[%s3276_s5 + $0x30] sm:$0xff] }
 0x52f   : > { %1528 = vmatpush.bf16.msra.mxu1 %v2490_v63 }
 0x530   : > { %v1260_v5 = vunpack.c.l.b16 %v914_v3  ;;  %v2489_v3 = vld [vmem:[%s3276_s5 + $0x28] sm:$0xff] }
 0x533   : > { %1529 = vmatpush.bf16.msra.mxu1 %v2489_v3  ;;  %v2344_v3 = vld [vmem:[%s3280_s9 + $0x28] sm:$0xf0] }
 0x535   : > { %v851_v2 = vpop.trf.xlu1 }
 0x536   : > { %v915_v4 = vpack.c.bf16 %v851_v2, %v851_v2  ;;  %v2488_v2 = vld [vmem:[%s3276_s5 + $0x20] sm:$0xff] }
 0x537   : > { %1530 = vmatpush.bf16.msra.mxu1 %v2488_v2 }
 0x538   : > { %v1261_v6 = vunpack.c.l.b16 %v915_v4 }
 0x53a   : > { %v1263_v7 = vpack.c.b16 %v1261_v6, %v1260_v5  ;;  %v2487_v5 = vld [vmem:[%s3276_s5 + $0x18] sm:$0xff]  ;;  %v2486_v6 = vld [vmem:[%s3276_s5 + $0x10] sm:$0xff] }
 0x53b   : > { %1531 = vmatpush.bf16.msra.mxu1 %v2487_v5  ;;  %v2495_v5 = vld [vmem:[%s3280_s9 + $0x14] sm:$0xf0] }
 0x53c   : > { %2285 = vmatmul.msk.bf16.gmra.mxu1 %vm1157_vm8, %v1263_v7 }
 0x53d   : > { %v852_v9 = vpop.trf.xlu1 }
 0x53e   : > { %v916_v10 = vpack.c.bf16 %v852_v9, %v852_v9 }
 0x53f   : > { %1532 = vmatpush.bf16.msra.mxu1 %v2486_v6  ;;  %v2494_v6 = vld [vmem:[%s3280_s9 + $0x14] sm:$0xf] }
 0x540   : > { %v1301_v14 = vunpack.c.l.b16 %v916_v10  ;;  %v2485_v10 = vld [vmem:[%s3276_s5 + $0x8] sm:$0xff] }
 0x543   : > { %1533 = vmatpush.bf16.msra.mxu1 %v2485_v10  ;;  %v2326_v10 = vld [vmem:[%s3280_s9] sm:$0xf] }
 0x545   : > { %v853_v12 = vpop.trf.xlu1 }
 0x546   : > { %v917_v13 = vpack.c.bf16 %v853_v12, %v853_v12  ;;  %v2484_v12 = vld [vmem:[%s3276_s5] sm:$0xff] }
 0x547   : > { %1534 = vmatpush.bf16.msra.mxu1 %v2484_v12  ;;  %v2493_v12 = vld [vmem:[%s3280_s9 + $0x4] sm:$0xf0] }
 0x548   : > { %v1302_v16 = vunpack.c.l.b16 %v917_v13 }
 0x54a   : > { %v1305_v17 = vpack.c.b16 %v1302_v16, %v1301_v14 }
 0x54c   : > { %2286 = vmatmul.msk.bf16.vlgmr.msrb.gmra.mxu2 %vm1157_vm8, %v1305_v17  ;;  %v2537_v17 = vld [vmem:[%s3277_s6] ss:$0 sm:$0xff] }
 0x54d   : > { %v854_v18 = vpop.trf.xlu1 }
 0x54e   : > { %v918_v19 = vpack.c.bf16 %v854_v18, %v854_v18 }
 0x550   : > { %v1303_v22 = vunpack.c.l.b16 %v918_v19 }
 0x555   : > { %v855_v20 = vpop.trf.xlu1 }
 0x556   : > { %v919_v21 = vpack.c.bf16 %v855_v20, %v855_v20  ;;  %v2597_v20 = vld [vmem:[%s2704_s23] sm:$0xff] }
 0x558   : > { %v1304_v23 = vunpack.c.l.b16 %v919_v21 }
 0x55a   : > { %v1306_v11 = vpack.c.b16 %v1304_v23, %v1303_v22 }
 0x55c   : > { %2287 = vmatmul.msk.bf16.gmra.mxu2 %vm1157_vm8, %v1306_v11  ;;  %v2598_v11 = vld [vmem:[%s2704_s23 + $0x8] sm:$0xff] }
 0x55d   : > { %v856_v24 = vpop.trf.xlu1 }
 0x55e   : > { %v920_v25 = vpack.c.bf16 %v856_v24, %v856_v24 }
 0x560   : > { %v1344_v28 = vunpack.c.l.b16 %v920_v25 }
 0x565   : > { %v857_v26 = vpop.trf.xlu1 }
 0x566   : > { %v921_v27 = vpack.c.bf16 %v857_v26, %v857_v26 }
 0x568   : > { %v1345_v29 = vunpack.c.l.b16 %v921_v27 }
 0x56a   : > { %v1348_v30 = vpack.c.b16 %v1345_v29, %v1344_v28 }
 0x56c   : > { %2288 = vmatmul.msk.bf16.vlgmr.msrb.gmra.mxu3 %vm1157_vm8, %v1348_v30 }
 0x56d   : > { %v858_v31 = vpop.trf.xlu1 }
 0x56e   : > { %v922_v32 = vpack.c.bf16 %v858_v31, %v858_v31 }
 0x570   : > { %v1346_v35 = vunpack.c.l.b16 %v922_v32 }
 0x575   : > { %v859_v33 = vpop.trf.xlu1 }
 0x576   : > { %v923_v34 = vpack.c.bf16 %v859_v33, %v859_v33  ;;  %v2382_v33 = vld [vmem:[%s3280_s9 + $0x70] sm:$0xf] }
 0x578   : > { %v1347_v36 = vunpack.c.l.b16 %v923_v34  ;;  %v2507_v34 = vld [vmem:[%s3280_s9 + $0x74] sm:$0xf0] }
 0x57a   : > { %v1349_v37 = vpack.c.b16 %v1347_v36, %v1346_v35  ;;  %v2506_v35 = vld [vmem:[%s3280_s9 + $0x74] sm:$0xf]  ;;  %v2383_v36 = vor.u32 %v2507_v34, %v2382_v33 }
 0x57c   : > { %2289 = vmatmul.msk.bf16.gmra.mxu3 %vm1157_vm8, %v1349_v37  ;;  %v2384_v37 = vld [vmem:[%s3280_s9 + $0x78] sm:$0xf0]  ;;  %1698 = vmatpush.bf16.msra.mxu2 %v2383_v36 }
 0x57d   : > { %v860_v38 = vpop.trf.xlu1 }
 0x57e   : > { %v924_v39 = vpack.c.bf16 %v860_v38, %v860_v38  ;;  %v2387_v38 = vor.u32 %v2506_v35, %v2384_v37 }
 0x580   : > { %v1387_v42 = vunpack.c.l.b16 %v924_v39  ;;  %1712 = vmatpush.bf16.msra.mxu3 %v2387_v38  ;;  %v2374_v39 = vld [vmem:[%s3280_s9 + $0x60] sm:$0xf] }
 0x585   : > { %v861_v40 = vpop.trf.xlu1 }
 0x586   : > { %v925_v41 = vpack.c.bf16 %v861_v40, %v861_v40  ;;  %v2505_v40 = vld [vmem:[%s3280_s9 + $0x64] sm:$0xf0] }
 0x588   : > { %v1388_v43 = vunpack.c.l.b16 %v925_v41  ;;  %v2504_v41 = vld [vmem:[%s3280_s9 + $0x64] sm:$0xf] }
 0x58a   : > { %v1391_v44 = vpack.c.b16 %v1388_v43, %v1387_v42  ;;  %v2375_v42 = vor.u32 %v2505_v40, %v2374_v39  ;;  %v2376_v43 = vld [vmem:[%s3280_s9 + $0x68] sm:$0xf0] }
 0x58c   : > { %2290 = vmatmul.msk.bf16.vlgmr.msra.gmra.mxu0 %vm1157_vm8, %v1391_v44  ;;  %v2379_v44 = vor.u32 %v2504_v41, %v2376_v43  ;;  %1699 = vmatpush.bf16.msra.mxu2 %v2375_v42  ;;  %v2538_v41 = vld [vmem:[%s3278_s7] ss:$0 sm:$0xff] }
 0x58d   : > { %v862_v45 = vpop.trf.xlu1 }
 0x58e   : > { %v926_v46 = vpack.c.bf16 %v862_v45, %v862_v45  ;;  %1713 = vmatpush.bf16.msra.mxu3 %v2379_v44  ;;  %v2366_v45 = vld [vmem:[%s3280_s9 + $0x50] sm:$0xf] }
 0x590   : > { %v1389_v49 = vunpack.c.l.b16 %v926_v46  ;;  %v2503_v46 = vld [vmem:[%s3280_s9 + $0x54] sm:$0xf0] }
 0x595   : > { %v863_v47 = vpop.trf.xlu1 }
 0x596   : > { %v927_v48 = vpack.c.bf16 %v863_v47, %v863_v47  ;;  %v2502_v47 = vld [vmem:[%s3280_s9 + $0x54] sm:$0xf] }
 0x598   : > { %v1390_v50 = vunpack.c.l.b16 %v927_v48  ;;  %v2367_v48 = vor.u32 %v2503_v46, %v2366_v45  ;;  %v2539_v46 = vld [vmem:[%s3279_s8] ss:$0 sm:$0xff] }
 0x59a   : > { %v1392_v51 = vpack.c.b16 %v1390_v50, %v1389_v49  ;;  %v2368_v49 = vld [vmem:[%s3280_s9 + $0x58] sm:$0xf0]  ;;  %1700 = vmatpush.bf16.msra.mxu2 %v2367_v48 }
 0x59b   : > { %v2371_v50 = vor.u32 %v2502_v47, %v2368_v49 }
 0x59c   : > { %2291 = vmatmul.msk.bf16.gmra.mxu0 %vm1157_vm8, %v1392_v51  ;;  %v2358_v51 = vld [vmem:[%s3280_s9 + $0x40] sm:$0xf] }
 0x59d   : > { %1714 = vmatpush.bf16.msra.mxu3 %v2371_v50 }
 0x5a9   : > { %v1287_v52 = vpop.f32.mrf.mxu1 }
 0x5aa   : > { %1426 = vxpose.xlu2.b32.start [1/16] (narrow) %v1287_v52, 16  ;;  %v2501_v52 = vld [vmem:[%s3280_s9 + $0x44] sm:$0xf0] }
 0x5b1   : > { %v1289_v53 = vpop.f32.mrf.mxu1 }
 0x5b2   : > { %1427 = vxpose.xlu2.b32.cont [2/16] (narrow) %v1289_v53, 16  ;;  %v2500_v53 = vld [vmem:[%s3280_s9 + $0x44] sm:$0xf] }
 0x5b9   : > { %v1292_v54 = vpop.f32.mrf.mxu1 }
 0x5ba   : > { %1428 = vxpose.xlu2.b32.cont [3/16] (narrow) %v1292_v54, 16  ;;  %v2359_v54 = vor.u32 %v2501_v52, %v2358_v51 }
 0x5bc   : > { %1701 = vmatpush.bf16.msra.mxu2 %v2359_v54 }
 0x5c1   : > { %v1294_v55 = vpop.f32.mrf.mxu1 }
 0x5c2   : > { %1429 = vxpose.xlu2.b32.cont [4/16] (narrow) %v1294_v55, 16  ;;  %v2360_v55 = vld [vmem:[%s3280_s9 + $0x48] sm:$0xf0] }
 0x5cf   : > { %v1330_v56 = vpop.f32.mrf.mxu2 }
 0x5d0   : > { %1430 = vxpose.xlu2.b32.cont [5/16] (narrow) %v1330_v56, 16  ;;  %v2363_v56 = vor.u32 %v2500_v53, %v2360_v55 }
 0x5d2   : > { %1715 = vmatpush.bf16.msra.mxu3 %v2363_v56 }
 0x5d7   : > { %v1332_v57 = vpop.f32.mrf.mxu2 }
 0x5d8   : > { %1431 = vxpose.xlu2.b32.cont [6/16] (narrow) %v1332_v57, 16  ;;  %v2350_v57 = vld [vmem:[%s3280_s9 + $0x30] sm:$0xf] }
 0x5df   : > { %v1335_v15 = vpop.f32.mrf.mxu2 }
 0x5e0   : > { %1432 = vxpose.xlu2.b32.cont [7/16] (narrow) %v1335_v15, 16  ;;  %v2499_v15 = vld [vmem:[%s3280_s9 + $0x34] sm:$0xf0] }
 0x5e7   : > { %v1337_v58 = vpop.f32.mrf.mxu2 }
 0x5e8   : > { %1433 = vxpose.xlu2.b32.cont [8/16] (narrow) %v1337_v58, 16  ;;  %v2498_v58 = vld [vmem:[%s3280_s9 + $0x34] sm:$0xf] }
 0x5ef   : > { %v1373_v59 = vpop.f32.mrf.mxu3 }
 0x5f0   : > { %1434 = vxpose.xlu2.b32.cont [9/16] (narrow) %v1373_v59, 16  ;;  %v2351_v59 = vor.u32 %v2499_v15, %v2350_v57 }
 0x5f2   : > { %1702 = vmatpush.bf16.msra.mxu2 %v2351_v59 }
 0x5f7   : > { %v1375_v60 = vpop.f32.mrf.mxu3 }
 0x5f8   : > { %1435 = vxpose.xlu2.b32.cont [10/16] (narrow) %v1375_v60, 16  ;;  %v2352_v60 = vld [vmem:[%s3280_s9 + $0x38] sm:$0xf0] }
 0x5ff   : > { %v1378_v61 = vpop.f32.mrf.mxu3 }
 0x600   : > { %1436 = vxpose.xlu2.b32.cont [11/16] (narrow) %v1378_v61, 16  ;;  %v2355_v61 = vor.u32 %v2498_v58, %v2352_v60 }
 0x602   : > { %1716 = vmatpush.bf16.msra.mxu3 %v2355_v61 }
 0x607   : > { %v1380_v62 = vpop.f32.mrf.mxu3 }
 0x608   : > { %1437 = vxpose.xlu2.b32.cont [12/16] (narrow) %v1380_v62, 16  ;;  %v2342_v62 = vld [vmem:[%s3280_s9 + $0x20] sm:$0xf] }
 0x609   : > { %v1416_v1 = vpop.f32.mrf.mxu0  ;;  %v2343_v63 = vor.u32 %v2497_v0, %v2342_v62 }
 0x60b   : > { %1703 = vmatpush.bf16.msra.mxu2 %v2343_v63 }
 0x610   : > { %1438 = vxpose.xlu2.b32.cont [13/16] (narrow) %v1416_v1, 16  ;;  %v2496_v1 = vld [vmem:[%s3280_s9 + $0x24] sm:$0xf] }
 0x611   : > { %v1418_v4 = vpop.f32.mrf.mxu0  ;;  %v2347_v2 = vor.u32 %v2496_v1, %v2344_v3 }
 0x613   : > { %1717 = vmatpush.bf16.msra.mxu3 %v2347_v2 }
 0x618   : > { %1439 = vxpose.xlu2.b32.cont [14/16] (narrow) %v1418_v4, 16  ;;  %v2334_v4 = vld [vmem:[%s3280_s9 + $0x10] sm:$0xf] }
 0x619   : > { %v1421_v7 = vpop.f32.mrf.mxu0 }
 0x620   : > { %1440 = vxpose.xlu2.b32.cont [15/16] (narrow) %v1421_v7, 16  ;;  %v2335_v7 = vor.u32 %v2495_v5, %v2334_v4 }
 0x621   : > { %v1423_v9 = vpop.f32.mrf.mxu0 }
 0x622   : > { %1704 = vmatpush.bf16.msra.mxu2 %v2335_v7 }
 0x628   : > { %1441 = vxpose.xlu2.b32.end [16/16] (narrow) %v1423_v9, 16  ;;  %v2336_v9 = vld [vmem:[%s3280_s9 + $0x18] sm:$0xf0] }
 0x649   : > { %v1442_v13 = vpop.trf.xlu2 }
 0x651   : > { %v1443_v14 = vpop.trf.xlu2 }
 0x652   : > { %v1458_v16 = vpack.c.bf16 %v1443_v14, %v1442_v13  ;;  %v2339_v14 = vor.u32 %v2494_v6, %v2336_v9 }
 0x654   : > { %1535 = vmatmul.bf16.vlgmr.msra.gmra.mxu1 %v1458_v16  ;;  %v2492_v16 = vld [vmem:[%s3280_s9 + $0x4] sm:$0xf]  ;;  %1718 = vmatpush.bf16.msra.mxu3 %v2339_v14  ;;  %v2523_v14 = vld [vmem:[%s3282_s11 + $0x78] sm:$0xff] }
 0x655   : > { %2050 = vmatpush.bf16.msrb.mxu1 %v2523_v14 }
 0x6d1   : > { %v1536_v18 = vpop.f32.mrf.mxu1 }
 0x6d2   : > { %v1537_v19 = vadd.f32 %v2537_v17, %v1536_v18 }
 0x6d4   : > { %v2954_v21 = vadd.f32 %v2597_v20, %v1537_v19  ;;  %v2327_v19 = vor.u32 %v2493_v12, %v2326_v10 }
 0x6d6   : > { %1545 = vadd.xlane.f32.xlu0 %v2954_v21  ;;  %1705 = vmatpush.bf16.msra.mxu2 %v2327_v19 }
 0x6d9   : > { %v1538_v22 = vpop.f32.mrf.mxu1 }
 0x6da   : > { %v1539_v23 = vadd.f32 %v2537_v17, %v1538_v22  ;;  %v2328_v17 = vld [vmem:[%s3280_s9 + $0x8] sm:$0xf0] }
 0x6db   : > { %v2331_v20 = vor.u32 %v2492_v16, %v2328_v17 }
 0x6dc   : > { %v2958_v24 = vadd.f32 %v2598_v11, %v1539_v23 }
 0x6dd   : > { %1719 = vmatpush.bf16.msra.mxu3 %v2331_v20 }
 0x6de   : > { %1547 = vadd.xlane.f32.xlu0 %v2958_v24 }
 0x749   : > { %v1546_v25 = vpop.xlane.xlu0 %1545 }
 0x74a   : > { %v1549_v26 = vmul.f32 %v1546_v25, %v2708_v8 }
 0x74c   : > { %v2963_v27 = vsub.f32 %v2954_v21, %v1549_v26 }
 0x74e   : > { %v1553_v28 = vmul.f32 %v2963_v27, %v2963_v27 }
 0x750   : > { %1555 = vadd.xlane.f32.xlu0 %v1553_v28 }
 0x751   : > { %v1548_v29 = vpop.xlane.xlu0 %1547 }
 0x752   : > { %v1550_v30 = vmul.f32 %v1548_v29, %v2708_v8 }
 0x754   : > { %v2969_v31 = vsub.f32 %v2958_v24, %v1550_v30 }
 0x756   : > { %v1554_v32 = vmul.f32 %v2969_v31, %v2969_v31 }
 0x758   : > { %1557 = vadd.xlane.f32.xlu0 %v1554_v32 }
 0x7c3   : > { %v1556_v13 = vpop.xlane.xlu0 %1555 }
 0x7c4   : > { %v1559_v18 = vmul.f32 %v1556_v13, %v2708_v8  ;;  %v2515_v13 = vld [vmem:[%s3282_s11 + $0x38] sm:$0xff] }
 0x7c5   : > { %2036 = vmatpush.bf16.msrb.mxu0 %v2515_v13 }
 0x7c6   : > { %v1561_v22 = vadd.f32 1e-05, %v1559_v18 }
 0x7c8   : > { %2581 = vrsqrt.f32 %v1561_v22  ;;  %vm1569_vm10 = vweird.f32 %v1561_v22 }
 0x7cb   : > { %v1558_v23 = vpop.xlane.xlu0 %1557 }
 0x7cc   : > { %v1560_v11 = vmul.f32 %v1558_v23, %v2708_v8 }
 0x7ce   : > { %v2582_v25 = vpop.eup %2581  ;;  %v1562_v26 = vadd.f32 1e-05, %v1560_v11  ;;  %v2514_v11 = vld [vmem:[%s3282_s11 + $0x30] sm:$0xff] }
 0x7cf   : > { %v1564_v28 = vmul.f32 %v2582_v25, %v1561_v22  ;;  %vm1570_vm9 = vweird.f32 %v2582_v25  ;;  %2037 = vmatpush.bf16.msrb.mxu0 %v2514_v11 }
 0x7d0   : > { %2583 = vrsqrt.f32 %v1562_v26  ;;  %vm1571_vm11 = vmor %vm1569_vm10, %vm1570_vm9  ;;  %vm1579_vm13 = vweird.f32 %v1562_v26 }
 0x7d1   : > { %v1565_v29 = vmul.f32 %v2582_v25, %v1564_v28 }
 0x7d3   : > { %v1566_v30 = vmul.f32 0.5, %v1565_v29 }
 0x7d5   : > { %v1567_v32 = vsub.f32 1.5, %v1566_v30 }
 0x7d6   : > { %v2584_v33 = vpop.eup %2583 }
 0x7d7   : > { %v1568_v34 = vmul.f32 %v2582_v25, %v1567_v32  ;;  %v1574_v35 = vmul.f32 %v2584_v33, %v1562_v26  ;;  %vm1580_vm12 = vweird.f32 %v2584_v33 }
 0x7d8   : > { %vm1581_vm14 = vmor %vm1579_vm13, %vm1580_vm12 }
 0x7d9   : > { %v1575_v36 = vmul.f32 %v2584_v33, %v1574_v35  ;;  %v1572_v37 = vsel %vm1571_vm11, %v2582_v25, %v1568_v34  ;;  %v2522_v25 = vld [vmem:[%s3282_s11 + $0x70] sm:$0xff] }
 0x7da   : > { %v1583_v40 = vmul.f32 %v1572_v37, %v2963_v27  ;;  %v1612_v27 = vld [vmem:[%s3281_s10] sm:$0x3]  ;;  %2051 = vmatpush.bf16.msrb.mxu1 %v2522_v25 }
 0x7db   : > { %v1576_v38 = vmul.f32 0.5, %v1575_v36  ;;  %v1614_v51 = vperm.slane %v1612_v27, 0  ;;  %v1615_v52 = vperm.slane %v1612_v27, 1 }
 0x7dc   : > { %v1588_v45 = vmul.f32 %v2538_v41, %v1583_v40 }
 0x7dd   : > { %v1577_v39 = vsub.f32 1.5, %v1576_v38 }
 0x7de   : > { %v1593_v48 = vadd.f32 %v2539_v46, %v1588_v45 }
 0x7df   : > { %v1578_v42 = vmul.f32 %v2584_v33, %v1577_v39 }
 0x7e1   : > { %v1582_v43 = vsel %vm1581_vm14, %v2584_v33, %v1578_v42  ;;  %v2513_v42 = vld [vmem:[%s3282_s11 + $0x28] sm:$0xff] }
 0x7e2   : > { %v1584_v44 = vmul.f32 %v1582_v43, %v2969_v31  ;;  %v2521_v43 = vld [vmem:[%s3282_s11 + $0x68] sm:$0xff]  ;;  %2038 = vmatpush.bf16.msrb.mxu0 %v2513_v42 }
 0x7e3   : > { %2052 = vmatpush.bf16.msrb.mxu1 %v2521_v43 }
 0x7e4   : > { %v1589_v47 = vmul.f32 %v2538_v41, %v1584_v44 }
 0x7e6   : > { %v1594_v49 = vadd.f32 %v2539_v46, %v1589_v47 }
 0x7e8   : > { %v1595_v50 = vpack.c.bf16 %v1594_v49, %v1593_v48 }
 0x7ea   : > { %1706 = vmatmul.bf16.vlgmr.msra.gmra.mxu2 %v1595_v50  ;;  %1720 = vmatmul.bf16.vlgmr.msra.gmra.mxu3 %v1595_v50 }
 0x86d   : > { %v1707_v53 = vpop.f32.mrf.mxu2  ;;  %v1721_v54 = vpop.f32.mrf.mxu3 }
 0x86e   : > { %v3082_v31 = vadd.f32 %v1707_v53, %v1614_v51  ;;  %v3084_v55 = vadd.f32 %v1721_v54, %v1615_v52  ;;  %v2512_v54 = vld [vmem:[%s3282_s11 + $0x20] sm:$0xff] }
 0x86f   : > { %2039 = vmatpush.bf16.msrb.mxu0 %v2512_v54 }
 0x870   : > { %v3087_v56 = vmul.f32 0.70710677, %v3082_v31  ;;  %v3090_v57 = vmul.f32 0.70710677, %v3084_v55 }
 0x872   : > { %v1734_v15 = vmul.f32 %v3087_v56, %v3087_v56  ;;  %v1774_v58 = vmul.f32 %v3090_v57, %v3090_v57 }
 0x874   : > { %v3096_v59 = vmin.f32 %v1734_v15, 16.0  ;;  %v3098_v60 = vmin.f32 %v1774_v58, 16.0  ;;  %v2520_v15 = vld [vmem:[%s3282_s11 + $0x60] sm:$0xff] }
 0x875   : > { %v1709_v61 = vpop.f32.mrf.mxu2  ;;  %v1723_v62 = vpop.f32.mrf.mxu3  ;;  %2053 = vmatpush.bf16.msrb.mxu1 %v2520_v15 }
 0x876   : > { %v1736_v0 = vmul.f32 2.1237322e-06, %v3096_v59  ;;  %v1747_v1 = vmul.f32 3.8918573e-05, %v3096_v59  ;;  %v3102_v63 = vadd.f32 %v1709_v61, %v1614_v51  ;;  %v1787_v3 = vmul.f32 3.8918573e-05, %v3098_v60 }
 0x877   : > { %v3105_v2 = vadd.f32 %v1723_v62, %v1615_v52  ;;  %v1776_v10 = vmul.f32 2.1237322e-06, %v3098_v60 }
 0x878   : > { %v1737_v4 = vadd.f32 0.00028619796, %v1736_v0  ;;  %v1748_v5 = vadd.f32 0.001143296, %v1747_v1  ;;  %v1788_v6 = vadd.f32 0.001143296, %v1787_v3 }
 0x879   : > { %v3108_v7 = vmul.f32 0.70710677, %v3102_v63  ;;  %v3113_v12 = vmul.f32 0.70710677, %v3105_v2  ;;  %v1777_v28 = vadd.f32 0.00028619796, %v1776_v10 }
 0x87a   : > { %v1749_v9 = vmul.f32 %v1748_v5, %v3096_v59  ;;  %v1789_v16 = vmul.f32 %v1788_v6, %v3098_v60  ;;  %v1738_v18 = vmul.f32 %v1737_v4, %v3096_v59  ;;  %v2511_v4 = vld [vmem:[%s3282_s11 + $0x18] sm:$0xff] }
 0x87b   : > { %v1814_v17 = vmul.f32 %v3108_v7, %v3108_v7  ;;  %v1854_v20 = vmul.f32 %v3113_v12, %v3113_v12  ;;  %v1778_v40 = vmul.f32 %v1777_v28, %v3098_v60  ;;  %v2519_v10 = vld [vmem:[%s3282_s11 + $0x58] sm:$0xff]  ;;  %2040 = vmatpush.bf16.msrb.mxu0 %v2511_v4 }
 0x87c   : > { %v1750_v19 = vadd.f32 0.014752088, %v1749_v9  ;;  %v1790_v22 = vadd.f32 0.014752088, %v1789_v16  ;;  %v1739_v34 = vadd.f32 0.0036580483, %v1738_v18  ;;  %2054 = vmatpush.bf16.msrb.mxu1 %v2519_v10 }
 0x87d   : > { %v3127_v23 = vmin.f32 %v1814_v17, 16.0  ;;  %v3136_v29 = vmin.f32 %v1854_v20, 16.0  ;;  %v1779_v52 = vadd.f32 0.0036580483, %v1778_v40  ;;  %v2510_v18 = vld [vmem:[%s3282_s11 + $0x10] sm:$0xff] }
 0x87e   : > { %v1751_v26 = vmul.f32 %v1750_v19, %v3096_v59  ;;  %v1791_v30 = vmul.f32 %v1790_v22, %v3098_v60  ;;  %v1740_v48 = vmul.f32 %v1739_v34, %v3096_v59  ;;  %v2518_v19 = vld [vmem:[%s3282_s11 + $0x50] sm:$0xff]  ;;  %v2509_v34 = vld [vmem:[%s3282_s11 + $0x8] sm:$0xff] }
 0x87f   : > { %v1816_v32 = vmul.f32 2.1237322e-06, %v3127_v23  ;;  %v1827_v33 = vmul.f32 3.8918573e-05, %v3127_v23  ;;  %v1856_v41 = vmul.f32 2.1237322e-06, %v3136_v29  ;;  %v1780_v14 = vmul.f32 %v1779_v52, %v3098_v60  ;;  %2041 = vmatpush.bf16.msrb.mxu0 %v2510_v18 }
 0x880   : > { %v1752_v35 = vadd.f32 0.112945676, %v1751_v26  ;;  %v1792_v36 = vadd.f32 0.112945676, %v1791_v30  ;;  %v1867_v47 = vmul.f32 3.8918573e-05, %v3136_v29  ;;  %2055 = vmatpush.bf16.msrb.mxu1 %v2518_v19 }
 0x881   : > { %v1817_v37 = vadd.f32 0.00028619796, %v1816_v32  ;;  %v1828_v38 = vadd.f32 0.001143296, %v1827_v33  ;;  %v1857_v62 = vadd.f32 0.00028619796, %v1856_v41 }
 0x882   : > { %v1753_v39 = vmul.f32 %v1752_v35, %v3096_v59  ;;  %v1793_v44 = vmul.f32 %v1792_v36, %v3098_v60  ;;  %v1868_v0 = vadd.f32 0.001143296, %v1867_v47  ;;  %v1741_v1 = vadd.f32 0.05243302, %v1740_v48  ;;  %v2517_v35 = vld [vmem:[%s3282_s11 + $0x48] sm:$0xff]  ;;  %v2508_v48 = vld [vmem:[%s3282_s11] sm:$0xff] }
 0x883   : > { %v1818_v45 = vmul.f32 %v1817_v37, %v3127_v23  ;;  %v1829_v46 = vmul.f32 %v1828_v38, %v3127_v23  ;;  %v1858_v16 = vmul.f32 %v1857_v62, %v3136_v29  ;;  %v1781_v25 = vadd.f32 0.05243302, %v1780_v14  ;;  %2042 = vmatpush.bf16.msrb.mxu0 %v2509_v34 }
 0x884   : > { %v1754_v49 = vadd.f32 0.4994258, %v1753_v39  ;;  %v1794_v50 = vadd.f32 0.4994258, %v1793_v44  ;;  %v1869_v9 = vmul.f32 %v1868_v0, %v3136_v29  ;;  %v1742_v17 = vmul.f32 %v1741_v1, %v3096_v59  ;;  %2056 = vmatpush.bf16.msrb.mxu1 %v2517_v35 }
 0x885   : > { %v1830_v27 = vadd.f32 0.014752088, %v1829_v46  ;;  %v1819_v53 = vadd.f32 0.0036580483, %v1818_v45  ;;  %v1859_v28 = vadd.f32 0.0036580483, %v1858_v16  ;;  %v1782_v43 = vmul.f32 %v1781_v25, %v3098_v60 }
 0x886   : > { %v1755_v51 = vmul.f32 %v1754_v49, %v3096_v59  ;;  %v1795_v58 = vmul.f32 %v1794_v50, %v3098_v60  ;;  %v1870_v22 = vadd.f32 0.014752088, %v1869_v9  ;;  %v1743_v33 = vadd.f32 0.18741608, %v1742_v17  ;;  %v2516_v49 = vld [vmem:[%s3282_s11 + $0x40] sm:$0xff] }
 0x887   : > { %v1831_v61 = vmul.f32 %v1830_v27, %v3127_v23  ;;  %v1820_v13 = vmul.f32 %v1819_v53, %v3127_v23  ;;  %v1860_v45 = vmul.f32 %v1859_v28, %v3136_v29  ;;  %v1783_v54 = vadd.f32 0.18741608, %v1782_v43  ;;  %2043 = vmatpush.bf16.msrb.mxu0 %v2508_v48 }
 0x888   : > { %v3164_v3 = vadd.f32 1.0, %v1755_v51  ;;  %v3169_v5 = vadd.f32 1.0, %v1795_v58  ;;  %v1871_v30 = vmul.f32 %v1870_v22, %v3136_v29  ;;  %v1744_v46 = vmul.f32 %v1743_v33, %v3096_v59  ;;  %2057 = vmatpush.bf16.msrb.mxu1 %v2516_v49 }
 0x889   : > { %v1832_v6 = vadd.f32 0.112945676, %v1831_v61  ;;  %v1821_v11 = vadd.f32 0.05243302, %v1820_v13  ;;  %v1861_v15 = vadd.f32 0.05243302, %v1860_v45 }
 0x88a   : > { %2585 = vrcp.f32 %v3164_v3  ;;  %v1872_v41 = vadd.f32 0.112945676, %v1871_v30  ;;  %v1768_v59 = vand.u32 2147483648, %v3164_v3  ;;  %v1745_v58 = vadd.f32 1.1283791, %v1744_v46 }
 0x88b   : > { %2587 = vrcp.f32 %v3169_v5  ;;  %v1833_v20 = vmul.f32 %v1832_v6, %v3127_v23  ;;  %v1822_v40 = vmul.f32 %v1821_v11, %v3127_v23  ;;  %vm1762_vm0 = vweird.f32 %v3164_v3 }
 0x88c   : > { %v1873_v47 = vmul.f32 %v1872_v41, %v3136_v29  ;;  %v1766_v61 = vand.u32 2147483647, %v3164_v3  ;;  %v1769_v10 = vor.u32 1.1754944e-38, %v1768_v59  ;;  %v1862_v13 = vmul.f32 %v1861_v15, %v3136_v29 }
 0x88d   : > { %v1834_v26 = vadd.f32 0.4994258, %v1833_v20  ;;  %v1823_v51 = vadd.f32 0.18741608, %v1822_v40  ;;  %v1746_v14 = vmul.f32 %v1745_v58, %v3087_v56  ;;  %v1808_v19 = vand.u32 2147483648, %v3169_v5 }
 0x88e   : > { %v1874_v52 = vadd.f32 0.4994258, %v1873_v47  ;;  %vm1767_vm2 = vcmp.eq.f32.partialorder %v1766_v61, 8.507059e+37  ;;  %vm1802_vm4 = vweird.f32 %v3169_v5  ;;  %v1863_v25 = vadd.f32 0.18741608, %v1862_v13 }
 0x88f   : > { %v1835_v38 = vmul.f32 %v1834_v26, %v3127_v23  ;;  %v1824_v4 = vmul.f32 %v1823_v51, %v3127_v23  ;;  %v1806_v23 = vand.u32 2147483647, %v3169_v5  ;;  %v1809_v33 = vor.u32 1.1754944e-38, %v1808_v19 }
 0x890   : > { %v2586_v32 = vpop.eup %2585  ;;  %v1875_v62 = vmul.f32 %v1874_v52, %v3136_v29  ;;  %v1728_v51 = vmul.f32 0.5, %v3102_v63  ;;  %v1727_v63 = vmul.f32 0.5, %v3084_v55 }
 0x891   : > { %v3195_v36 = vpop.eup %2587  ;;  %v1758_v37 = vmul.f32 %v2586_v32, %v3164_v3  ;;  %v1836_v44 = vadd.f32 1.0, %v1835_v38  ;;  %vm1763_vm15 = vweird.f32 %v2586_v32  ;;  %v1784_v3 = vmul.f32 %v1783_v54, %v3098_v60 }
 0x892   : > { %v1798_v39 = vmul.f32 %v3195_v36, %v3169_v5  ;;  %vm1764_vm1 = vmor %vm1762_vm0, %vm1763_vm15  ;;  %v3218_v6 = vadd.f32 1.0, %v1875_v62  ;;  %vm1803_vm3 = vweird.f32 %v3195_v36  ;;  %v1825_v20 = vadd.f32 1.1283791, %v1824_v4 }
 0x893   : > { %v1759_v42 = vsub.f32 1.0, %v1758_v37  ;;  %2589 = vrcp.f32 %v1836_v44  ;;  %v1846_v56 = vand.u32 2147483647, %v1836_v44  ;;  %v1848_v11 = vand.u32 2147483648, %v1836_v44  ;;  %vm3229_vm5 = vmor %vm1802_vm4, %vm1803_vm3 }
 0x894   : > { %v1799_v27 = vsub.f32 1.0, %v1798_v39  ;;  %2591 = vrcp.f32 %v3218_v6  ;;  %v1785_v30 = vadd.f32 1.1283791, %v1784_v3  ;;  %vm1807_vm7 = vcmp.eq.f32.partialorder %v1806_v23, 8.507059e+37  ;;  %v2540_v3 = vld [vmem:[%s3283_s12] ss:$0 sm:$0xff] }
 0x895   : > { %v1760_v50 = vmul.f32 %v2586_v32, %v1759_v42  ;;  %vm1842_vm8 = vweird.f32 %v1836_v44  ;;  %v1826_v35 = vmul.f32 %v1825_v20, %v3108_v7  ;;  %vm1847_vm10 = vcmp.eq.f32.partialorder %v1846_v56, 8.507059e+37 }
 0x896   : > { %v1800_v0 = vmul.f32 %v3195_v36, %v1799_v27  ;;  %v1849_v37 = vor.u32 1.1754944e-38, %v1848_v11  ;;  %v1864_v38 = vmul.f32 %v1863_v25, %v3136_v29  ;;  %v1786_v43 = vmul.f32 %v1785_v30, %v3090_v57 }
 0x897   : > { %v1761_v53 = vadd.f32 %v2586_v32, %v1760_v50  ;;  %v1886_v48 = vand.u32 2147483647, %v3218_v6  ;;  %v1888_v7 = vand.u32 2147483648, %v3218_v6  ;;  %v1726_v29 = vmul.f32 0.5, %v3082_v31 }
 0x898   : > { %v1801_v18 = vadd.f32 %v3195_v36, %v1800_v0  ;;  %vm1882_vm12 = vweird.f32 %v3218_v6 }
 0x899   : > { %v1765_v1 = vsel %vm1764_vm1, %v2586_v32, %v1761_v53  ;;  %v2590_v9 = vpop.eup %2589  ;;  %v1889_v54 = vor.u32 1.1754944e-38, %v1888_v7  ;;  %vm1887_vm14 = vcmp.eq.f32.partialorder %v1886_v48, 8.507059e+37 }
 0x89a   : > { %v1838_v16 = vmul.f32 %v2590_v9, %v1836_v44  ;;  %v1770_v17 = vsel %vm1767_vm2, %v1769_v10, %v1765_v1  ;;  %vm1843_vm6 = vweird.f32 %v2590_v9  ;;  %v1805_v32 = vsel %vm3229_vm5, %v3195_v36, %v1801_v18  ;;  %v2592_v5 = vpop.eup %2591 }
 0x89b   : > { %v1771_v60 = vmul.f32 %v1770_v17, %v1746_v14  ;;  %vm1844_vm9 = vmor %vm1842_vm8, %vm1843_vm6  ;;  %v1810_v40 = vsel %vm1807_vm7, %v1809_v33, %v1805_v32  ;;  %v1878_v42 = vmul.f32 %v2592_v5, %v3218_v6  ;;  %v1865_v44 = vadd.f32 1.1283791, %v1864_v38 }
 0x89c   : > { %v1839_v22 = vsub.f32 1.0, %v1838_v16  ;;  %v1811_v47 = vmul.f32 %v1810_v40, %v1786_v43  ;;  %vm1883_vm11 = vweird.f32 %v2592_v5 }
 0x89d   : > { %v2388_v39 = vclamps-f32 %v1771_v60, 1.0  ;;  %v1879_v46 = vsub.f32 1.0, %v1878_v42  ;;  %v1866_v59 = vmul.f32 %v1865_v44, %v3113_v12  ;;  %vm1884_vm13 = vmor %vm1882_vm12, %vm1883_vm11 }
 0x89e   : > { %v1840_v28 = vmul.f32 %v2590_v9, %v1839_v22  ;;  %v2389_v57 = vclamps-f32 %v1811_v47, 1.0  ;;  %v2542_v47 = vld [vmem:[%s3285_s14] ss:$0 sm:$0xff] }
 0x89f   : > { %v1894_v49 = vadd.f32 1.0, %v2388_v39  ;;  %v1880_v27 = vmul.f32 %v2592_v5, %v1879_v46 }
 0x8a0   : > { %v1841_v34 = vadd.f32 %v2590_v9, %v1840_v28  ;;  %v1895_v4 = vadd.f32 1.0, %v2389_v57 }
 0x8a1   : > { %v1881_v53 = vadd.f32 %v2592_v5, %v1880_v27  ;;  %v1898_v15 = vmul.f32 %v1894_v49, %v1726_v29 }
 0x8a2   : > { %v1845_v41 = vsel %vm1844_vm9, %v2590_v9, %v1841_v34  ;;  %v1729_v9 = vmul.f32 0.5, %v3105_v2  ;;  %v1899_v10 = vmul.f32 %v1895_v4, %v1727_v63 }
 0x8a3   : > { %v1850_v36 = vsel %vm1847_vm10, %v1849_v37, %v1845_v41  ;;  %v1885_v61 = vsel %vm1884_vm13, %v2592_v5, %v1881_v53 }
 0x8a4   : > { %v1851_v45 = vmul.f32 %v1850_v36, %v1826_v35  ;;  %v1890_v62 = vsel %vm1887_vm14, %v1889_v54, %v1885_v61 }
 0x8a5   : > { %v1891_v1 = vmul.f32 %v1890_v62, %v1866_v59 }
 0x8a6   : > { %v2390_v50 = vclamps-f32 %v1851_v45, 1.0  ;;  %v2541_v45 = vld [vmem:[%s3284_s13] ss:$0 sm:$0xff] }
 0x8a7   : > { %v2391_v31 = vclamps-f32 %v1891_v1, 1.0 }
 0x8a8   : > { %v1896_v52 = vadd.f32 1.0, %v2390_v50 }
 0x8a9   : > { %v1897_v6 = vadd.f32 1.0, %v2391_v31 }
 0x8aa   : > { %v1900_v58 = vmul.f32 %v1896_v52, %v1728_v51 }
 0x8ab   : > { %v1901_v13 = vmul.f32 %v1897_v6, %v1729_v9 }
 0x8ac   : > { %v1902_v0 = vpack.c.bf16 %v1900_v58, %v1898_v15 }
 0x8ad   : > { %v1903_v12 = vpack.c.bf16 %v1901_v13, %v1899_v10 }
 0x8ae   : > { %2044 = vmatmul.bf16.vlgmr.msrb.gmra.mxu0 %v1902_v0 }
 0x8af   : > { %2058 = vmatmul.bf16.vlgmr.msrb.gmra.mxu1 %v1903_v12 }
 0x92b   : > { %v2045_v14 = vpop.f32.mrf.mxu0 }
 0x92c   : > { %v2046_v16 = vadd.f32 %v2540_v3, %v2045_v14  ;;  %v2059_v17 = vpop.f32.mrf.mxu1 }
 0x92e   : > { %v2060_v18 = vadd.f32 %v2059_v17, %v2046_v16 }
 0x930   : > { %v2064_v19 = vadd.f32 %v2060_v18, %v2954_v21 }
 0x932   : > { %2068 = vadd.xlane.f32.xlu0 %v2064_v19 }
 0x933   : > { %v2047_v23 = vpop.f32.mrf.mxu0 }
 0x934   : > { %v2048_v55 = vadd.f32 %v2540_v3, %v2047_v23  ;;  %v2061_v20 = vpop.f32.mrf.mxu1 }
 0x936   : > { %v2062_v2 = vadd.f32 %v2061_v20, %v2048_v55 }
 0x938   : > { %v2065_v22 = vadd.f32 %v2062_v2, %v2958_v24 }
 0x93a   : > { %2070 = vadd.xlane.f32.xlu1 %v2065_v22 }
 0x9a5   : > { %v2069_v56 = vpop.xlane.xlu0 %2068 }
 0x9a6   : > { %v2072_v11 = vmul.f32 %v2069_v56, %v2708_v8 }
 0x9a8   : > { %v2074_v25 = vsub.f32 %v2064_v19, %v2072_v11 }
 0x9aa   : > { %v2076_v60 = vmul.f32 %v2074_v25, %v2074_v25 }
 0x9ac   : > { %2078 = vadd.xlane.f32.xlu0 %v2076_v60 }
 0x9ad   : > { %v2071_v26 = vpop.xlane.xlu1 %2070 }
 0x9ae   : > { %v2073_v28 = vmul.f32 %v2071_v26, %v2708_v8 }
 0x9b0   : > { %v2075_v30 = vsub.f32 %v2065_v22, %v2073_v28 }
 0x9b2   : > { %v2077_v32 = vmul.f32 %v2075_v30, %v2075_v30 }
 0x9b4   : > { %2080 = vadd.xlane.f32.xlu0 %v2077_v32 }
 0xa1f   : > { %v2079_v21 = vpop.xlane.xlu0 %2078 }
 0xa20   : > { %v2082_v33 = vmul.f32 %v2079_v21, %v2708_v8 }
 0xa22   : > { %v2084_v34 = vadd.f32 1e-05, %v2082_v33 }
 0xa24   : > { %2593 = vrsqrt.f32 %v2084_v34  ;;  %vm2092_vm0 = vweird.f32 %v2084_v34 }
 0xa27   : > { %v2081_v5 = vpop.xlane.xlu0 %2080 }
 0xa28   : > { %v2083_v24 = vmul.f32 %v2081_v5, %v2708_v8 }
 0xa2a   : > { %v2594_v35 = vpop.eup %2593  ;;  %v2085_v37 = vadd.f32 1e-05, %v2083_v24 }
 0xa2b   : > { %v2087_v38 = vmul.f32 %v2594_v35, %v2084_v34  ;;  %vm2093_vm15 = vweird.f32 %v2594_v35 }
 0xa2c   : > { %2595 = vrsqrt.f32 %v2085_v37  ;;  %vm2094_vm1 = vmor %vm2092_vm0, %vm2093_vm15  ;;  %vm2102_vm3 = vweird.f32 %v2085_v37 }
 0xa2d   : > { %v2088_v39 = vmul.f32 %v2594_v35, %v2087_v38 }
 0xa2f   : > { %v2089_v40 = vmul.f32 0.5, %v2088_v39 }
 0xa31   : > { %v2090_v41 = vsub.f32 1.5, %v2089_v40 }
 0xa32   : > { %v2596_v42 = vpop.eup %2595 }
 0xa33   : > { %v2091_v43 = vmul.f32 %v2594_v35, %v2090_v41  ;;  %v2097_v36 = vmul.f32 %v2596_v42, %v2085_v37  ;;  %vm2103_vm2 = vweird.f32 %v2596_v42 }
 0xa34   : > { %vm2104_vm4 = vmor %vm2102_vm3, %vm2103_vm2 }
 0xa35   : > { %v2095_v46 = vsel %vm2094_vm1, %v2594_v35, %v2091_v43  ;;  %v2098_v8 = vmul.f32 %v2596_v42, %v2097_v36 }
 0xa36   : > { %v2106_v44 = vmul.f32 %v2095_v46, %v2074_v25 }
 0xa37   : > { %v2099_v48 = vmul.f32 0.5, %v2098_v8 }
 0xa38   : > { %v2111_v7 = vmul.f32 %v2541_v45, %v2106_v44 }
 0xa39   : > { %v2100_v49 = vsub.f32 1.5, %v2099_v48 }
 0xa3a   : > { %v2116_v50 = vadd.f32 %v2542_v47, %v2111_v7 }
 0xa3b   : > { %v2101_v27 = vmul.f32 %v2596_v42, %v2100_v49 }
 0xa3c   : > { %2118 = vst [vmem:[%s494_s24] sm:$0xff] %v2116_v50 }
 0xa3d   : > { %v2105_v29 = vsel %vm2104_vm4, %v2596_v42, %v2101_v27 }
 0xa3e   : > { %v2107_v51 = vmul.f32 %v2105_v29, %v2075_v30 }
 0xa40   : > { %v2112_v52 = vmul.f32 %v2541_v45, %v2107_v51 }
 0xa42   : > { %v2117_v53 = vadd.f32 %v2542_v47, %v2112_v52 }
 0xa44   : > { %2119 = vst [vmem:[%s494_s24 + $0x8] sm:$0xff] %v2117_v53 }
 0xa45 PF: > { %s25_s18 = sadd.s32 1, %s2605_s18  }
 0xa46   : > { %p22_p4 = scmp.ge.s32.totalorder %s25_s18, 4  }
 0xa48   :  { %24 = sbr.rel (!%p22_p4) target bundleno = 1 (0x1), region = 110 }

// kernel: dasheng_blocks_forward.2
= control target key start
LH: loop header
LB: loop body
LE: loop exit
PB: predicated region body
PF: predicated region fallthrough
CT: control target
= control target key end

     0   :  { %s3183_s0 = inlined_call_operand.vmem [shape: f32[2,16,128], index: 0, kind: input, shape index: {}, may-alias: {0,13}]   ;;  %s3184_s1 = inlined_call_operand.vmem [shape: f32[1,128], index: 1, kind: input, shape index: {}]   ;;  %s3185_s2 = inlined_call_operand.vmem [shape: f32[1,128], index: 2, kind: input, shape index: {}]   ;;  %s3186_s3 = inlined_call_operand.hbm [shape: bf16[128,384], index: 3, kind: input, shape index: {}]   ;;  %s3187_s4 = inlined_call_operand.vmem [shape: f32[1,384], index: 4, kind: input, shape index: {}]   ;;  %s3188_s5 = inlined_call_operand.hbm [shape: bf16[128,128], index: 5, kind: input, shape index: {}]   ;;  %s3189_s6 = inlined_call_operand.vmem [shape: f32[1,128], index: 6, kind: input, shape index: {}]   ;;  %s3190_s7 = inlined_call_operand.vmem [shape: f32[1,128], index: 7, kind: input, shape index: {}]   ;;  %s3191_s8 = inlined_call_operand.vmem [shape: f32[1,128], index: 8, kind: input, shape index: {}]   ;;  %s3192_s9 = inlined_call_operand.hbm [shape: bf16[128,256], index: 9, kind: input, shape index: {}]   ;;  %s3193_s10 = inlined_call_operand.vmem [shape: f32[1,256], index: 10, kind: input, shape index: {}]   ;;  %s3194_s11 = inlined_call_operand.hbm [shape: bf16[256,128], index: 11, kind: input, shape index: {}]   ;;  %s3195_s12 = inlined_call_operand.vmem [shape: f32[1,128], index: 12, kind: input, shape index: {}]   ;;  %s3196_s13 = inlined_call_operand.vmem [shape: f32[2,16,128], index: 13, kind: output, shape index: {}, may-alias: {0,13}]  }
   0x1   :  { %3198 = sst [smem:[#allocation13_spill]] %s3186_s3 }
   0x2   :  { %3199 = sst [smem:[#allocation14_spill]] %s3188_s5 }
   0x3   :  { %3200 = sst [smem:[#allocation15_spill]] %s3196_s13 }
   0x4   :  { %18 = vsyncpa [#allocation3], 0 }
   0x5   :  { %19 = vsyncpa [#allocation5], 0 }
   0x6   :  { %20 = vsyncpa [#allocation8], 0  ;;  %s2871_s25 = smov 0  }
   0x7 LB: > { %3201 = sst [smem:[#allocation12_spill]] %s2788_s25  ;;  %s2880_s29 = sadd.s32 4294967295, %s2788_s25   ;;  %s2788_s25 = sphi %s2871_s25, %s26_s25  }
   0x8   : > { %s3202_s5 = sld [smem:[#allocation14_spill]]  ;;  %p2179_p0 = scmp.ge.s32.totalorder %s2788_s25, 1 }
   0x9   : > { %p335_p1 = scmp.lt.s32.totalorder %s2788_s25, 3  ;;  %p2563_p2 = scmp.eq.s32.totalorder %s2880_s29, 0 }
   0xa   : > { %s2790_s14 = smov [#allocation4]   ;;  %s3204_s3 = sld [smem:[#allocation13_spill]] }
   0xb   : > { %p2885_p3 = pnand %p2179_p0, %p335_p1  ;;  %s371_s15 = sshll.u32 %s2790_s14, 4  ;;  %s372_s15 = int_to_ptr.vmem [resolvable:$true] %s371_s15 }
   0xc   : > { %s2791_s20 = smov [#allocation2]   ;;  %s2792_s22 = smov 64  }
   0xd   : > { %p2550_p4 = pneg %p2885_p3  ;;  %s354_s21 = sshll.u32 %s2791_s20, 4  ;;  %s355_s21 = int_to_ptr.vmem [resolvable:$true] %s354_s21 }
   0xe   : > { %s369_s28 = sshll.u32 %s3202_s5, 4  ;;  %s2793_s23 = smov 4   ;;  %s370_s28 = int_to_ptr.hbm [resolvable:$true] %s369_s28 }
   0xf   : > { %p2896_p5 = pnand %p2563_p2, %p2550_p4  ;;  %s392_s27 = sshll.u32 %s3192_s9, 4  ;;  %s393_s27 = int_to_ptr.hbm [resolvable:$true] %s392_s27 }
  0x10   : > { %s352_s18 = sshll.u32 %s3204_s3, 4  ;;  %s2794_s14 = smov 192   ;;  %s353_s18 = int_to_ptr.hbm [resolvable:$true] %s352_s18 }
  0x11   : > { %2556 = dma.hbm_to_vmem [thread:$0]  (!%p2896_p5), %s370_s28, 1024, %s372_s15, [#allocation5], %s2792_s22, %s2792_s22, %s2793_s23  }
  0x12   : > { %s2795_s16 = smov 12   ;;  %s2796_s17 = smov [#allocation6]  }
  0x13   : > { %2553 = dma.hbm_to_vmem [thread:$0]  (!%p2896_p5), %s353_s18, 3072, %s355_s21, [#allocation3], %s2794_s14, %s2794_s14, %s2795_s16  }
  0x14   : > { %s394_s3 = sshll.u32 %s2796_s17, 4  ;;  %s2797_s5 = smov 128   ;;  %s395_s3 = int_to_ptr.vmem [resolvable:$true] %s394_s3 }
  0x15   : > { %s2798_s20 = smov 8   ;;  %s409_s28 = sshll.u32 %s3194_s11, 4  ;;  %s410_s28 = int_to_ptr.hbm [resolvable:$true] %s409_s28 }
  0x16   : > { %2559 = dma.hbm_to_vmem [thread:$0]  (!%p2896_p5), %s393_s27, 2048, %s395_s3, [#allocation5], %s2797_s5, %s2797_s5, %s2798_s20  }
  0x17   : > { %s2799_s15 = smov [#allocation7]   ;;  %438 = sbr.rel (%p2885_p3) target bundleno = 2387 (0x953), region = 72 }
  0x18   : > { %s411_s24 = sshll.u32 %s2799_s15, 4  ;;  %s412_s24 = int_to_ptr.vmem [resolvable:$true] %s411_s24 }
  0x19   : > { %2562 = dma.hbm_to_vmem [thread:$0]  (!%p2896_p5), %s410_s28, 2048, %s412_s24, [#allocation8], %s2792_s22, %s2792_s22, %s2793_s23  }
  0x1c   : > { %2775 = dma.done.wait (%p2563_p2), [#allocation3], 3072  }
  0x1d   : > { %2777 = vsyncadd (%p2563_p2), [#allocation3], 4294964224 }
  0x1e   : > { %2779 = dma.done.wait (%p2563_p2), [#allocation5], 3072  }
  0x1f   : > { %2781 = vsyncadd (%p2563_p2), [#allocation5], 4294964224 }
  0x20   : > { %2783 = dma.done.wait (%p2563_p2), [#allocation8], 2048  }
  0x21   : > { %2785 = vsyncadd (%p2563_p2), [#allocation8], 4294965248  ;;  %p498_p6 = scmp.lt.s32.totalorder %s2880_s29, 1  ;;  %v2800_v2 = vmov 128.0   ;;  %v2280_v17 = vld [vmem:[#allocation2 + $0xa8] sm:$0xf] }
  0x22   : > { %2598 = vrcp.f32 %v2800_v2  ;;  %v2492_v18 = vld [vmem:[#allocation2 + $0xb0] sm:$0xf0]  ;;  %v2491_v19 = vld [vmem:[#allocation2 + $0xac] sm:$0xf]  ;;  %v2282_v21 = vld [vmem:[#allocation2 + $0xb4] sm:$0xf0] }
  0x23   : > { %s3211_s29 = smov (!%p498_p6, %s2880_s29), 1  ;;  %v2281_v20 = vor.u32 %v2492_v18, %v2280_v17  ;;  %v2288_v22 = vld [vmem:[#allocation2 + $0xb0] sm:$0xf]  ;;  %v2493_v23 = vld [vmem:[#allocation2 + $0xb8] sm:$0xf0]  ;;  %v2285_v24 = vor.u32 %v2491_v19, %v2282_v21  ;;  %vm981_vm7 = vcmask 261120  }
  0x24   : > { %s2468_s3 = sshll.u32 %s3211_s29, 4  ;;  %v2289_v25 = vor.u32 %v2493_v23, %v2288_v22  ;;  %v2268_v26 = vld [vmem:[#allocation2 + $0x90] sm:$0xf]  ;;  %v2489_v27 = vld [vmem:[#allocation2 + $0x98] sm:$0xf0]  ;;  %vm1170_vm8 = vcmask 130048  }
  0x25   : > { %s2938_s25 = scalar_lea.vmem %s3183_s0, %s2468_s3  ;;  %739 = vmatpush.bf16.msra.mxu0 %v2281_v20  ;;  %753 = vmatpush.bf16.msra.mxu1 %v2285_v24  ;;  %v2488_v28 = vld [vmem:[#allocation2 + $0x94] sm:$0xf]  ;;  %v2269_v29 = vor.u32 %v2489_v27, %v2268_v26  ;;  %v2270_v30 = vld [vmem:[#allocation2 + $0x9c] sm:$0xf0]  ;;  %v2276_v31 = vld [vmem:[#allocation2 + $0x98] sm:$0xf] }
  0x26   : > { %v509_v0 = vld [vmem:[%s2938_s25] sm:$0xff]  ;;  %v510_v1 = vld [vmem:[%s2938_s25 + $0x8] sm:$0xff]  ;;  %767 = vmatpush.bf16.msra.mxu2 %v2289_v25  ;;  %v2273_v33 = vor.u32 %v2488_v28, %v2270_v30  ;;  %v2256_v35 = vld [vmem:[#allocation2 + $0x78] sm:$0xf]  ;;  %s3208_s30 = sld [smem:[#allocation15_spill]] }
  0x27   : > { %513 = vadd.xlane.f32.xlu0 %v509_v0  ;;  %v2490_v32 = vld [vmem:[#allocation2 + $0xa0] sm:$0xf0]  ;;  %v2485_v37 = vld [vmem:[#allocation2 + $0x7c] sm:$0xf]  ;;  %v2258_v39 = vld [vmem:[#allocation2 + $0x84] sm:$0xf0] }
  0x28   : > { %v2599_v3 = vpop.eup %2598  ;;  %v2277_v34 = vor.u32 %v2490_v32, %v2276_v31  ;;  %v2486_v36 = vld [vmem:[#allocation2 + $0x80] sm:$0xf0]  ;;  %v2264_v40 = vld [vmem:[#allocation2 + $0x80] sm:$0xf]  ;;  %v2487_v41 = vld [vmem:[#allocation2 + $0x88] sm:$0xf0]  ;;  %v2261_v42 = vor.u32 %v2485_v37, %v2258_v39 }
  0x29   : > { %v518_v4 = vmul.f32 128.0, %v2599_v3  ;;  %vm522_vm0 = vweird.f32 %v2599_v3  ;;  %740 = vmatpush.bf16.msra.mxu0 %v2269_v29  ;;  %754 = vmatpush.bf16.msra.mxu1 %v2273_v33  ;;  %v2257_v38 = vor.u32 %v2486_v36, %v2256_v35  ;;  %v2265_v43 = vor.u32 %v2487_v41, %v2264_v40  ;;  %v2244_v44 = vld [vmem:[#allocation2 + $0x60] sm:$0xf]  ;;  %v2483_v45 = vld [vmem:[#allocation2 + $0x68] sm:$0xf0] }
  0x2a   : > { %768 = vmatpush.bf16.msra.mxu2 %v2277_v34  ;;  %v2482_v46 = vld [vmem:[#allocation2 + $0x64] sm:$0xf]  ;;  %v2245_v47 = vor.u32 %v2483_v45, %v2244_v44  ;;  %v2246_v48 = vld [vmem:[#allocation2 + $0x6c] sm:$0xf0]  ;;  %v2252_v49 = vld [vmem:[#allocation2 + $0x68] sm:$0xf] }
  0x2b   : > { %v519_v5 = vsub.f32 1.0, %v518_v4  ;;  %v2484_v50 = vld [vmem:[#allocation2 + $0x70] sm:$0xf0]  ;;  %v2249_v51 = vor.u32 %v2482_v46, %v2246_v48  ;;  %v2232_v53 = vld [vmem:[#allocation2 + $0x48] sm:$0xf] }
  0x2c   : > { %v2253_v52 = vor.u32 %v2484_v50, %v2252_v49  ;;  %v2480_v54 = vld [vmem:[#allocation2 + $0x50] sm:$0xf0]  ;;  %v2479_v55 = vld [vmem:[#allocation2 + $0x4c] sm:$0xf]  ;;  %v2234_v57 = vld [vmem:[#allocation2 + $0x54] sm:$0xf0]  ;;  %s507_s18 = scalar_lea.vmem %s3208_s30, %s2468_s3 }
  0x2d   : > { %v520_v6 = vmul.f32 %v2599_v3, %v519_v5  ;;  %741 = vmatpush.bf16.msra.mxu0 %v2257_v38  ;;  %755 = vmatpush.bf16.msra.mxu1 %v2261_v42  ;;  %v2233_v56 = vor.u32 %v2480_v54, %v2232_v53  ;;  %v2240_v58 = vld [vmem:[#allocation2 + $0x50] sm:$0xf]  ;;  %v2481_v59 = vld [vmem:[#allocation2 + $0x58] sm:$0xf0]  ;;  %v2237_v60 = vor.u32 %v2479_v55, %v2234_v57  ;;  %v2222_v2 = vld [vmem:[#allocation2 + $0x3c] sm:$0xf0] }
  0x2e   : > { %769 = vmatpush.bf16.msra.mxu2 %v2265_v43  ;;  %v2241_v61 = vor.u32 %v2481_v59, %v2240_v58  ;;  %v2220_v62 = vld [vmem:[#allocation2 + $0x30] sm:$0xf]  ;;  %v2477_v63 = vld [vmem:[#allocation2 + $0x38] sm:$0xf0]  ;;  %v2478_v4 = vld [vmem:[#allocation2 + $0x40] sm:$0xf0] }
  0x2f   : > { %515 = vadd.xlane.f32.xlu0 %v510_v1  ;;  %v521_v7 = vadd.f32 %v2599_v3, %v520_v6  ;;  %v2196_v19 = vld [vmem:[#allocation2] sm:$0xf]  ;;  %v2471_v20 = vld [vmem:[#allocation2 + $0x8] sm:$0xf0]  ;;  %v2470_v21 = vld [vmem:[#allocation2 + $0x4] sm:$0xf] }
  0x30   : > { %v2197_v23 = vor.u32 %v2471_v20, %v2196_v19  ;;  %v2198_v24 = vld [vmem:[#allocation2 + $0xc] sm:$0xf0]  ;;  %v2204_v25 = vld [vmem:[#allocation2 + $0x8] sm:$0xf]  ;;  %v2472_v26 = vld [vmem:[#allocation2 + $0x10] sm:$0xf0] }
  0x31   : > { %v2942_v8 = vsel %vm522_vm0, %v2599_v3, %v521_v7  ;;  %742 = vmatpush.bf16.msra.mxu0 %v2245_v47  ;;  %756 = vmatpush.bf16.msra.mxu1 %v2249_v51  ;;  %v2228_v3 = vld [vmem:[#allocation2 + $0x38] sm:$0xf]  ;;  %v2201_v28 = vor.u32 %v2470_v21, %v2198_v24  ;;  %v2205_v29 = vor.u32 %v2472_v26, %v2204_v25  ;;  %v2592_v47 = vld [vmem:[%s3184_s1] ss:$0 sm:$0xff] }
  0x32   : > { %770 = vmatpush.bf16.msra.mxu2 %v2253_v52  ;;  %v2229_v6 = vor.u32 %v2478_v4, %v2228_v3  ;;  %v2208_v7 = vld [vmem:[#allocation2 + $0x18] sm:$0xf]  ;;  %v2593_v52 = vld [vmem:[%s3185_s2] ss:$0 sm:$0xff] }
  0x35   : > { %743 = vmatpush.bf16.msra.mxu0 %v2233_v56  ;;  %757 = vmatpush.bf16.msra.mxu1 %v2237_v60 }
  0x36   : > { %771 = vmatpush.bf16.msra.mxu2 %v2241_v61 }
  0x3a   : > { %772 = vmatpush.bf16.msra.mxu2 %v2229_v6 }
  0x9a   : > { %v514_v9 = vpop.xlane.xlu0 %513 }
  0x9b   : > { %v524_v10 = vmul.f32 %v2942_v8, %v514_v9  ;;  %v2474_v9 = vld [vmem:[#allocation2 + $0x20] sm:$0xf0] }
  0x9d   : > { %v2945_v11 = vsub.f32 %v509_v0, %v524_v10  ;;  %v2476_v0 = vld [vmem:[#allocation2 + $0x34] sm:$0xf]  ;;  %v2473_v10 = vld [vmem:[#allocation2 + $0x1c] sm:$0xf] }
  0x9e   : > { %v2225_v5 = vor.u32 %v2476_v0, %v2222_v2 }
  0x9f   : > { %v528_v12 = vmul.f32 %v2945_v11, %v2945_v11 }
  0xa0   : > { %758 = vmatpush.bf16.msra.mxu1 %v2225_v5 }
  0xa1   : > { %530 = vadd.xlane.f32.xlu1 %v528_v12  ;;  %v2209_v12 = vor.u32 %v2474_v9, %v2208_v7 }
  0xa2   : > { %v516_v13 = vpop.xlane.xlu0 %515 }
  0xa3   : > { %v525_v14 = vmul.f32 %v2942_v8, %v516_v13  ;;  %v2210_v13 = vld [vmem:[#allocation2 + $0x24] sm:$0xf0] }
  0xa4   : > { %v2213_v17 = vor.u32 %v2473_v10, %v2210_v13 }
  0xa5   : > { %v2950_v15 = vsub.f32 %v510_v1, %v525_v14  ;;  %v2221_v1 = vor.u32 %v2477_v63, %v2220_v62  ;;  %v2216_v14 = vld [vmem:[#allocation2 + $0x20] sm:$0xf] }
  0xa6   : > { %759 = vmatpush.bf16.msra.mxu1 %v2213_v17 }
  0xa7   : > { %v529_v16 = vmul.f32 %v2950_v15, %v2950_v15  ;;  %744 = vmatpush.bf16.msra.mxu0 %v2221_v1 }
  0xa9   : > { %532 = vadd.xlane.f32.xlu1 %v529_v16  ;;  %v2475_v16 = vld [vmem:[#allocation2 + $0x28] sm:$0xf0] }
  0xaa   : > { %v2217_v18 = vor.u32 %v2475_v16, %v2216_v14  ;;  %760 = vmatpush.bf16.msra.mxu1 %v2201_v28 }
  0xab   : > { %745 = vmatpush.bf16.msra.mxu0 %v2209_v12 }
  0xac   : > { %773 = vmatpush.bf16.msra.mxu2 %v2217_v18 }
  0xaf   : > { %746 = vmatpush.bf16.msra.mxu0 %v2197_v23 }
  0xb0   : > { %774 = vmatpush.bf16.msra.mxu2 %v2205_v29 }
 0x114   : > { %v531_v22 = vpop.xlane.xlu1 %530 }
 0x115   : > { %v534_v27 = vmul.f32 %v531_v22, %v2942_v8 }
 0x117   : > { %v536_v30 = vadd.f32 1e-05, %v534_v27 }
 0x119   : > { %2600 = vrsqrt.f32 %v536_v30  ;;  %vm544_vm2 = vweird.f32 %v536_v30 }
 0x11c   : > { %v533_v31 = vpop.xlane.xlu1 %532 }
 0x11d   : > { %v535_v32 = vmul.f32 %v533_v31, %v2942_v8 }
 0x11f   : > { %v2601_v33 = vpop.eup %2600  ;;  %v537_v34 = vadd.f32 1e-05, %v535_v32 }
 0x120   : > { %v539_v35 = vmul.f32 %v2601_v33, %v536_v30  ;;  %vm545_vm1 = vweird.f32 %v2601_v33 }
 0x121   : > { %2602 = vrsqrt.f32 %v537_v34  ;;  %vm546_vm3 = vmor %vm544_vm2, %vm545_vm1  ;;  %vm554_vm5 = vweird.f32 %v537_v34 }
 0x122   : > { %v540_v36 = vmul.f32 %v2601_v33, %v539_v35 }
 0x124   : > { %v541_v37 = vmul.f32 0.5, %v540_v36 }
 0x126   : > { %v542_v38 = vsub.f32 1.5, %v541_v37 }
 0x127   : > { %v2603_v39 = vpop.eup %2602 }
 0x128   : > { %v543_v40 = vmul.f32 %v2601_v33, %v542_v38  ;;  %v549_v41 = vmul.f32 %v2603_v39, %v537_v34  ;;  %vm555_vm4 = vweird.f32 %v2603_v39 }
 0x129   : > { %vm556_vm6 = vmor %vm554_vm5, %vm555_vm4 }
 0x12a   : > { %v550_v42 = vmul.f32 %v2603_v39, %v549_v41  ;;  %v547_v43 = vsel %vm546_vm3, %v2601_v33, %v543_v40 }
 0x12b   : > { %v558_v46 = vmul.f32 %v547_v43, %v2945_v11  ;;  %v2967_v11 = vld [vmem:[%s3187_s4] sm:$0x7] }
 0x12c   : > { %v551_v44 = vmul.f32 0.5, %v550_v42  ;;  %v606_v57 = vperm.slane %v2967_v11, 1 }
 0x12d   : > { %v563_v51 = vmul.f32 %v2592_v47, %v558_v46 }
 0x12e   : > { %v552_v45 = vsub.f32 1.5, %v551_v44 }
 0x12f   : > { %v568_v54 = vadd.f32 %v2593_v52, %v563_v51 }
 0x130   : > { %v553_v48 = vmul.f32 %v2603_v39, %v552_v45 }
 0x132   : > { %v557_v49 = vsel %vm556_vm6, %v2603_v39, %v553_v48 }
 0x133   : > { %v559_v50 = vmul.f32 %v557_v49, %v2950_v15  ;;  %v605_v15 = vperm.slane %v2967_v11, 0 }
 0x135   : > { %v564_v53 = vmul.f32 %v2592_v47, %v559_v50 }
 0x137   : > { %v569_v55 = vadd.f32 %v2593_v52, %v564_v53 }
 0x139   : > { %v570_v56 = vpack.c.bf16 %v569_v55, %v568_v54 }
 0x13b   : > { %747 = vmatmul.bf16.vlgmr.msra.gmra.mxu0 %v570_v56  ;;  %761 = vmatmul.bf16.vlgmr.msra.gmra.mxu1 %v570_v56 }
 0x13c   : > { %775 = vmatmul.bf16.vlgmr.msra.gmra.mxu2 %v570_v56 }
 0x1b8   : > { %v748_v58 = vpop.f32.mrf.mxu0  ;;  %v762_v59 = vpop.f32.mrf.mxu1 }
 0x1b9   : > { %v763_v60 = vadd.f32 %v762_v59, %v606_v57  ;;  %v749_v61 = vadd.f32 %v748_v58, %v605_v15 }
 0x1bb   : > { %813 = vxpose.xlu0.b32.start [1/2] (short) %v763_v60, 128  ;;  %781 = vxpose.xlu2.b32.start [1/2] (short) %v749_v61, 128 }
 0x1c0   : > { %v750_v62 = vpop.f32.mrf.mxu0  ;;  %v764_v63 = vpop.f32.mrf.mxu1 }
 0x1c1   : > { %v751_v0 = vadd.f32 %v750_v62, %v605_v15  ;;  %v765_v1 = vadd.f32 %v764_v63, %v606_v57 }
 0x1c3   : > { %814 = vxpose.xlu0.b32.end [2/2] (short) %v765_v1, 128  ;;  %782 = vxpose.xlu2.b32.end [2/2] (short) %v751_v0, 128 }
 0x254   : > { %v797_v2 = vpop.trf.xlu2 }
 0x255   : > { %v877_v3 = vmul.f32 0.17677669, %v797_v2 }
 0x257   : > { %v893_v5 = vpack.c.bf16 %v877_v3, %v877_v3 }
 0x259   : > { %v945_v9 = vunpack.c.l.b16 %v893_v5 }
 0x25c   : > { %v798_v4 = vpop.trf.xlu2 }
 0x25d   : > { %v878_v6 = vmul.f32 0.17677669, %v798_v4 }
 0x25f   : > { %v894_v7 = vpack.c.bf16 %v878_v6, %v878_v6  ;;  %v829_v42 = vpop.trf.xlu0 }
 0x260   : > { %v909_v57 = vpack.c.bf16 %v829_v42, %v829_v42 }
 0x261   : > { %v946_v10 = vunpack.c.l.b16 %v894_v7 }
 0x262   : > { %v973_v0 = vunpack.c.l.b16 %v909_v57 }
 0x263   : > { %v949_v12 = vpack.c.b16 %v946_v10, %v945_v9 }
 0x264   : > { %v799_v13 = vpop.trf.xlu2 }
 0x265   : > { %953 = vxpose.xlu1.c.b16.start [1/2] (short) (narrow) %v949_v12, 16  ;;  %v879_v14 = vmul.f32 0.17677669, %v799_v13 }
 0x267   : > { %v895_v17 = vpack.c.bf16 %v879_v14, %v879_v14  ;;  %v830_v47 = vpop.trf.xlu0 }
 0x268   : > { %v910_v59 = vpack.c.bf16 %v830_v47, %v830_v47 }
 0x269   : > { %v947_v20 = vunpack.c.l.b16 %v895_v17 }
 0x26a   : > { %v974_v3 = vunpack.c.l.b16 %v910_v59 }
 0x26c   : > { %v800_v16 = vpop.trf.xlu2  ;;  %v977_v9 = vpack.c.b16 %v974_v3, %v973_v0 }
 0x26d   : > { %v880_v18 = vmul.f32 0.17677669, %v800_v16 }
 0x26f   : > { %v896_v19 = vpack.c.bf16 %v880_v18, %v880_v18  ;;  %v831_v53 = vpop.trf.xlu0 }
 0x270   : > { %v911_v55 = vpack.c.bf16 %v831_v53, %v831_v53 }
 0x271   : > { %v948_v21 = vunpack.c.l.b16 %v896_v19 }
 0x272   : > { %v975_v62 = vunpack.c.l.b16 %v911_v55 }
 0x273   : > { %v950_v22 = vpack.c.b16 %v948_v21, %v947_v20 }
 0x274   : > { %v801_v23 = vpop.trf.xlu2 }
 0x275   : > { %954 = vxpose.xlu1.c.b16.end [2/2] (short) (narrow) %v950_v22, 16  ;;  %v881_v24 = vmul.f32 0.17677669, %v801_v23 }
 0x277   : > { %v897_v26 = vpack.c.bf16 %v881_v24, %v881_v24  ;;  %v832_v60 = vpop.trf.xlu0 }
 0x278   : > { %v912_v63 = vpack.c.bf16 %v832_v60, %v832_v60 }
 0x279   : > { %v1003_v29 = vunpack.c.l.b16 %v897_v26 }
 0x27a   : > { %v976_v4 = vunpack.c.l.b16 %v912_v63 }
 0x27c   : > { %v802_v25 = vpop.trf.xlu2  ;;  %v978_v6 = vpack.c.b16 %v976_v4, %v975_v62 }
 0x27d   : > { %v882_v27 = vmul.f32 0.17677669, %v802_v25 }
 0x27e   : > { %991 = vmatpush.bf16.msra.mxu3 %v978_v6 }
 0x27f   : > { %v898_v28 = vpack.c.bf16 %v882_v27, %v882_v27  ;;  %v833_v10 = vpop.trf.xlu0 }
 0x281   : > { %v1004_v30 = vunpack.c.l.b16 %v898_v28 }
 0x282   : > { %992 = vmatpush.bf16.msra.mxu3 %v977_v9 }
 0x283   : > { %v1007_v31 = vpack.c.b16 %v1004_v30, %v1003_v29  ;;  %v913_v29 = vpack.c.bf16 %v833_v10, %v833_v10 }
 0x284   : > { %v803_v32 = vpop.trf.xlu2 }
 0x285   : > { %1011 = vxpose.xlu2.c.b16.start [1/2] (short) (narrow) %v1007_v31, 16  ;;  %v883_v33 = vmul.f32 0.17677669, %v803_v32 }
 0x287   : > { %v899_v35 = vpack.c.bf16 %v883_v33, %v883_v33  ;;  %v834_v17 = vpop.trf.xlu0 }
 0x288   : > { %v914_v30 = vpack.c.bf16 %v834_v17, %v834_v17 }
 0x289   : > { %v1005_v38 = vunpack.c.l.b16 %v899_v35 }
 0x28c   : > { %v804_v34 = vpop.trf.xlu2 }
 0x28d   : > { %v884_v36 = vmul.f32 0.17677669, %v804_v34 }
 0x28f   : > { %v900_v37 = vpack.c.bf16 %v884_v36, %v884_v36  ;;  %v835_v23 = vpop.trf.xlu0 }
 0x290   : > { %v915_v26 = vpack.c.bf16 %v835_v23, %v835_v23 }
 0x291   : > { %v1006_v39 = vunpack.c.l.b16 %v900_v37  ;;  %v1031_v37 = vunpack.c.l.b16 %v913_v29 }
 0x292   : > { %v1033_v34 = vunpack.c.l.b16 %v915_v26 }
 0x293   : > { %v1008_v40 = vpack.c.b16 %v1006_v39, %v1005_v38  ;;  %v1032_v38 = vunpack.c.l.b16 %v914_v30 }
 0x294   : > { %v805_v41 = vpop.trf.xlu2 }
 0x295   : > { %1012 = vxpose.xlu2.c.b16.end [2/2] (short) (narrow) %v1008_v40, 16  ;;  %v885_v43 = vmul.f32 0.17677669, %v805_v41  ;;  %v1035_v42 = vpack.c.b16 %v1032_v38, %v1031_v37 }
 0x297   : > { %v901_v45 = vpack.c.bf16 %v885_v43, %v885_v43  ;;  %v836_v31 = vpop.trf.xlu0 }
 0x298   : > { %v916_v35 = vpack.c.bf16 %v836_v31, %v836_v31 }
 0x299   : > { %v1060_v49 = vunpack.c.l.b16 %v901_v45 }
 0x29a   : > { %v1034_v39 = vunpack.c.l.b16 %v916_v35 }
 0x29c   : > { %v806_v44 = vpop.trf.xlu2  ;;  %v1036_v41 = vpack.c.b16 %v1034_v39, %v1033_v34 }
 0x29d   : > { %v886_v46 = vmul.f32 0.17677669, %v806_v44 }
 0x29e   : > { %1048 = vmatpush.bf16.msrb.mxu3 %v1036_v41 }
 0x29f   : > { %v902_v48 = vpack.c.bf16 %v886_v46, %v886_v46  ;;  %v837_v43 = vpop.trf.xlu0 }
 0x2a1   : > { %v1061_v50 = vunpack.c.l.b16 %v902_v48 }
 0x2a2   : > { %1049 = vmatpush.bf16.msrb.mxu3 %v1035_v42 }
 0x2a3   : > { %v1064_v51 = vpack.c.b16 %v1061_v50, %v1060_v49 }
 0x2a4   : > { %v807_v52 = vpop.trf.xlu2 }
 0x2a5   : > { %1068 = vxpose.xlu0.c.b16.start [1/2] (short) (narrow) %v1064_v51, 16  ;;  %v887_v54 = vmul.f32 0.17677669, %v807_v52  ;;  %v917_v52 = vpack.c.bf16 %v837_v43, %v837_v43 }
 0x2a7   : > { %v903_v15 = vpack.c.bf16 %v887_v54, %v887_v54  ;;  %v838_v44 = vpop.trf.xlu0 }
 0x2a8   : > { %v918_v53 = vpack.c.bf16 %v838_v44, %v838_v44 }
 0x2a9   : > { %v1062_v1 = vunpack.c.l.b16 %v903_v15 }
 0x2aa   : > { %v1089_v59 = vunpack.c.l.b16 %v918_v53 }
 0x2ac   : > { %v808_v56 = vpop.trf.xlu2 }
 0x2ad   : > { %v888_v58 = vmul.f32 0.17677669, %v808_v56 }
 0x2af   : > { %v904_v61 = vpack.c.bf16 %v888_v58, %v888_v58  ;;  %v839_v45 = vpop.trf.xlu0  ;;  %v1088_v58 = vunpack.c.l.b16 %v917_v52 }
 0x2b0   : > { %v919_v50 = vpack.c.bf16 %v839_v45, %v839_v45 }
 0x2b1   : > { %v1063_v2 = vunpack.c.l.b16 %v904_v61  ;;  %v1092_v4 = vpack.c.b16 %v1089_v59, %v1088_v58 }
 0x2b2   : > { %v1090_v54 = vunpack.c.l.b16 %v919_v50 }
 0x2b3   : > { %v1065_v5 = vpack.c.b16 %v1063_v2, %v1062_v1 }
 0x2b4   : > { %v809_v7 = vpop.trf.xlu2 }
 0x2b5   : > { %1069 = vxpose.xlu0.c.b16.end [2/2] (short) (narrow) %v1065_v5, 16  ;;  %v889_v12 = vmul.f32 0.17677669, %v809_v7 }
 0x2b7   : > { %v905_v13 = vpack.c.bf16 %v889_v12, %v889_v12  ;;  %v840_v46 = vpop.trf.xlu0 }
 0x2b8   : > { %v920_v51 = vpack.c.bf16 %v840_v46, %v840_v46 }
 0x2b9   : > { %v1117_v18 = vunpack.c.l.b16 %v905_v13 }
 0x2ba   : > { %v1091_v55 = vunpack.c.l.b16 %v920_v51 }
 0x2bc   : > { %v810_v14 = vpop.trf.xlu2  ;;  %v1093_v61 = vpack.c.b16 %v1091_v55, %v1090_v54 }
 0x2bd   : > { %v890_v16 = vmul.f32 0.17677669, %v810_v14 }
 0x2bf   : > { %v906_v19 = vpack.c.bf16 %v890_v16, %v890_v16  ;;  %v841_v47 = vpop.trf.xlu0 }
 0x2c0   : > { %v921_v57 = vpack.c.bf16 %v841_v47, %v841_v47 }
 0x2c1   : > { %v1118_v20 = vunpack.c.l.b16 %v906_v19 }
 0x2c2   : > { %v1145_v1 = vunpack.c.l.b16 %v921_v57 }
 0x2c3   : > { %v1121_v21 = vpack.c.b16 %v1118_v20, %v1117_v18 }
 0x2c4   : > { %v811_v22 = vpop.trf.xlu2 }
 0x2c5   : > { %1125 = vxpose.xlu1.c.b16.start [1/2] (short) (narrow) %v1121_v21, 16  ;;  %v891_v24 = vmul.f32 0.17677669, %v811_v22 }
 0x2c7   : > { %v907_v25 = vpack.c.bf16 %v891_v24, %v891_v24  ;;  %v842_v48 = vpop.trf.xlu0 }
 0x2c8   : > { %v922_v15 = vpack.c.bf16 %v842_v48, %v842_v48 }
 0x2c9   : > { %v1119_v32 = vunpack.c.l.b16 %v907_v25 }
 0x2ca   : > { %v1146_v2 = vunpack.c.l.b16 %v922_v15 }
 0x2cc   : > { %v812_v27 = vpop.trf.xlu2  ;;  %v1149_v6 = vpack.c.b16 %v1146_v2, %v1145_v1 }
 0x2cd   : > { %v892_v28 = vmul.f32 0.17677669, %v812_v27 }
 0x2cf   : > { %v908_v33 = vpack.c.bf16 %v892_v28, %v892_v28  ;;  %v843_v49 = vpop.trf.xlu0 }
 0x2d0   : > { %v923_v56 = vpack.c.bf16 %v843_v49, %v843_v49 }
 0x2d1   : > { %v1120_v36 = vunpack.c.l.b16 %v908_v33 }
 0x2d2   : > { %v1147_v62 = vunpack.c.l.b16 %v923_v56 }
 0x2d3   : > { %v1122_v40 = vpack.c.b16 %v1120_v36, %v1119_v32 }
 0x2d5   : > { %1126 = vxpose.xlu1.c.b16.end [2/2] (short) (narrow) %v1122_v40, 16 }
 0x2d7   : > { %v844_v60 = vpop.trf.xlu0 }
 0x2d8   : > { %v924_v63 = vpack.c.bf16 %v844_v60, %v844_v60 }
 0x2da   : > { %v1148_v3 = vunpack.c.l.b16 %v924_v63 }
 0x2dc   : > { %v1150_v5 = vpack.c.b16 %v1148_v3, %v1147_v62 }
 0x2de   : > { %1162 = vmatpush.bf16.msrb.mxu0 %v1150_v5 }
 0x2e2   : > { %1163 = vmatpush.bf16.msrb.mxu0 %v1149_v6  ;;  %v607_v6 = vperm.slane %v2967_v11, 2 }
 0x311   : > { %v961_v0 = vpop.trf.xlu1 }
 0x312   : > { %2290 = vmatmul.msk.bf16.vlgmr.msra.gmra.mxu3 %vm981_vm7, %v961_v0 }
 0x313   : > { %1105 = vmatpush.bf16.msra.mxu3 %v1093_v61 }
 0x317   : > { %1106 = vmatpush.bf16.msra.mxu3 %v1092_v4  ;;  %v776_v4 = vpop.f32.mrf.mxu2 }
 0x326   : > { %v1019_v7 = vpop.trf.xlu2 }
 0x327   : > { %2291 = vmatmul.msk.bf16.vlgmr.msrb.gmra.mxu3 %vm981_vm7, %v1019_v7  ;;  %v777_v7 = vadd.f32 %v776_v4, %v607_v6 }
 0x351   : > { %v1076_v9 = vpop.trf.xlu0 }
 0x352   : > { %2292 = vmatmul.msk.bf16.vlgmr.msra.gmra.mxu3 %vm981_vm7, %v1076_v9 }
 0x371   : > { %v1133_v10 = vpop.trf.xlu1 }
 0x372   : > { %2293 = vmatmul.msk.bf16.vlgmr.msrb.gmra.mxu0 %vm981_vm7, %v1133_v10 }
 0x395   : > { %v994_v12 = vpop.f32.mrf.mxu3 }
 0x396   : > { %v1171_v13 = vsel %vm1170_vm8, %v994_v12, -inf }
 0x397   : > { %1172 = vmax.xlane.f32.xlu1 %v1171_v13 }
 0x39d   : > { %v996_v14 = vpop.f32.mrf.mxu3 }
 0x39e   : > { %v1174_v16 = vsel %vm1170_vm8, %v996_v14, -inf }
 0x39f   : > { %1175 = vmax.xlane.f32.xlu2 %v1174_v16 }
 0x3aa   : > { %v1051_v17 = vpop.f32.mrf.mxu3 }
 0x3ab   : > { %v1177_v18 = vsel %vm1170_vm8, %v1051_v17, -inf }
 0x3ac   : > { %1178 = vmax.xlane.f32.xlu0 %v1177_v18 }
 0x3b2   : > { %v1053_v19 = vpop.f32.mrf.mxu3 }
 0x3b3   : > { %v1180_v20 = vsel %vm1170_vm8, %v1053_v19, -inf }
 0x3b4   : > { %1181 = vmax.xlane.f32.xlu1 %v1180_v20 }
 0x3d5   : > { %v1108_v21 = vpop.f32.mrf.mxu3 }
 0x3d6   : > { %v1183_v22 = vsel %vm1170_vm8, %v1108_v21, -inf }
 0x3d7   : > { %1184 = vmax.xlane.f32.xlu1 %v1183_v22 }
 0x3dd   : > { %v1110_v23 = vpop.f32.mrf.mxu3 }
 0x3de   : > { %v1186_v24 = vsel %vm1170_vm8, %v1110_v23, -inf }
 0x3df   : > { %1187 = vmax.xlane.f32.xlu1 %v1186_v24 }
 0x3ef   : > { %v1165_v25 = vpop.f32.mrf.mxu0 }
 0x3f0   : > { %v1189_v26 = vsel %vm1170_vm8, %v1165_v25, -inf }
 0x3f1   : > { %1190 = vmax.xlane.f32.xlu1 %v1189_v26 }
 0x3f7   : > { %v1167_v27 = vpop.f32.mrf.mxu0 }
 0x3f8   : > { %v1192_v28 = vsel %vm1170_vm8, %v1167_v27, -inf }
 0x3f9   : > { %1193 = vmax.xlane.f32.xlu1 %v1192_v28 }
 0x40a   : > { %v1173_v29 = vpop.xlane.xlu1 %1172 }
 0x40b   : > { %v1195_v30 = vsub.f32 %v994_v12, %v1173_v29  ;;  %v778_v12 = vpop.f32.mrf.mxu2 }
 0x40d   : > { %v1203_v31 = vmul.f32 1.442695, %v1195_v30 }
 0x40f   : > { %2604 = vpow2.f32 %v1203_v31 }
 0x412   : > { %v1176_v32 = vpop.xlane.xlu2 %1175 }
 0x413   : > { %v1196_v33 = vsub.f32 %v996_v14, %v1176_v32  ;;  %v779_v14 = vadd.f32 %v778_v12, %v607_v6 }
 0x415   : > { %v2605_v34 = vpop.eup %2604  ;;  %v1205_v35 = vmul.f32 1.442695, %v1196_v33 }
 0x416   : > { %v1219_v36 = vsel %vm1170_vm8, %v2605_v34, 0.0 }
 0x417   : > { %2606 = vpow2.f32 %v1205_v35  ;;  %1220 = vadd.xlane.f32.xlu1 %v1219_v36 }
 0x41d   : > { %v2607_v37 = vpop.eup %2606 }
 0x41e   : > { %v1222_v38 = vsel %vm1170_vm8, %v2607_v37, 0.0 }
 0x41f   : > { %v1179_v39 = vpop.xlane.xlu0 %1178  ;;  %1223 = vadd.xlane.f32.xlu2 %v1222_v38 }
 0x420   : > { %v1197_v40 = vsub.f32 %v1051_v17, %v1179_v39 }
 0x422   : > { %v1207_v41 = vmul.f32 1.442695, %v1197_v40 }
 0x424   : > { %2608 = vpow2.f32 %v1207_v41 }
 0x427   : > { %v1182_v42 = vpop.xlane.xlu1 %1181 }
 0x428   : > { %v1198_v43 = vsub.f32 %v1053_v19, %v1182_v42 }
 0x42a   : > { %v2985_v44 = vpop.eup %2608  ;;  %v1209_v45 = vmul.f32 1.442695, %v1198_v43 }
 0x42b   : > { %v1225_v46 = vsel %vm1170_vm8, %v2985_v44, 0.0 }
 0x42c   : > { %2610 = vpow2.f32 %v1209_v45  ;;  %1226 = vadd.xlane.f32.xlu1 %v1225_v46 }
 0x432   : > { %v2611_v47 = vpop.eup %2610 }
 0x433   : > { %v1228_v48 = vsel %vm1170_vm8, %v2611_v47, 0.0 }
 0x434   : > { %1229 = vadd.xlane.f32.xlu2 %v1228_v48 }
 0x44a   : > { %v1185_v49 = vpop.xlane.xlu1 %1184 }
 0x44b   : > { %v1199_v50 = vsub.f32 %v1108_v21, %v1185_v49 }
 0x44d   : > { %v1211_v51 = vmul.f32 1.442695, %v1199_v50 }
 0x44f   : > { %2612 = vpow2.f32 %v1211_v51 }
 0x452   : > { %v1188_v52 = vpop.xlane.xlu1 %1187 }
 0x453   : > { %v1200_v53 = vsub.f32 %v1110_v23, %v1188_v52 }
 0x455   : > { %v2990_v54 = vpop.eup %2612  ;;  %v1213_v55 = vmul.f32 1.442695, %v1200_v53 }
 0x456   : > { %v1231_v56 = vsel %vm1170_vm8, %v2990_v54, 0.0 }
 0x457   : > { %2614 = vpow2.f32 %v1213_v55  ;;  %1232 = vadd.xlane.f32.xlu1 %v1231_v56 }
 0x45d   : > { %v2615_v57 = vpop.eup %2614 }
 0x45e   : > { %v1234_v15 = vsel %vm1170_vm8, %v2615_v57, 0.0 }
 0x45f   : > { %1235 = vadd.xlane.f32.xlu2 %v1234_v15 }
 0x464   : > { %v1191_v58 = vpop.xlane.xlu1 %1190 }
 0x465   : > { %v1201_v59 = vsub.f32 %v1165_v25, %v1191_v58 }
 0x467   : > { %v1215_v60 = vmul.f32 1.442695, %v1201_v59 }
 0x469   : > { %2616 = vpow2.f32 %v1215_v60 }
 0x46c   : > { %v1194_v61 = vpop.xlane.xlu1 %1193 }
 0x46d   : > { %v1202_v62 = vsub.f32 %v1167_v27, %v1194_v61 }
 0x46f   : > { %v2995_v63 = vpop.eup %2616  ;;  %v1217_v0 = vmul.f32 1.442695, %v1202_v62 }
 0x470   : > { %v1237_v1 = vsel %vm1170_vm8, %v2995_v63, 0.0 }
 0x471   : > { %2618 = vpow2.f32 %v1217_v0  ;;  %1238 = vadd.xlane.f32.xlu2 %v1237_v1 }
 0x477   : > { %v2619_v2 = vpop.eup %2618 }
 0x478   : > { %v1240_v3 = vsel %vm1170_vm8, %v2619_v2, 0.0 }
 0x479   : > { %1241 = vadd.xlane.f32.xlu2 %v1240_v3 }
 0x48a   : > { %v1221_v5 = vpop.xlane.xlu1 %1220 }
 0x48b   : > { %2620 = vrcp.f32 %v1221_v5 }
 0x491   : > { %845 = vxpose.xlu1.b32.start [1/2] (short) %v777_v7, 128  ;;  %v2621_v10 = vpop.eup %2620 }
 0x492   : > { %v1224_v9 = vpop.xlane.xlu2 %1223  ;;  %v1251_v13 = vmul.f32 %v2621_v10, %v2605_v34 }
 0x493   : > { %2622 = vrcp.f32 %v1224_v9 }
 0x494   : > { %v1259_v18 = vpack.c.bf16 %v1251_v13, %v1251_v13 }
 0x496   : > { %v1279_v20 = vunpack.c.l.b16 %v1259_v18 }
 0x499   : > { %v2623_v16 = vpop.eup %2622  ;;  %846 = vxpose.xlu1.b32.end [2/2] (short) %v779_v14, 128 }
 0x49a   : > { %v1252_v17 = vmul.f32 %v2623_v16, %v2607_v37 }
 0x49c   : > { %v1260_v19 = vpack.c.bf16 %v1252_v17, %v1252_v17 }
 0x49e   : > { %v1280_v21 = vunpack.c.l.b16 %v1260_v19 }
 0x49f   : > { %v1227_v22 = vpop.xlane.xlu1 %1226 }
 0x4a0   : > { %v1281_v23 = vpack.c.b16 %v1280_v21, %v1279_v20  ;;  %2624 = vrcp.f32 %v1227_v22 }
 0x4a2   : > { %v1289_v11 = vsel %vm1170_vm8, %v1281_v23, 0 }
 0x4a3   : > { %1298 = vmatpush.bf16.xpose.msrb.mxu1 %v1289_v11 }
 0x4a6   : > { %v2625_v25 = vpop.eup %2624 }
 0x4a7   : > { %v1230_v24 = vpop.xlane.xlu2 %1229  ;;  %v1253_v26 = vmul.f32 %v2625_v25, %v2985_v44 }
 0x4a8   : > { %2626 = vrcp.f32 %v1230_v24 }
 0x4a9   : > { %v1261_v29 = vpack.c.bf16 %v1253_v26, %v1253_v26 }
 0x4ab   : > { %v1322_v31 = vunpack.c.l.b16 %v1261_v29 }
 0x4ae   : > { %v2627_v27 = vpop.eup %2626 }
 0x4af   : > { %v1254_v28 = vmul.f32 %v2627_v27, %v2611_v47 }
 0x4b1   : > { %v1262_v30 = vpack.c.bf16 %v1254_v28, %v1254_v28 }
 0x4b3   : > { %v1323_v32 = vunpack.c.l.b16 %v1262_v30 }
 0x4b5   : > { %v1324_v33 = vpack.c.b16 %v1323_v32, %v1322_v31 }
 0x4b7   : > { %v1332_v34 = vsel %vm1170_vm8, %v1324_v33, 0 }
 0x4b8   : > { %1341 = vmatpush.bf16.xpose.msrb.mxu2 %v1332_v34 }
 0x4ca   : > { %v1233_v35 = vpop.xlane.xlu1 %1232 }
 0x4cb   : > { %2628 = vrcp.f32 %v1233_v35 }
 0x4d1   : > { %v2629_v37 = vpop.eup %2628 }
 0x4d2   : > { %v1236_v36 = vpop.xlane.xlu2 %1235  ;;  %v1255_v38 = vmul.f32 %v2629_v37, %v2990_v54 }
 0x4d3   : > { %2630 = vrcp.f32 %v1236_v36 }
 0x4d4   : > { %v1263_v41 = vpack.c.bf16 %v1255_v38, %v1255_v38 }
 0x4d6   : > { %v1365_v43 = vunpack.c.l.b16 %v1263_v41 }
 0x4d9   : > { %v2631_v39 = vpop.eup %2630 }
 0x4da   : > { %v1256_v40 = vmul.f32 %v2631_v39, %v2615_v57 }
 0x4dc   : > { %v1264_v42 = vpack.c.bf16 %v1256_v40, %v1256_v40 }
 0x4de   : > { %v1366_v44 = vunpack.c.l.b16 %v1264_v42 }
 0x4e0   : > { %v1367_v45 = vpack.c.b16 %v1366_v44, %v1365_v43 }
 0x4e2   : > { %v1375_v46 = vsel %vm1170_vm8, %v1367_v45, 0 }
 0x4e3   : > { %1384 = vmatpush.bf16.xpose.msrb.mxu3 %v1375_v46 }
 0x4e4   : > { %v1239_v47 = vpop.xlane.xlu2 %1238 }
 0x4e5   : > { %2632 = vrcp.f32 %v1239_v47 }
 0x4eb   : > { %v2633_v49 = vpop.eup %2632 }
 0x4ec   : > { %v1242_v48 = vpop.xlane.xlu2 %1241  ;;  %v1257_v50 = vmul.f32 %v2633_v49, %v2995_v63 }
 0x4ed   : > { %2634 = vrcp.f32 %v1242_v48 }
 0x4ee   : > { %v1265_v53 = vpack.c.bf16 %v1257_v50, %v1257_v50 }
 0x4f0   : > { %v1408_v55 = vunpack.c.l.b16 %v1265_v53 }
 0x4f3   : > { %v2635_v51 = vpop.eup %2634 }
 0x4f4   : > { %v1258_v52 = vmul.f32 %v2635_v51, %v2619_v2 }
 0x4f6   : > { %v1266_v54 = vpack.c.bf16 %v1258_v52, %v1258_v52 }
 0x4f8   : > { %v1409_v56 = vunpack.c.l.b16 %v1266_v54 }
 0x4fa   : > { %v1410_v57 = vpack.c.b16 %v1409_v56, %v1408_v55 }
 0x4fc   : > { %v1418_v15 = vsel %vm1170_vm8, %v1410_v57, 0 }
 0x4fd   : > { %1427 = vmatpush.bf16.xpose.msra.mxu0 %v1418_v15 }
 0x535   : > { %v861_v58 = vpop.trf.xlu1 }
 0x536   : > { %v925_v59 = vpack.c.bf16 %v861_v58, %v861_v58 }
 0x538   : > { %v1271_v62 = vunpack.c.l.b16 %v925_v59 }
 0x53d   : > { %v862_v60 = vpop.trf.xlu1 }
 0x53e   : > { %v926_v61 = vpack.c.bf16 %v862_v60, %v862_v60 }
 0x540   : > { %v1272_v0 = vunpack.c.l.b16 %v926_v61 }
 0x542   : > { %v1275_v1 = vpack.c.b16 %v1272_v0, %v1271_v62  ;;  %v2501_v0 = vld [vmem:[#allocation4 + $0x38] sm:$0xff] }
 0x543   : > { %1540 = vmatpush.bf16.msra.mxu1 %v2501_v0  ;;  %v2507_v0 = vld [vmem:[#allocation6 + $0x24] sm:$0xf0] }
 0x544   : > { %2294 = vmatmul.msk.bf16.vlgmr.msrb.gmra.mxu1 %vm1170_vm8, %v1275_v1 }
 0x545   : > { %v863_v63 = vpop.trf.xlu1 }
 0x546   : > { %v927_v3 = vpack.c.bf16 %v863_v63, %v863_v63  ;;  %v2500_v63 = vld [vmem:[#allocation4 + $0x30] sm:$0xff] }
 0x547   : > { %1541 = vmatpush.bf16.msra.mxu1 %v2500_v63 }
 0x548   : > { %v1273_v5 = vunpack.c.l.b16 %v927_v3  ;;  %v2499_v3 = vld [vmem:[#allocation4 + $0x28] sm:$0xff] }
 0x54b   : > { %1542 = vmatpush.bf16.msra.mxu1 %v2499_v3  ;;  %v2354_v3 = vld [vmem:[#allocation6 + $0x28] sm:$0xf0] }
 0x54d   : > { %v864_v2 = vpop.trf.xlu1 }
 0x54e   : > { %v928_v4 = vpack.c.bf16 %v864_v2, %v864_v2  ;;  %v2498_v2 = vld [vmem:[#allocation4 + $0x20] sm:$0xff] }
 0x54f   : > { %1543 = vmatpush.bf16.msra.mxu1 %v2498_v2 }
 0x550   : > { %v1274_v6 = vunpack.c.l.b16 %v928_v4 }
 0x552   : > { %v1276_v7 = vpack.c.b16 %v1274_v6, %v1273_v5  ;;  %v2497_v5 = vld [vmem:[#allocation4 + $0x18] sm:$0xff]  ;;  %v2496_v6 = vld [vmem:[#allocation4 + $0x10] sm:$0xff] }
 0x553   : > { %1544 = vmatpush.bf16.msra.mxu1 %v2497_v5  ;;  %v2505_v5 = vld [vmem:[#allocation6 + $0x14] sm:$0xf0] }
 0x554   : > { %2295 = vmatmul.msk.bf16.gmra.mxu1 %vm1170_vm8, %v1276_v7 }
 0x555   : > { %v865_v9 = vpop.trf.xlu1 }
 0x556   : > { %v929_v10 = vpack.c.bf16 %v865_v9, %v865_v9 }
 0x557   : > { %1545 = vmatpush.bf16.msra.mxu1 %v2496_v6  ;;  %v2504_v6 = vld [vmem:[#allocation6 + $0x14] sm:$0xf] }
 0x558   : > { %v1314_v14 = vunpack.c.l.b16 %v929_v10  ;;  %v2495_v10 = vld [vmem:[#allocation4 + $0x8] sm:$0xff] }
 0x55b   : > { %1546 = vmatpush.bf16.msra.mxu1 %v2495_v10  ;;  %v2336_v10 = vld [vmem:[#allocation6] sm:$0xf] }
 0x55d   : > { %v866_v12 = vpop.trf.xlu1 }
 0x55e   : > { %v930_v13 = vpack.c.bf16 %v866_v12, %v866_v12  ;;  %v2494_v12 = vld [vmem:[#allocation4] sm:$0xff] }
 0x55f   : > { %1547 = vmatpush.bf16.msra.mxu1 %v2494_v12  ;;  %v2503_v12 = vld [vmem:[#allocation6 + $0x4] sm:$0xf0] }
 0x560   : > { %v1315_v16 = vunpack.c.l.b16 %v930_v13 }
 0x562   : > { %v1318_v17 = vpack.c.b16 %v1315_v16, %v1314_v14 }
 0x564   : > { %2296 = vmatmul.msk.bf16.vlgmr.msrb.gmra.mxu2 %vm1170_vm8, %v1318_v17  ;;  %v2594_v17 = vld [vmem:[%s3189_s6] ss:$0 sm:$0xff] }
 0x565   : > { %v867_v18 = vpop.trf.xlu1 }
 0x566   : > { %v931_v19 = vpack.c.bf16 %v867_v18, %v867_v18 }
 0x568   : > { %v1316_v22 = vunpack.c.l.b16 %v931_v19 }
 0x56d   : > { %v868_v20 = vpop.trf.xlu1 }
 0x56e   : > { %v932_v21 = vpack.c.bf16 %v868_v20, %v868_v20  ;;  %v2648_v20 = vld [vmem:[%s2938_s25] sm:$0xff] }
 0x570   : > { %v1317_v23 = vunpack.c.l.b16 %v932_v21 }
 0x572   : > { %v1319_v11 = vpack.c.b16 %v1317_v23, %v1316_v22 }
 0x574   : > { %2297 = vmatmul.msk.bf16.gmra.mxu2 %vm1170_vm8, %v1319_v11  ;;  %v2649_v11 = vld [vmem:[%s2938_s25 + $0x8] sm:$0xff] }
 0x575   : > { %v869_v24 = vpop.trf.xlu1 }
 0x576   : > { %v933_v25 = vpack.c.bf16 %v869_v24, %v869_v24 }
 0x578   : > { %v1357_v28 = vunpack.c.l.b16 %v933_v25 }
 0x57d   : > { %v870_v26 = vpop.trf.xlu1 }
 0x57e   : > { %v934_v27 = vpack.c.bf16 %v870_v26, %v870_v26 }
 0x580   : > { %v1358_v29 = vunpack.c.l.b16 %v934_v27 }
 0x582   : > { %v1361_v30 = vpack.c.b16 %v1358_v29, %v1357_v28 }
 0x584   : > { %2298 = vmatmul.msk.bf16.vlgmr.msrb.gmra.mxu3 %vm1170_vm8, %v1361_v30 }
 0x585   : > { %v871_v31 = vpop.trf.xlu1 }
 0x586   : > { %v935_v32 = vpack.c.bf16 %v871_v31, %v871_v31 }
 0x588   : > { %v1359_v35 = vunpack.c.l.b16 %v935_v32 }
 0x58d   : > { %v872_v33 = vpop.trf.xlu1 }
 0x58e   : > { %v936_v34 = vpack.c.bf16 %v872_v33, %v872_v33  ;;  %v2392_v33 = vld [vmem:[#allocation6 + $0x70] sm:$0xf] }
 0x590   : > { %v1360_v36 = vunpack.c.l.b16 %v936_v34  ;;  %v2517_v34 = vld [vmem:[#allocation6 + $0x74] sm:$0xf0] }
 0x592   : > { %v1362_v37 = vpack.c.b16 %v1360_v36, %v1359_v35  ;;  %v2516_v35 = vld [vmem:[#allocation6 + $0x74] sm:$0xf]  ;;  %v2393_v36 = vor.u32 %v2517_v34, %v2392_v33 }
 0x594   : > { %2299 = vmatmul.msk.bf16.gmra.mxu3 %vm1170_vm8, %v1362_v37  ;;  %v2394_v37 = vld [vmem:[#allocation6 + $0x78] sm:$0xf0]  ;;  %1711 = vmatpush.bf16.msra.mxu2 %v2393_v36 }
 0x595   : > { %v873_v38 = vpop.trf.xlu1 }
 0x596   : > { %v937_v39 = vpack.c.bf16 %v873_v38, %v873_v38  ;;  %v2397_v38 = vor.u32 %v2516_v35, %v2394_v37 }
 0x598   : > { %v1400_v42 = vunpack.c.l.b16 %v937_v39  ;;  %1725 = vmatpush.bf16.msra.mxu3 %v2397_v38  ;;  %v2384_v39 = vld [vmem:[#allocation6 + $0x60] sm:$0xf] }
 0x59d   : > { %v874_v40 = vpop.trf.xlu1 }
 0x59e   : > { %v938_v41 = vpack.c.bf16 %v874_v40, %v874_v40  ;;  %v2515_v40 = vld [vmem:[#allocation6 + $0x64] sm:$0xf0] }
 0x5a0   : > { %v1401_v43 = vunpack.c.l.b16 %v938_v41  ;;  %v2514_v41 = vld [vmem:[#allocation6 + $0x64] sm:$0xf] }
 0x5a2   : > { %v1404_v44 = vpack.c.b16 %v1401_v43, %v1400_v42  ;;  %v2385_v42 = vor.u32 %v2515_v40, %v2384_v39  ;;  %v2386_v43 = vld [vmem:[#allocation6 + $0x68] sm:$0xf0]  ;;  %v2595_v40 = vld [vmem:[%s3190_s7] ss:$0 sm:$0xff] }
 0x5a4   : > { %2300 = vmatmul.msk.bf16.vlgmr.msra.gmra.mxu0 %vm1170_vm8, %v1404_v44  ;;  %v2389_v44 = vor.u32 %v2514_v41, %v2386_v43  ;;  %1712 = vmatpush.bf16.msra.mxu2 %v2385_v42 }
 0x5a5   : > { %v875_v45 = vpop.trf.xlu1 }
 0x5a6   : > { %v939_v46 = vpack.c.bf16 %v875_v45, %v875_v45  ;;  %1726 = vmatpush.bf16.msra.mxu3 %v2389_v44  ;;  %v2376_v45 = vld [vmem:[#allocation6 + $0x50] sm:$0xf] }
 0x5a8   : > { %v1402_v49 = vunpack.c.l.b16 %v939_v46  ;;  %v2513_v46 = vld [vmem:[#allocation6 + $0x54] sm:$0xf0] }
 0x5ad   : > { %v876_v47 = vpop.trf.xlu1 }
 0x5ae   : > { %v940_v48 = vpack.c.bf16 %v876_v47, %v876_v47  ;;  %v2512_v47 = vld [vmem:[#allocation6 + $0x54] sm:$0xf] }
 0x5b0   : > { %v1403_v50 = vunpack.c.l.b16 %v940_v48  ;;  %v2377_v48 = vor.u32 %v2513_v46, %v2376_v45  ;;  %v2596_v45 = vld [vmem:[%s3191_s8] ss:$0 sm:$0xff] }
 0x5b2   : > { %v1405_v51 = vpack.c.b16 %v1403_v50, %v1402_v49  ;;  %v2378_v49 = vld [vmem:[#allocation6 + $0x58] sm:$0xf0]  ;;  %1713 = vmatpush.bf16.msra.mxu2 %v2377_v48 }
 0x5b3   : > { %v2381_v50 = vor.u32 %v2512_v47, %v2378_v49 }
 0x5b4   : > { %2301 = vmatmul.msk.bf16.gmra.mxu0 %vm1170_vm8, %v1405_v51  ;;  %v2368_v51 = vld [vmem:[#allocation6 + $0x40] sm:$0xf] }
 0x5b5   : > { %1727 = vmatpush.bf16.msra.mxu3 %v2381_v50 }
 0x5c1   : > { %v1300_v52 = vpop.f32.mrf.mxu1 }
 0x5c2   : > { %1439 = vxpose.xlu2.b32.start [1/16] (narrow) %v1300_v52, 16  ;;  %v2511_v52 = vld [vmem:[#allocation6 + $0x44] sm:$0xf0] }
 0x5c9   : > { %v1302_v53 = vpop.f32.mrf.mxu1 }
 0x5ca   : > { %1440 = vxpose.xlu2.b32.cont [2/16] (narrow) %v1302_v53, 16  ;;  %v2510_v53 = vld [vmem:[#allocation6 + $0x44] sm:$0xf] }
 0x5d1   : > { %v1305_v54 = vpop.f32.mrf.mxu1 }
 0x5d2   : > { %1441 = vxpose.xlu2.b32.cont [3/16] (narrow) %v1305_v54, 16  ;;  %v2369_v54 = vor.u32 %v2511_v52, %v2368_v51 }
 0x5d4   : > { %1714 = vmatpush.bf16.msra.mxu2 %v2369_v54 }
 0x5d9   : > { %v1307_v55 = vpop.f32.mrf.mxu1 }
 0x5da   : > { %1442 = vxpose.xlu2.b32.cont [4/16] (narrow) %v1307_v55, 16  ;;  %v2370_v55 = vld [vmem:[#allocation6 + $0x48] sm:$0xf0] }
 0x5e7   : > { %v1343_v56 = vpop.f32.mrf.mxu2 }
 0x5e8   : > { %1443 = vxpose.xlu2.b32.cont [5/16] (narrow) %v1343_v56, 16  ;;  %v2373_v56 = vor.u32 %v2510_v53, %v2370_v55 }
 0x5ea   : > { %1728 = vmatpush.bf16.msra.mxu3 %v2373_v56 }
 0x5ef   : > { %v1345_v57 = vpop.f32.mrf.mxu2 }
 0x5f0   : > { %1444 = vxpose.xlu2.b32.cont [6/16] (narrow) %v1345_v57, 16  ;;  %v2360_v57 = vld [vmem:[#allocation6 + $0x30] sm:$0xf] }
 0x5f7   : > { %v1348_v15 = vpop.f32.mrf.mxu2 }
 0x5f8   : > { %1445 = vxpose.xlu2.b32.cont [7/16] (narrow) %v1348_v15, 16  ;;  %v2509_v15 = vld [vmem:[#allocation6 + $0x34] sm:$0xf0] }
 0x5ff   : > { %v1350_v58 = vpop.f32.mrf.mxu2 }
 0x600   : > { %1446 = vxpose.xlu2.b32.cont [8/16] (narrow) %v1350_v58, 16  ;;  %v2508_v58 = vld [vmem:[#allocation6 + $0x34] sm:$0xf] }
 0x607   : > { %v1386_v59 = vpop.f32.mrf.mxu3 }
 0x608   : > { %1447 = vxpose.xlu2.b32.cont [9/16] (narrow) %v1386_v59, 16  ;;  %v2361_v59 = vor.u32 %v2509_v15, %v2360_v57 }
 0x60a   : > { %1715 = vmatpush.bf16.msra.mxu2 %v2361_v59 }
 0x60f   : > { %v1388_v60 = vpop.f32.mrf.mxu3 }
 0x610   : > { %1448 = vxpose.xlu2.b32.cont [10/16] (narrow) %v1388_v60, 16  ;;  %v2362_v60 = vld [vmem:[#allocation6 + $0x38] sm:$0xf0] }
 0x617   : > { %v1391_v61 = vpop.f32.mrf.mxu3 }
 0x618   : > { %1449 = vxpose.xlu2.b32.cont [11/16] (narrow) %v1391_v61, 16  ;;  %v2365_v61 = vor.u32 %v2508_v58, %v2362_v60 }
 0x61a   : > { %1729 = vmatpush.bf16.msra.mxu3 %v2365_v61 }
 0x61f   : > { %v1393_v62 = vpop.f32.mrf.mxu3 }
 0x620   : > { %1450 = vxpose.xlu2.b32.cont [12/16] (narrow) %v1393_v62, 16  ;;  %v2352_v62 = vld [vmem:[#allocation6 + $0x20] sm:$0xf] }
 0x621   : > { %v1429_v1 = vpop.f32.mrf.mxu0  ;;  %v2353_v63 = vor.u32 %v2507_v0, %v2352_v62 }
 0x623   : > { %1716 = vmatpush.bf16.msra.mxu2 %v2353_v63 }
 0x628   : > { %1451 = vxpose.xlu2.b32.cont [13/16] (narrow) %v1429_v1, 16  ;;  %v2506_v1 = vld [vmem:[#allocation6 + $0x24] sm:$0xf] }
 0x629   : > { %v1431_v4 = vpop.f32.mrf.mxu0  ;;  %v2357_v2 = vor.u32 %v2506_v1, %v2354_v3 }
 0x62b   : > { %1730 = vmatpush.bf16.msra.mxu3 %v2357_v2 }
 0x630   : > { %1452 = vxpose.xlu2.b32.cont [14/16] (narrow) %v1431_v4, 16  ;;  %v2344_v4 = vld [vmem:[#allocation6 + $0x10] sm:$0xf] }
 0x631   : > { %v1434_v7 = vpop.f32.mrf.mxu0 }
 0x638   : > { %1453 = vxpose.xlu2.b32.cont [15/16] (narrow) %v1434_v7, 16  ;;  %v2345_v7 = vor.u32 %v2505_v5, %v2344_v4 }
 0x639   : > { %v1436_v9 = vpop.f32.mrf.mxu0 }
 0x63a   : > { %1717 = vmatpush.bf16.msra.mxu2 %v2345_v7 }
 0x640   : > { %1454 = vxpose.xlu2.b32.end [16/16] (narrow) %v1436_v9, 16  ;;  %v2346_v9 = vld [vmem:[#allocation6 + $0x18] sm:$0xf0] }
 0x661   : > { %v1455_v13 = vpop.trf.xlu2 }
 0x669   : > { %v1456_v14 = vpop.trf.xlu2 }
 0x66a   : > { %v1471_v16 = vpack.c.bf16 %v1456_v14, %v1455_v13  ;;  %v2349_v14 = vor.u32 %v2504_v6, %v2346_v9 }
 0x66c   : > { %1548 = vmatmul.bf16.vlgmr.msra.gmra.mxu1 %v1471_v16  ;;  %v2502_v16 = vld [vmem:[#allocation6 + $0x4] sm:$0xf]  ;;  %1731 = vmatpush.bf16.msra.mxu3 %v2349_v14 }
 0x6e9   : > { %v1549_v18 = vpop.f32.mrf.mxu1 }
 0x6ea   : > { %v1550_v19 = vadd.f32 %v2594_v17, %v1549_v18 }
 0x6ec   : > { %v3020_v21 = vadd.f32 %v2648_v20, %v1550_v19  ;;  %v2337_v19 = vor.u32 %v2503_v12, %v2336_v10  ;;  %v2525_v12 = vld [vmem:[#allocation7 + $0x38] sm:$0xff] }
 0x6ed   : > { %2049 = vmatpush.bf16.msrb.mxu0 %v2525_v12 }
 0x6ee   : > { %1558 = vadd.xlane.f32.xlu0 %v3020_v21  ;;  %1718 = vmatpush.bf16.msra.mxu2 %v2337_v19 }
 0x6f1   : > { %v1551_v22 = vpop.f32.mrf.mxu1 }
 0x6f2   : > { %v1552_v23 = vadd.f32 %v2594_v17, %v1551_v22  ;;  %v2338_v17 = vld [vmem:[#allocation6 + $0x8] sm:$0xf0] }
 0x6f3   : > { %v2341_v20 = vor.u32 %v2502_v16, %v2338_v17 }
 0x6f4   : > { %v3024_v24 = vadd.f32 %v2649_v11, %v1552_v23 }
 0x6f5   : > { %1732 = vmatpush.bf16.msra.mxu3 %v2341_v20 }
 0x6f6   : > { %1560 = vadd.xlane.f32.xlu0 %v3024_v24 }
 0x761   : > { %v1559_v25 = vpop.xlane.xlu0 %1558 }
 0x762   : > { %v1562_v26 = vmul.f32 %v1559_v25, %v2942_v8 }
 0x764   : > { %v3029_v27 = vsub.f32 %v3020_v21, %v1562_v26 }
 0x766   : > { %v1566_v28 = vmul.f32 %v3029_v27, %v3029_v27 }
 0x768   : > { %1568 = vadd.xlane.f32.xlu0 %v1566_v28 }
 0x769   : > { %v1561_v29 = vpop.xlane.xlu0 %1560 }
 0x76a   : > { %v1563_v30 = vmul.f32 %v1561_v29, %v2942_v8 }
 0x76c   : > { %v3035_v31 = vsub.f32 %v3024_v24, %v1563_v30 }
 0x76e   : > { %v1567_v32 = vmul.f32 %v3035_v31, %v3035_v31 }
 0x770   : > { %1570 = vadd.xlane.f32.xlu0 %v1567_v32 }
 0x7db   : > { %v1569_v13 = vpop.xlane.xlu0 %1568 }
 0x7dc   : > { %v1572_v18 = vmul.f32 %v1569_v13, %v2942_v8  ;;  %v2533_v13 = vld [vmem:[#allocation7 + $0x78] sm:$0xff] }
 0x7dd   : > { %2063 = vmatpush.bf16.msrb.mxu1 %v2533_v13 }
 0x7de   : > { %v1574_v22 = vadd.f32 1e-05, %v1572_v18 }
 0x7e0   : > { %2636 = vrsqrt.f32 %v1574_v22  ;;  %vm1582_vm10 = vweird.f32 %v1574_v22 }
 0x7e3   : > { %v1571_v23 = vpop.xlane.xlu0 %1570 }
 0x7e4   : > { %v1573_v11 = vmul.f32 %v1571_v23, %v2942_v8  ;;  %v2524_v23 = vld [vmem:[#allocation7 + $0x30] sm:$0xff] }
 0x7e5   : > { %2050 = vmatpush.bf16.msrb.mxu0 %v2524_v23 }
 0x7e6   : > { %v2637_v25 = vpop.eup %2636  ;;  %v1575_v26 = vadd.f32 1e-05, %v1573_v11  ;;  %v2532_v11 = vld [vmem:[#allocation7 + $0x70] sm:$0xff] }
 0x7e7   : > { %v1577_v28 = vmul.f32 %v2637_v25, %v1574_v22  ;;  %vm1583_vm9 = vweird.f32 %v2637_v25  ;;  %2064 = vmatpush.bf16.msrb.mxu1 %v2532_v11 }
 0x7e8   : > { %2638 = vrsqrt.f32 %v1575_v26  ;;  %vm1584_vm11 = vmor %vm1582_vm10, %vm1583_vm9  ;;  %vm1592_vm13 = vweird.f32 %v1575_v26 }
 0x7e9   : > { %v1578_v29 = vmul.f32 %v2637_v25, %v1577_v28 }
 0x7eb   : > { %v1579_v30 = vmul.f32 0.5, %v1578_v29 }
 0x7ed   : > { %v1580_v32 = vsub.f32 1.5, %v1579_v30 }
 0x7ee   : > { %v2639_v33 = vpop.eup %2638 }
 0x7ef   : > { %v1581_v34 = vmul.f32 %v2637_v25, %v1580_v32  ;;  %v1587_v35 = vmul.f32 %v2639_v33, %v1575_v26  ;;  %vm1593_vm12 = vweird.f32 %v2639_v33 }
 0x7f0   : > { %vm1594_vm14 = vmor %vm1592_vm13, %vm1593_vm12 }
 0x7f1   : > { %v1588_v36 = vmul.f32 %v2639_v33, %v1587_v35  ;;  %v1585_v37 = vsel %vm1584_vm11, %v2637_v25, %v1581_v34 }
 0x7f2   : > { %v1596_v8 = vmul.f32 %v1585_v37, %v3029_v27  ;;  %v1625_v27 = vld [vmem:[%s3193_s10] sm:$0x3] }
 0x7f3   : > { %v1589_v38 = vmul.f32 0.5, %v1588_v36  ;;  %v1627_v50 = vperm.slane %v1625_v27, 0  ;;  %v1628_v51 = vperm.slane %v1625_v27, 1 }
 0x7f4   : > { %v1601_v44 = vmul.f32 %v2595_v40, %v1596_v8 }
 0x7f5   : > { %v1590_v39 = vsub.f32 1.5, %v1589_v38 }
 0x7f6   : > { %v1606_v47 = vadd.f32 %v2596_v45, %v1601_v44 }
 0x7f7   : > { %v1591_v41 = vmul.f32 %v2639_v33, %v1590_v39 }
 0x7f9   : > { %v1595_v42 = vsel %vm1594_vm14, %v2639_v33, %v1591_v41  ;;  %v2531_v41 = vld [vmem:[#allocation7 + $0x68] sm:$0xff] }
 0x7fa   : > { %v1597_v43 = vmul.f32 %v1595_v42, %v3035_v31  ;;  %2065 = vmatpush.bf16.msrb.mxu1 %v2531_v41 }
 0x7fc   : > { %v1602_v46 = vmul.f32 %v2595_v40, %v1597_v43  ;;  %v2523_v40 = vld [vmem:[#allocation7 + $0x28] sm:$0xff] }
 0x7fd   : > { %2051 = vmatpush.bf16.msrb.mxu0 %v2523_v40 }
 0x7fe   : > { %v1607_v48 = vadd.f32 %v2596_v45, %v1602_v46 }
 0x800   : > { %v1608_v49 = vpack.c.bf16 %v1607_v48, %v1606_v47 }
 0x802   : > { %1719 = vmatmul.bf16.vlgmr.msra.gmra.mxu2 %v1608_v49  ;;  %1733 = vmatmul.bf16.vlgmr.msra.gmra.mxu3 %v1608_v49 }
 0x885   : > { %v1720_v52 = vpop.f32.mrf.mxu2  ;;  %v1734_v53 = vpop.f32.mrf.mxu3 }
 0x886   : > { %v3052_v31 = vadd.f32 %v1720_v52, %v1627_v50  ;;  %v3054_v54 = vadd.f32 %v1734_v53, %v1628_v51  ;;  %v2522_v52 = vld [vmem:[#allocation7 + $0x20] sm:$0xff] }
 0x887   : > { %v2530_v53 = vld [vmem:[#allocation7 + $0x60] sm:$0xff]  ;;  %2052 = vmatpush.bf16.msrb.mxu0 %v2522_v52 }
 0x888   : > { %v3057_v55 = vmul.f32 0.70710677, %v3052_v31  ;;  %v3060_v56 = vmul.f32 0.70710677, %v3054_v54  ;;  %2066 = vmatpush.bf16.msrb.mxu1 %v2530_v53 }
 0x88a   : > { %v1747_v57 = vmul.f32 %v3057_v55, %v3057_v55  ;;  %v1787_v15 = vmul.f32 %v3060_v56, %v3060_v56 }
 0x88c   : > { %v3066_v58 = vmin.f32 %v1747_v57, 16.0  ;;  %v3068_v59 = vmin.f32 %v1787_v15, 16.0 }
 0x88d   : > { %v1722_v60 = vpop.f32.mrf.mxu2  ;;  %v1736_v61 = vpop.f32.mrf.mxu3 }
 0x88e   : > { %v1749_v62 = vmul.f32 2.1237322e-06, %v3066_v58  ;;  %v1760_v0 = vmul.f32 3.8918573e-05, %v3066_v58  ;;  %v3072_v1 = vadd.f32 %v1722_v60, %v1627_v50  ;;  %v1800_v63 = vmul.f32 3.8918573e-05, %v3068_v59 }
 0x88f   : > { %v3075_v3 = vadd.f32 %v1736_v61, %v1628_v51  ;;  %v1789_v9 = vmul.f32 2.1237322e-06, %v3068_v59 }
 0x890   : > { %v1750_v2 = vadd.f32 0.00028619796, %v1749_v62  ;;  %v1761_v4 = vadd.f32 0.001143296, %v1760_v0  ;;  %v1801_v5 = vadd.f32 0.001143296, %v1800_v63 }
 0x891   : > { %v3078_v6 = vmul.f32 0.70710677, %v3072_v1  ;;  %v3083_v10 = vmul.f32 0.70710677, %v3075_v3  ;;  %v1790_v26 = vadd.f32 0.00028619796, %v1789_v9 }
 0x892   : > { %v1762_v7 = vmul.f32 %v1761_v4, %v3066_v58  ;;  %v1802_v14 = vmul.f32 %v1801_v5, %v3068_v59  ;;  %v1751_v17 = vmul.f32 %v1750_v2, %v3066_v58  ;;  %v2521_v63 = vld [vmem:[#allocation7 + $0x18] sm:$0xff] }
 0x893   : > { %v1827_v16 = vmul.f32 %v3078_v6, %v3078_v6  ;;  %v1867_v19 = vmul.f32 %v3083_v10, %v3083_v10  ;;  %v1791_v39 = vmul.f32 %v1790_v26, %v3068_v59  ;;  %2053 = vmatpush.bf16.msrb.mxu0 %v2521_v63 }
 0x894   : > { %v1763_v18 = vadd.f32 0.014752088, %v1762_v7  ;;  %v1803_v20 = vadd.f32 0.014752088, %v1802_v14  ;;  %v1752_v33 = vadd.f32 0.0036580483, %v1751_v17 }
 0x895   : > { %v3091_v22 = vmin.f32 %v1827_v16, 16.0  ;;  %v3094_v28 = vmin.f32 %v1867_v19, 16.0  ;;  %v1792_v50 = vadd.f32 0.0036580483, %v1791_v39  ;;  %v2529_v7 = vld [vmem:[#allocation7 + $0x58] sm:$0xff]  ;;  %v2520_v16 = vld [vmem:[#allocation7 + $0x10] sm:$0xff] }
 0x896   : > { %v1764_v25 = vmul.f32 %v1763_v18, %v3066_v58  ;;  %v1804_v29 = vmul.f32 %v1803_v20, %v3068_v59  ;;  %v1753_v46 = vmul.f32 %v1752_v33, %v3066_v58  ;;  %2067 = vmatpush.bf16.msrb.mxu1 %v2529_v7  ;;  %v2528_v17 = vld [vmem:[#allocation7 + $0x50] sm:$0xff]  ;;  %v2527_v33 = vld [vmem:[#allocation7 + $0x48] sm:$0xff] }
 0x897   : > { %v1829_v30 = vmul.f32 2.1237322e-06, %v3091_v22  ;;  %v1840_v32 = vmul.f32 3.8918573e-05, %v3091_v22  ;;  %v1869_v8 = vmul.f32 2.1237322e-06, %v3094_v28  ;;  %v1793_v12 = vmul.f32 %v1792_v50, %v3068_v59  ;;  %2054 = vmatpush.bf16.msrb.mxu0 %v2520_v16 }
 0x898   : > { %v1765_v34 = vadd.f32 0.112945676, %v1764_v25  ;;  %v1805_v35 = vadd.f32 0.112945676, %v1804_v29  ;;  %v1880_v45 = vmul.f32 3.8918573e-05, %v3094_v28 }
 0x899   : > { %v1830_v36 = vadd.f32 0.00028619796, %v1829_v30  ;;  %v1841_v37 = vadd.f32 0.001143296, %v1840_v32  ;;  %v1870_v60 = vadd.f32 0.00028619796, %v1869_v8 }
 0x89a   : > { %v1766_v38 = vmul.f32 %v1765_v34, %v3066_v58  ;;  %v1806_v42 = vmul.f32 %v1805_v35, %v3068_v59  ;;  %v1881_v61 = vadd.f32 0.001143296, %v1880_v45  ;;  %v1754_v62 = vadd.f32 0.05243302, %v1753_v46  ;;  %2068 = vmatpush.bf16.msrb.mxu1 %v2528_v17  ;;  %v2519_v32 = vld [vmem:[#allocation7 + $0x8] sm:$0xff]  ;;  %v2518_v45 = vld [vmem:[#allocation7] sm:$0xff] }
 0x89b   : > { %v1831_v43 = vmul.f32 %v1830_v36, %v3091_v22  ;;  %v1842_v44 = vmul.f32 %v1841_v37, %v3091_v22  ;;  %v1871_v13 = vmul.f32 %v1870_v60, %v3094_v28  ;;  %v1794_v23 = vadd.f32 0.05243302, %v1793_v12  ;;  %2055 = vmatpush.bf16.msrb.mxu0 %v2519_v32  ;;  %v2526_v46 = vld [vmem:[#allocation7 + $0x40] sm:$0xff] }
 0x89c   : > { %v1767_v47 = vadd.f32 0.4994258, %v1766_v38  ;;  %v1807_v48 = vadd.f32 0.4994258, %v1806_v42  ;;  %v1882_v5 = vmul.f32 %v1881_v61, %v3094_v28  ;;  %v1755_v14 = vmul.f32 %v1754_v62, %v3066_v58 }
 0x89d   : > { %v1843_v49 = vadd.f32 0.014752088, %v1842_v44  ;;  %v1832_v51 = vadd.f32 0.0036580483, %v1831_v43  ;;  %v1872_v25 = vadd.f32 0.0036580483, %v1871_v13  ;;  %v1795_v40 = vmul.f32 %v1794_v23, %v3068_v59 }
 0x89e   : > { %v1768_v27 = vmul.f32 %v1767_v47, %v3066_v58  ;;  %v1808_v57 = vmul.f32 %v1807_v48, %v3068_v59  ;;  %v1883_v19 = vadd.f32 0.014752088, %v1882_v5  ;;  %v1756_v30 = vadd.f32 0.18741608, %v1755_v14  ;;  %2069 = vmatpush.bf16.msrb.mxu1 %v2527_v33 }
 0x89f   : > { %v1844_v15 = vmul.f32 %v1843_v49, %v3091_v22  ;;  %v1833_v9 = vmul.f32 %v1832_v51, %v3091_v22  ;;  %v1873_v42 = vmul.f32 %v1872_v25, %v3094_v28  ;;  %v1796_v52 = vadd.f32 0.18741608, %v1795_v40  ;;  %2056 = vmatpush.bf16.msrb.mxu0 %v2518_v45 }
 0x8a0   : > { %v3110_v0 = vadd.f32 1.0, %v1768_v27  ;;  %v3112_v2 = vadd.f32 1.0, %v1808_v57  ;;  %v1884_v26 = vmul.f32 %v1883_v19, %v3094_v28  ;;  %v1757_v43 = vmul.f32 %v1756_v30, %v3066_v58 }
 0x8a1   : > { %v1845_v4 = vadd.f32 0.112945676, %v1844_v15  ;;  %v1834_v20 = vadd.f32 0.05243302, %v1833_v9  ;;  %v1874_v53 = vadd.f32 0.05243302, %v1873_v42 }
 0x8a2   : > { %2640 = vrcp.f32 %v3110_v0  ;;  %v1885_v39 = vadd.f32 0.112945676, %v1884_v26  ;;  %v1781_v51 = vand.u32 2147483648, %v3110_v0  ;;  %v1758_v57 = vadd.f32 1.1283791, %v1757_v43  ;;  %2070 = vmatpush.bf16.msrb.mxu1 %v2526_v46 }
 0x8a3   : > { %2642 = vrcp.f32 %v3112_v2  ;;  %v1846_v18 = vmul.f32 %v1845_v4, %v3091_v22  ;;  %v1835_v38 = vmul.f32 %v1834_v20, %v3091_v22  ;;  %vm1775_vm0 = vweird.f32 %v3110_v0 }
 0x8a4   : > { %v1886_v44 = vmul.f32 %v1885_v39, %v3094_v28  ;;  %v1779_v58 = vand.u32 2147483647, %v3110_v0  ;;  %v1782_v5 = vor.u32 1.1754944e-38, %v1781_v51  ;;  %v1875_v7 = vmul.f32 %v1874_v53, %v3094_v28 }
 0x8a5   : > { %v1847_v11 = vadd.f32 0.4994258, %v1846_v18  ;;  %v1836_v49 = vadd.f32 0.18741608, %v1835_v38  ;;  %v1759_v9 = vmul.f32 %v1758_v57, %v3057_v55  ;;  %v1821_v16 = vand.u32 2147483648, %v3112_v2 }
 0x8a6   : > { %v1887_v27 = vadd.f32 0.4994258, %v1886_v44  ;;  %vm1780_vm2 = vcmp.eq.f32.partialorder %v1779_v58, 8.507059e+37  ;;  %vm1815_vm4 = vweird.f32 %v3112_v2  ;;  %v1876_v20 = vadd.f32 0.18741608, %v1875_v7 }
 0x8a7   : > { %v1848_v36 = vmul.f32 %v1847_v11, %v3091_v22  ;;  %v1837_v62 = vmul.f32 %v1836_v49, %v3091_v22  ;;  %v1819_v22 = vand.u32 2147483647, %v3112_v2 }
 0x8a8   : > { %v2641_v29 = vpop.eup %2640  ;;  %v1888_v15 = vmul.f32 %v1887_v27, %v3094_v28 }
 0x8a9   : > { %v3123_v34 = vpop.eup %2642  ;;  %v1771_v35 = vmul.f32 %v2641_v29, %v3110_v0  ;;  %v1849_v41 = vadd.f32 1.0, %v1848_v36  ;;  %vm1776_vm15 = vweird.f32 %v2641_v29  ;;  %v1797_v0 = vmul.f32 %v1796_v52, %v3068_v59 }
 0x8aa   : > { %v1811_v37 = vmul.f32 %v3123_v34, %v3112_v2  ;;  %vm1777_vm1 = vmor %vm1775_vm0, %vm1776_vm15  ;;  %v3140_v63 = vadd.f32 1.0, %v1888_v15  ;;  %vm1816_vm3 = vweird.f32 %v3123_v34  ;;  %v1838_v17 = vadd.f32 1.1283791, %v1837_v62 }
 0x8ab   : > { %v1772_v8 = vsub.f32 1.0, %v1771_v35  ;;  %2644 = vrcp.f32 %v1849_v41  ;;  %v1859_v55 = vand.u32 2147483647, %v1849_v41  ;;  %v1861_v19 = vand.u32 2147483648, %v1849_v41  ;;  %vm3151_vm5 = vmor %vm1815_vm4, %vm1816_vm3 }
 0x8ac   : > { %v1812_v48 = vsub.f32 1.0, %v1811_v37  ;;  %2646 = vrcp.f32 %v3140_v63  ;;  %v1798_v25 = vadd.f32 1.1283791, %v1797_v0  ;;  %vm1820_vm7 = vcmp.eq.f32.partialorder %v1819_v22, 8.507059e+37 }
 0x8ad   : > { %v1773_v47 = vmul.f32 %v2641_v29, %v1772_v8  ;;  %vm1855_vm8 = vweird.f32 %v1849_v41  ;;  %v1839_v32 = vmul.f32 %v1838_v17, %v3078_v6  ;;  %vm1860_vm10 = vcmp.eq.f32.partialorder %v1859_v55, 8.507059e+37 }
 0x8ae   : > { %v1813_v60 = vmul.f32 %v3123_v34, %v1812_v48  ;;  %v1862_v33 = vor.u32 1.1754944e-38, %v1861_v19  ;;  %v1877_v35 = vmul.f32 %v1876_v20, %v3094_v28  ;;  %v1799_v8 = vmul.f32 %v1798_v25, %v3060_v56 }
 0x8af   : > { %v1774_v50 = vadd.f32 %v2641_v29, %v1773_v47  ;;  %v1899_v44 = vand.u32 2147483647, %v3140_v63  ;;  %v1901_v6 = vand.u32 2147483648, %v3140_v63  ;;  %v1739_v28 = vmul.f32 0.5, %v3052_v31 }
 0x8b0   : > { %v1814_v14 = vadd.f32 %v3123_v34, %v1813_v60  ;;  %v1741_v48 = vmul.f32 0.5, %v3072_v1  ;;  %vm1895_vm12 = vweird.f32 %v3140_v63  ;;  %v1740_v1 = vmul.f32 0.5, %v3054_v54 }
 0x8b1   : > { %v1778_v61 = vsel %vm1777_vm1, %v2641_v29, %v1774_v50  ;;  %v2645_v4 = vpop.eup %2644  ;;  %v1822_v29 = vor.u32 1.1754944e-38, %v1821_v16  ;;  %v1902_v51 = vor.u32 1.1754944e-38, %v1901_v6  ;;  %vm1900_vm14 = vcmp.eq.f32.partialorder %v1899_v44, 8.507059e+37 }
 0x8b2   : > { %v1851_v12 = vmul.f32 %v2645_v4, %v1849_v41  ;;  %v1783_v13 = vsel %vm1780_vm2, %v1782_v5, %v1778_v61  ;;  %vm1856_vm6 = vweird.f32 %v2645_v4  ;;  %v1818_v26 = vsel %vm3151_vm5, %v3123_v34, %v1814_v14  ;;  %v2647_v2 = vpop.eup %2646 }
 0x8b3   : > { %v1784_v59 = vmul.f32 %v1783_v13, %v1759_v9  ;;  %vm1857_vm9 = vmor %vm1855_vm8, %vm1856_vm6  ;;  %v1823_v37 = vsel %vm1820_vm7, %v1822_v29, %v1818_v26  ;;  %v1891_v39 = vmul.f32 %v2647_v2, %v3140_v63  ;;  %v1878_v41 = vadd.f32 1.1283791, %v1877_v35  ;;  %v2597_v9 = vld [vmem:[%s3195_s12] ss:$0 sm:$0xff] }
 0x8b4   : > { %v1852_v18 = vsub.f32 1.0, %v1851_v12  ;;  %v1824_v43 = vmul.f32 %v1823_v37, %v1799_v8  ;;  %vm1896_vm11 = vweird.f32 %v2647_v2  ;;  %v1742_v62 = vmul.f32 0.5, %v3075_v3 }
 0x8b5   : > { %v2398_v36 = vclamps-f32 %v1784_v59, 1.0  ;;  %v1892_v42 = vsub.f32 1.0, %v1891_v39  ;;  %v1879_v50 = vmul.f32 %v1878_v41, %v3083_v10  ;;  %vm1897_vm13 = vmor %vm1895_vm12, %vm1896_vm11 }
 0x8b6   : > { %v1853_v11 = vmul.f32 %v2645_v4, %v1852_v18  ;;  %v2399_v56 = vclamps-f32 %v1824_v43, 1.0 }
 0x8b7   : > { %v1907_v45 = vadd.f32 1.0, %v2398_v36  ;;  %v1893_v47 = vmul.f32 %v2647_v2, %v1892_v42 }
 0x8b8   : > { %v1854_v30 = vadd.f32 %v2645_v4, %v1853_v11  ;;  %v1908_v31 = vadd.f32 1.0, %v2399_v56 }
 0x8b9   : > { %v1894_v27 = vadd.f32 %v2647_v2, %v1893_v47  ;;  %v1911_v52 = vmul.f32 %v1907_v45, %v1739_v28 }
 0x8ba   : > { %v1858_v38 = vsel %vm1857_vm9, %v2645_v4, %v1854_v30  ;;  %v1912_v4 = vmul.f32 %v1908_v31, %v1740_v1 }
 0x8bb   : > { %v1863_v34 = vsel %vm1860_vm10, %v1862_v33, %v1858_v38  ;;  %v1898_v57 = vsel %vm1897_vm13, %v2647_v2, %v1894_v27 }
 0x8bc   : > { %v1864_v40 = vmul.f32 %v1863_v34, %v1839_v32  ;;  %v1903_v58 = vsel %vm1900_vm14, %v1902_v51, %v1898_v57 }
 0x8bd   : > { %v1904_v60 = vmul.f32 %v1903_v58, %v1879_v50 }
 0x8be   : > { %v2400_v46 = vclamps-f32 %v1864_v40, 1.0 }
 0x8bf   : > { %v2401_v61 = vclamps-f32 %v1904_v60, 1.0 }
 0x8c0   : > { %v1909_v49 = vadd.f32 1.0, %v2400_v46 }
 0x8c1   : > { %v1910_v63 = vadd.f32 1.0, %v2401_v61 }
 0x8c2   : > { %v1913_v53 = vmul.f32 %v1909_v49, %v1741_v48 }
 0x8c3   : > { %v1914_v10 = vmul.f32 %v1910_v63, %v1742_v62 }
 0x8c4   : > { %v1915_v15 = vpack.c.bf16 %v1913_v53, %v1911_v52 }
 0x8c5   : > { %v1916_v5 = vpack.c.bf16 %v1914_v10, %v1912_v4 }
 0x8c6   : > { %2057 = vmatmul.bf16.vlgmr.msrb.gmra.mxu0 %v1915_v15 }
 0x8c7   : > { %2071 = vmatmul.bf16.vlgmr.msrb.gmra.mxu1 %v1916_v5 }
 0x943   : > { %v2058_v7 = vpop.f32.mrf.mxu0 }
 0x944   : > { %v2059_v0 = vadd.f32 %v2597_v9, %v2058_v7  ;;  %v2072_v12 = vpop.f32.mrf.mxu1 }
 0x946   : > { %v2073_v13 = vadd.f32 %v2072_v12, %v2059_v0 }
 0x948   : > { %v2077_v3 = vadd.f32 %v2073_v13, %v3020_v21 }
 0x94a   : > { %2079 = vst [vmem:[%s507_s18] sm:$0xff] %v2077_v3 }
 0x94b   : > { %v2060_v54 = vpop.f32.mrf.mxu0 }
 0x94c   : > { %v2061_v14 = vadd.f32 %v2597_v9, %v2060_v54  ;;  %v2074_v22 = vpop.f32.mrf.mxu1 }
 0x94e   : > { %v2075_v16 = vadd.f32 %v2074_v22, %v2061_v14 }
 0x950   : > { %v2078_v17 = vadd.f32 %v2075_v16, %v3024_v24 }
 0x952   : > { %2080 = vst [vmem:[%s507_s18 + $0x8] sm:$0xff] %v2078_v17 }
 0x953 PF: > { %s3209_s19 = sld [smem:[#allocation12_spill]] }
 0x959   : > { %s26_s25 = sadd.s32 1, %s3209_s19  }
 0x95a   : > { %p23_p7 = scmp.ge.s32.totalorder %s26_s25, 4  }
 0x95c   :  { %25 = sbr.rel (!%p23_p7) target bundleno = 7 (0x7), region = 119 }
 0x961   :  { %2102 = vsyncpa [#allocation3], 1 }
 0x962   :  { %2104 = vsyncpa [#allocation3 + $0x1], 1 }
 0x963   :  { %2105 = vsyncpa [#allocation5], 1 }
 0x964   :  { %2106 = vsyncpa [#allocation8], 1 }

</bundles_post_ra>
